<compile_context>
chip_gen: v7x
topology: tpu7x:2x2x1
jax: 0.10.0
libtpu: 0.0.40
codegen_flags: <defaults>
</compile_context>

<pallas_src>
import functools

import jax
import jax.numpy as jnp
from jax.experimental import pallas as pl
from jax.experimental.pallas import tpu as pltpu


# ------------------------------- fused kernel -------------------------------

def _fused_kernel(x_ref,
                  fs1, ft1, fw1, fb1, fs2, ft2, fw2, fb2, fs3, ft3, fw3, fb3,
                  hs1, ht1, hw1, hb1, hs2, ht2, hw2, hb2, hs3, ht3, hw3, hb3,
                  sa, ta, wa, ba, sb, tb, wb, bb,
                  srow, scol3, urow, ucol,
                  o_ref, *, H, W, C):
    f32 = jnp.float32

    def preact(v, P, blk):
        """PreactResidual (stride 1, identity shortcut) on a lane-dense
        (h, w*C) slab.  Channel/column mixing lives entirely in the
        precomputed block-diagonal / banded weights -> mask-free kernel."""
        (s1, t1, w1, b1, s2, t2, w2, b2, s3, t3, w3, b3) = P
        h = v.shape[0]
        # BN1 -> ReLU -> 1x1 conv (block-diagonal weight)
        a = jnp.maximum(v * s1[blk] + t1[blk], 0.0)
        y1 = jnp.dot(a, w1[blk], preferred_element_type=f32) + b1[blk]
        # BN2 -> ReLU
        y1 = jnp.maximum(y1 * s2[blk] + t2[blk], 0.0)
        # 3x3 conv, pad 1: zero-pad rows once; each ky tap is a row slice
        # contracted against a banded weight (kx + W-padding folded in).
        zrow = jnp.zeros((1, y1.shape[1]), f32)
        yp = jnp.concatenate([zrow, y1, zrow], axis=0)             # (h+2, w*CB)
        conv = (jnp.dot(yp[0:h], w2[blk, 0], preferred_element_type=f32)
                + jnp.dot(yp[1:h + 1], w2[blk, 1], preferred_element_type=f32)
                + jnp.dot(yp[2:h + 2], w2[blk, 2], preferred_element_type=f32)
                + b2[blk])
        # BN3 -> ReLU -> final 1x1 conv + identity shortcut
        y2 = jnp.maximum(conv * s3[blk] + t3[blk], 0.0)
        return jnp.dot(y2, w3[blk], preferred_element_type=f32) + b3[blk] + v

    PF = (fs1, ft1, fw1, fb1, fs2, ft2, fw2, fb2, fs3, ft3, fw3, fb3)
    PH = (hs1, ht1, hw1, hb1, hs2, ht2, hw2, hb2, hs3, ht3, hw3, hb3)

    x0 = x_ref[0]                                    # (H, W*C) lane-dense slab
    x = preact(x0, PF, 0)                            # stem
    x_trunk = preact(preact(x, PF, 1), PF, 2)        # trunk (x2)

    # --- maxpool 3x3 / stride 2 / pad 1 (mask-free) --------------------------
    ninf = jnp.full((1, W * C), -jnp.inf, f32)
    xp = jnp.concatenate([ninf, x, ninf], axis=0)               # (H+2, W*C)
    rmax = jnp.maximum(jnp.maximum(xp[0:H], xp[1:H + 1]), xp[2:H + 2])
    # rmax is finite everywhere (center tap), so one-hot matmuls are safe.
    rsel = jnp.dot(srow[...], rmax, preferred_element_type=f32)  # even rows
    c0 = jnp.dot(rsel, scol3[0], preferred_element_type=f32)     # col 2xo-1
    c1 = jnp.dot(rsel, scol3[1], preferred_element_type=f32)     # col 2xo
    c2 = jnp.dot(rsel, scol3[2], preferred_element_type=f32)     # col 2xo+1
    x_soft = jnp.maximum(jnp.maximum(c0, c1), c2)                # (HO, WO*C)

    # --- soft mask branch at half resolution ---------------------------------
    x_soft = preact(x_soft, PH, 0)                   # soft_resdown1
    x_soft = preact(x_soft, PH, 1)                   # soft_resdown2
    x_soft = preact(x_soft, PH, 2)                   # soft_resup1
    x_soft = preact(x_soft, PH, 3)                   # soft_resup2

    # nearest upsample back to (H, W*C): row duplicate, then column duplicate.
    x_up = jnp.dot(urow[...], x_soft, preferred_element_type=f32)   # (H, WO*C)
    x_up = jnp.dot(x_up, ucol[...], preferred_element_type=f32)     # (H, W*C)

    # --- sigmoid gate: BN, ReLU, 1x1, BN, ReLU, 1x1, Sigmoid -----------------
    g = jnp.maximum(x_up * sa[...] + ta[...], 0.0)
    g = jnp.dot(g, wa[...], preferred_element_type=f32) + ba[...]
    g = jnp.maximum(g * sb[...] + tb[...], 0.0)
    g = jnp.dot(g, wb[...], preferred_element_type=f32) + bb[...]
    gate = jax.nn.sigmoid(g)

    y = (1.0 + gate) * x_trunk                        # (1 + soft) * trunk
    o_ref[0] = preact(y, PF, 3)                       # last block


# -------------------- wrapper-side weight "densification" -------------------

def _densify_block(raw, idx, wd):
    """Lane-dense params for PreactResidual block `idx` at spatial width wd."""
    f32 = jnp.float32
    eye_w = jnp.eye(wd, dtype=f32)

    def tile(v):                     # (1, k) -> (1, wd*k), channels fastest
        return jnp.tile(v, (1, wd))

    # 3x3 conv: per-ky banded weight, kx shifts + zero W-padding folded in.
    w2 = raw['w2'][idx]              # (3, 3, cb, cb) indexed [ky, kx]
    w2_banded = jnp.stack(
        [sum(jnp.kron(jnp.eye(wd, k=1 - kx, dtype=f32), w2[ky, kx])
             for kx in range(3))
         for ky in range(3)], axis=0)                  # (3, wd*cb, wd*cb)

    return [tile(raw['s1'][idx]), tile(raw['t1'][idx]),
            jnp.kron(eye_w, raw['w1'][idx]), tile(raw['b1'][idx]),
            tile(raw['s2'][idx]), tile(raw['t2'][idx]),
            w2_banded, tile(raw['b2'][idx]),
            tile(raw['s3'][idx]), tile(raw['t3'][idx]),
            jnp.kron(eye_w, raw['w3'][idx]), tile(raw['b3'][idx])]


def _densify_group(raw, idxs, wd):
    per_block = [_densify_block(raw, i, wd) for i in idxs]
    return [jnp.stack([pb[j] for pb in per_block], axis=0) for j in range(12)]


def _densify_sigmoid(sig, wd):
    f32 = jnp.float32
    eye_w = jnp.eye(wd, dtype=f32)

    def tile(v):
        return jnp.tile(v, (1, wd))

    return [tile(sig['sa']), tile(sig['ta']), jnp.kron(eye_w, sig['wa']),
            tile(sig['ba']), tile(sig['sb']), tile(sig['tb']),
            jnp.kron(eye_w, sig['wb']), tile(sig['bb'])]


def _resample_matrices(h, w, ho, wo, c):
    """One-hot selection matrices for maxpool downsample / nearest upsample."""
    f32 = jnp.float32
    eye_c = jnp.eye(c, dtype=f32)
    # even-row select for the (row-maxed) pooled map
    srow = (jnp.arange(h)[None, :] == 2 * jnp.arange(ho)[:, None]).astype(f32)
    # per-tap column selection for maxpool; borders clamped (duplicates are
    # equivalent to -inf padding under max)
    scols = []
    for dx in (-1, 0, 1):
        src = jnp.clip(2 * jnp.arange(wo) + dx, 0, w - 1)
        pix = (jnp.arange(w)[:, None] == src[None, :]).astype(f32)   # (w, wo)
        scols.append(jnp.kron(pix, eye_c))                           # (w*c, wo*c)
    scol3 = jnp.stack(scols, axis=0)
    # nearest-neighbour upsample (same index rule as F.interpolate default)
    usrc_r = (jnp.arange(h) * ho) // h
    urow = (jnp.arange(ho)[None, :] == usrc_r[:, None]).astype(f32)  # (h, ho)
    usrc_c = (jnp.arange(w) * wo) // w
    upix = (usrc_c[None, :] == jnp.arange(wo)[:, None]).astype(f32)  # (wo, w)
    ucol = jnp.kron(upix, eye_c)                                     # (wo*c, w*c)
    return srow, scol3, urow, ucol


# ------------------------------- model wrapper ------------------------------

def attention_module3_forward(x_nchw, params):
    n, c, h, w = x_nchw.shape
    assert c % 4 == 0
    ho = (h + 2 - 3) // 2 + 1
    wo = (w + 2 - 3) // 2 + 1

    # NCHW -> lane-dense (N, H, W*C): W and C share the 128-wide lane axis, so
    # elementwise ops run on packed vregs and output stores are unmasked.
    x = jnp.transpose(x_nchw, (0, 2, 3, 1)).reshape(n, h, w * c)
    x = x.astype(jnp.float32)

    raw = params['blocks']
    full_ops = _densify_group(raw, (0, 1, 2, 7), w)    # stem, trunk x2, last
    half_ops = _densify_group(raw, (3, 4, 5, 6), wo)   # down1, down2, up1, up2
    sig_ops = _densify_sigmoid(params['sigmoid'], w)
    srow, scol3, urow, ucol = _resample_matrices(h, w, ho, wo, c)

    operands = ([x] + full_ops + half_ops + sig_ops
                + [srow, scol3, urow, ucol])

    def _full(a):
        nd = a.ndim
        return pl.BlockSpec(a.shape, lambda i, _nd=nd: (0,) * _nd)

    in_specs = [pl.BlockSpec((1, h, w * c), lambda i: (i, 0, 0))]
    in_specs += [_full(a) for a in operands[1:]]

    out = pl.pallas_call(
        functools.partial(_fused_kernel, H=h, W=w, C=c),
        out_shape=jax.ShapeDtypeStruct((n, h, w * c), jnp.float32),
        grid=(n,),                                     # one image per step
        in_specs=in_specs,
        out_specs=pl.BlockSpec((1, h, w * c), lambda i: (i, 0, 0)),
        compiler_params=pltpu.CompilerParams(
            dimension_semantics=("parallel",)),        # 2-way TC split on v7x
    )(*operands)

    return jnp.transpose(out.reshape(n, h, w, c), (0, 3, 1, 2))   # -> NCHW


# --------------------------- deterministic parameters -----------------------

def _init_bn(key, c):
    k1, k2, k3, k4 = jax.random.split(key, 4)
    gamma = 1.0 + 0.1 * jax.random.normal(k1, (c,))
    beta = 0.1 * jax.random.normal(k2, (c,))
    mean = 0.1 * jax.random.normal(k3, (c,))
    var = 1.0 + 0.1 * jax.random.uniform(k4, (c,))
    scale = gamma / jnp.sqrt(var + 1e-5)
    shift = beta - mean * scale
    return (scale.reshape(1, c).astype(jnp.float32),
            shift.reshape(1, c).astype(jnp.float32))


def _init_conv1x1(key, cin, cout):
    k1, k2 = jax.random.split(key)
    wgt = (jax.random.normal(k1, (cin, cout)) / jnp.sqrt(cin)).astype(jnp.float32)
    b = (0.05 * jax.random.normal(k2, (cout,))).reshape(1, cout).astype(jnp.float32)
    return wgt, b


def _init_conv3x3(key, cin, cout):
    k1, k2 = jax.random.split(key)
    wgt = (jax.random.normal(k1, (3, 3, cin, cout)) / jnp.sqrt(9 * cin))
    wgt = wgt.astype(jnp.float32)                      # indexed [ky, kx, ci, co]
    b = (0.05 * jax.random.normal(k2, (cout,))).reshape(1, cout).astype(jnp.float32)
    return wgt, b


def _init_preact(key, c):
    cb = c // 4
    ks = jax.random.split(key, 6)
    s1, t1 = _init_bn(ks[0], c)
    w1, b1 = _init_conv1x1(ks[1], c, cb)
    s2, t2 = _init_bn(ks[2], cb)
    w2, b2 = _init_conv3x3(ks[3], cb, cb)
    s3, t3 = _init_bn(ks[4], cb)
    w3, b3 = _init_conv1x1(ks[5], cb, c)
    return dict(s1=s1, t1=t1, w1=w1, b1=b1, s2=s2, t2=t2,
                w2=w2, b2=b2, s3=s3, t3=t3, w3=w3, b3=b3)


def _init_sigmoid(key, c):
    ks = jax.random.split(key, 4)
    sa, ta = _init_bn(ks[0], c)
    wa, ba = _init_conv1x1(ks[1], c, c)
    sb, tb = _init_bn(ks[2], c)
    wb, bb = _init_conv1x1(ks[3], c, c)
    return dict(sa=sa, ta=ta, wa=wa, ba=ba, sb=sb, tb=tb, wb=wb, bb=bb)


def init_attention_module3(key, c):
    ks = jax.random.split(key, 10)
    # Block order (stacked on leading axis 8):
    #   0 stem, 1-2 trunk, 3 down1, 4 down2, 5 up1, 6 up2, 7 last
    block_keys = [ks[0], ks[1], ks[2], ks[3], ks[4], ks[5], ks[6], ks[8]]
    blocks = [_init_preact(k, c) for k in block_keys]
    stacked = jax.tree_util.tree_map(lambda *xs: jnp.stack(xs, axis=0), *blocks)
    return {'blocks': stacked, 'sigmoid': _init_sigmoid(ks[7], c)}


# ------------------------------------ main -----------------------------------

if __name__ == "__main__":
    key = jax.random.PRNGKey(0)
    k_x, k_p = jax.random.split(key)

    N, C, H, W = 2, 16, 16, 16          # in_dim == out_dim == 16 (bottleneck 4)
    x = jax.random.normal(k_x, (N, C, H, W), dtype=jnp.float32)
    params = init_attention_module3(k_p, C)

    fwd = jax.jit(attention_module3_forward)
    y = jax.block_until_ready(fwd(x, params))

    assert y.shape == (N, C, H, W), y.shape
    assert bool(jnp.all(jnp.isfinite(y)))
    print("KERNEL_OK")
</pallas_src>

<mosaic_0001>
module attributes {stable_mosaic.version = 11 : i64} {
  func.func @_fused_kernel(%arg0: i32, %arg1: memref<1x16x256xf32, #tpu.memory_space<vmem>>, %arg2: memref<4x1x256xf32, #tpu.memory_space<vmem>>, %arg3: memref<4x1x256xf32, #tpu.memory_space<vmem>>, %arg4: memref<4x256x64xf32, #tpu.memory_space<vmem>>, %arg5: memref<4x1x64xf32, #tpu.memory_space<vmem>>, %arg6: memref<4x1x64xf32, #tpu.memory_space<vmem>>, %arg7: memref<4x1x64xf32, #tpu.memory_space<vmem>>, %arg8: memref<4x3x64x64xf32, #tpu.memory_space<vmem>>, %arg9: memref<4x1x64xf32, #tpu.memory_space<vmem>>, %arg10: memref<4x1x64xf32, #tpu.memory_space<vmem>>, %arg11: memref<4x1x64xf32, #tpu.memory_space<vmem>>, %arg12: memref<4x64x256xf32, #tpu.memory_space<vmem>>, %arg13: memref<4x1x256xf32, #tpu.memory_space<vmem>>, %arg14: memref<4x1x128xf32, #tpu.memory_space<vmem>>, %arg15: memref<4x1x128xf32, #tpu.memory_space<vmem>>, %arg16: memref<4x128x32xf32, #tpu.memory_space<vmem>>, %arg17: memref<4x1x32xf32, #tpu.memory_space<vmem>>, %arg18: memref<4x1x32xf32, #tpu.memory_space<vmem>>, %arg19: memref<4x1x32xf32, #tpu.memory_space<vmem>>, %arg20: memref<4x3x32x32xf32, #tpu.memory_space<vmem>>, %arg21: memref<4x1x32xf32, #tpu.memory_space<vmem>>, %arg22: memref<4x1x32xf32, #tpu.memory_space<vmem>>, %arg23: memref<4x1x32xf32, #tpu.memory_space<vmem>>, %arg24: memref<4x32x128xf32, #tpu.memory_space<vmem>>, %arg25: memref<4x1x128xf32, #tpu.memory_space<vmem>>, %arg26: memref<1x256xf32, #tpu.memory_space<vmem>>, %arg27: memref<1x256xf32, #tpu.memory_space<vmem>>, %arg28: memref<256x256xf32, #tpu.memory_space<vmem>>, %arg29: memref<1x256xf32, #tpu.memory_space<vmem>>, %arg30: memref<1x256xf32, #tpu.memory_space<vmem>>, %arg31: memref<1x256xf32, #tpu.memory_space<vmem>>, %arg32: memref<256x256xf32, #tpu.memory_space<vmem>>, %arg33: memref<1x256xf32, #tpu.memory_space<vmem>>, %arg34: memref<8x16xf32, #tpu.memory_space<vmem>>, %arg35: memref<3x256x128xf32, #tpu.memory_space<vmem>>, %arg36: memref<16x8xf32, #tpu.memory_space<vmem>>, %arg37: memref<128x256xf32, #tpu.memory_space<vmem>>, %arg38: memref<1x16x256xf32, #tpu.memory_space<vmem>>) attributes {dimension_semantics = [#tpu.dimension_semantics<parallel>], iteration_bounds = array<i64: 2>, scalar_prefetch = 0 : i64, scratch_operands = 0 : i64, tpu.core_type = #tpu.core_type<tc>, window_params = [{transform_indices = @transform_0, window_bounds = array<i64: 1, 16, 256>}, {pipeline_mode = #tpu.pipeline_mode<synchronous>, transform_indices = @transform_1, window_bounds = array<i64: 4, 1, 256>}, {pipeline_mode = #tpu.pipeline_mode<synchronous>, transform_indices = @transform_2, window_bounds = array<i64: 4, 1, 256>}, {pipeline_mode = #tpu.pipeline_mode<synchronous>, transform_indices = @transform_3, window_bounds = array<i64: 4, 256, 64>}, {pipeline_mode = #tpu.pipeline_mode<synchronous>, transform_indices = @transform_4, window_bounds = array<i64: 4, 1, 64>}, {pipeline_mode = #tpu.pipeline_mode<synchronous>, transform_indices = @transform_5, window_bounds = array<i64: 4, 1, 64>}, {pipeline_mode = #tpu.pipeline_mode<synchronous>, transform_indices = @transform_6, window_bounds = array<i64: 4, 1, 64>}, {pipeline_mode = #tpu.pipeline_mode<synchronous>, transform_indices = @transform_7, window_bounds = array<i64: 4, 3, 64, 64>}, {pipeline_mode = #tpu.pipeline_mode<synchronous>, transform_indices = @transform_8, window_bounds = array<i64: 4, 1, 64>}, {pipeline_mode = #tpu.pipeline_mode<synchronous>, transform_indices = @transform_9, window_bounds = array<i64: 4, 1, 64>}, {pipeline_mode = #tpu.pipeline_mode<synchronous>, transform_indices = @transform_10, window_bounds = array<i64: 4, 1, 64>}, {pipeline_mode = #tpu.pipeline_mode<synchronous>, transform_indices = @transform_11, window_bounds = array<i64: 4, 64, 256>}, {pipeline_mode = #tpu.pipeline_mode<synchronous>, transform_indices = @transform_12, window_bounds = array<i64: 4, 1, 256>}, {pipeline_mode = #tpu.pipeline_mode<synchronous>, transform_indices = @transform_13, window_bounds = array<i64: 4, 1, 128>}, {pipeline_mode = #tpu.pipeline_mode<synchronous>, transform_indices = @transform_14, window_bounds = array<i64: 4, 1, 128>}, {pipeline_mode = #tpu.pipeline_mode<synchronous>, transform_indices = @transform_15, window_bounds = array<i64: 4, 128, 32>}, {pipeline_mode = #tpu.pipeline_mode<synchronous>, transform_indices = @transform_16, window_bounds = array<i64: 4, 1, 32>}, {pipeline_mode = #tpu.pipeline_mode<synchronous>, transform_indices = @transform_17, window_bounds = array<i64: 4, 1, 32>}, {pipeline_mode = #tpu.pipeline_mode<synchronous>, transform_indices = @transform_18, window_bounds = array<i64: 4, 1, 32>}, {pipeline_mode = #tpu.pipeline_mode<synchronous>, transform_indices = @transform_19, window_bounds = array<i64: 4, 3, 32, 32>}, {pipeline_mode = #tpu.pipeline_mode<synchronous>, transform_indices = @transform_20, window_bounds = array<i64: 4, 1, 32>}, {pipeline_mode = #tpu.pipeline_mode<synchronous>, transform_indices = @transform_21, window_bounds = array<i64: 4, 1, 32>}, {pipeline_mode = #tpu.pipeline_mode<synchronous>, transform_indices = @transform_22, window_bounds = array<i64: 4, 1, 32>}, {pipeline_mode = #tpu.pipeline_mode<synchronous>, transform_indices = @transform_23, window_bounds = array<i64: 4, 32, 128>}, {pipeline_mode = #tpu.pipeline_mode<synchronous>, transform_indices = @transform_24, window_bounds = array<i64: 4, 1, 128>}, {pipeline_mode = #tpu.pipeline_mode<synchronous>, transform_indices = @transform_25, window_bounds = array<i64: 1, 256>}, {pipeline_mode = #tpu.pipeline_mode<synchronous>, transform_indices = @transform_26, window_bounds = array<i64: 1, 256>}, {pipeline_mode = #tpu.pipeline_mode<synchronous>, transform_indices = @transform_27, window_bounds = array<i64: 256, 256>}, {pipeline_mode = #tpu.pipeline_mode<synchronous>, transform_indices = @transform_28, window_bounds = array<i64: 1, 256>}, {pipeline_mode = #tpu.pipeline_mode<synchronous>, transform_indices = @transform_29, window_bounds = array<i64: 1, 256>}, {pipeline_mode = #tpu.pipeline_mode<synchronous>, transform_indices = @transform_30, window_bounds = array<i64: 1, 256>}, {pipeline_mode = #tpu.pipeline_mode<synchronous>, transform_indices = @transform_31, window_bounds = array<i64: 256, 256>}, {pipeline_mode = #tpu.pipeline_mode<synchronous>, transform_indices = @transform_32, window_bounds = array<i64: 1, 256>}, {pipeline_mode = #tpu.pipeline_mode<synchronous>, transform_indices = @transform_33, window_bounds = array<i64: 8, 16>}, {pipeline_mode = #tpu.pipeline_mode<synchronous>, transform_indices = @transform_34, window_bounds = array<i64: 3, 256, 128>}, {pipeline_mode = #tpu.pipeline_mode<synchronous>, transform_indices = @transform_35, window_bounds = array<i64: 16, 8>}, {pipeline_mode = #tpu.pipeline_mode<synchronous>, transform_indices = @transform_36, window_bounds = array<i64: 128, 256>}, {transform_indices = @transform_37, window_bounds = array<i64: 1, 16, 256>}]} {
    %c0 = arith.constant 0 : index
    %c0_0 = arith.constant 0 : index
    %c0_1 = arith.constant 0 : index
    %0 = vector.load %arg1[%c0, %c0_0, %c0_1] : memref<1x16x256xf32, #tpu.memory_space<vmem>>, vector<1x16x256xf32>
    %1 = vector.shape_cast %0 : vector<1x16x256xf32> to vector<16x256xf32>
    %c0_2 = arith.constant 0 : index
    %c0_3 = arith.constant 0 : index
    %c0_4 = arith.constant 0 : index
    %2 = vector.load %arg2[%c0_2, %c0_3, %c0_4] : memref<4x1x256xf32, #tpu.memory_space<vmem>>, vector<1x1x256xf32>
    %3 = vector.shape_cast %2 : vector<1x1x256xf32> to vector<1x256xf32>
    %4 = vector.broadcast %3 : vector<1x256xf32> to vector<16x256xf32>
    %5 = arith.mulf %1, %4 : vector<16x256xf32>
    %c0_5 = arith.constant 0 : index
    %c0_6 = arith.constant 0 : index
    %c0_7 = arith.constant 0 : index
    %6 = vector.load %arg3[%c0_5, %c0_6, %c0_7] : memref<4x1x256xf32, #tpu.memory_space<vmem>>, vector<1x1x256xf32>
    %7 = vector.shape_cast %6 : vector<1x1x256xf32> to vector<1x256xf32>
    %8 = vector.broadcast %7 : vector<1x256xf32> to vector<16x256xf32>
    %9 = arith.addf %5, %8 : vector<16x256xf32>
    %cst = arith.constant 0.000000e+00 : f32
    %10 = vector.broadcast %cst : f32 to vector<16x256xf32>
    %11 = arith.maximumf %9, %10 : vector<16x256xf32>
    %c0_8 = arith.constant 0 : index
    %c0_9 = arith.constant 0 : index
    %c0_10 = arith.constant 0 : index
    %12 = vector.load %arg4[%c0_8, %c0_9, %c0_10] : memref<4x256x64xf32, #tpu.memory_space<vmem>>, vector<1x256x64xf32>
    %13 = vector.shape_cast %12 : vector<1x256x64xf32> to vector<256x64xf32>
    %cst_11 = arith.constant dense<0.000000e+00> : vector<16x64xf32>
    %14 = tpu.matmul %11, %13, %cst_11 {dimension_numbers = #tpu.dot_dimension_numbers<[1], [0], [0], [1], [0, 0, 1, 1], [], []>} : vector<16x256xf32>, vector<256x64xf32>, vector<16x64xf32> -> vector<16x64xf32>
    %c0_12 = arith.constant 0 : index
    %c0_13 = arith.constant 0 : index
    %c0_14 = arith.constant 0 : index
    %15 = vector.load %arg5[%c0_12, %c0_13, %c0_14] : memref<4x1x64xf32, #tpu.memory_space<vmem>>, vector<1x1x64xf32>
    %16 = vector.shape_cast %15 : vector<1x1x64xf32> to vector<1x64xf32>
    %17 = vector.broadcast %16 : vector<1x64xf32> to vector<16x64xf32>
    %18 = arith.addf %14, %17 : vector<16x64xf32>
    %c0_15 = arith.constant 0 : index
    %c0_16 = arith.constant 0 : index
    %c0_17 = arith.constant 0 : index
    %19 = vector.load %arg6[%c0_15, %c0_16, %c0_17] : memref<4x1x64xf32, #tpu.memory_space<vmem>>, vector<1x1x64xf32>
    %20 = vector.shape_cast %19 : vector<1x1x64xf32> to vector<1x64xf32>
    %21 = vector.broadcast %20 : vector<1x64xf32> to vector<16x64xf32>
    %22 = arith.mulf %18, %21 : vector<16x64xf32>
    %c0_18 = arith.constant 0 : index
    %c0_19 = arith.constant 0 : index
    %c0_20 = arith.constant 0 : index
    %23 = vector.load %arg7[%c0_18, %c0_19, %c0_20] : memref<4x1x64xf32, #tpu.memory_space<vmem>>, vector<1x1x64xf32>
    %24 = vector.shape_cast %23 : vector<1x1x64xf32> to vector<1x64xf32>
    %25 = vector.broadcast %24 : vector<1x64xf32> to vector<16x64xf32>
    %26 = arith.addf %22, %25 : vector<16x64xf32>
    %cst_21 = arith.constant 0.000000e+00 : f32
    %27 = vector.broadcast %cst_21 : f32 to vector<16x64xf32>
    %28 = arith.maximumf %26, %27 : vector<16x64xf32>
    %cst_22 = arith.constant 0.000000e+00 : f32
    %29 = vector.broadcast %cst_22 : f32 to vector<1x64xf32>
    %30 = tpu.concatenate %29, %28, %29 in 0 : vector<1x64xf32>, vector<16x64xf32>, vector<1x64xf32> -> vector<18x64xf32>
    %31 = vector.extract_strided_slice %30 {offsets = [0, 0], sizes = [16, 64], strides = [1, 1]} : vector<18x64xf32> to vector<16x64xf32>
    %c0_23 = arith.constant 0 : index
    %c0_24 = arith.constant 0 : index
    %c0_25 = arith.constant 0 : index
    %c0_26 = arith.constant 0 : index
    %32 = vector.load %arg8[%c0_23, %c0_24, %c0_25, %c0_26] : memref<4x3x64x64xf32, #tpu.memory_space<vmem>>, vector<1x1x64x64xf32>
    %33 = vector.shape_cast %32 : vector<1x1x64x64xf32> to vector<64x64xf32>
    %cst_27 = arith.constant dense<0.000000e+00> : vector<16x64xf32>
    %34 = tpu.matmul %31, %33, %cst_27 {dimension_numbers = #tpu.dot_dimension_numbers<[1], [0], [0], [1], [0, 0, 1, 1], [], []>} : vector<16x64xf32>, vector<64x64xf32>, vector<16x64xf32> -> vector<16x64xf32>
    %35 = vector.extract_strided_slice %30 {offsets = [1, 0], sizes = [16, 64], strides = [1, 1]} : vector<18x64xf32> to vector<16x64xf32>
    %c0_28 = arith.constant 0 : index
    %c1 = arith.constant 1 : index
    %c0_29 = arith.constant 0 : index
    %c0_30 = arith.constant 0 : index
    %36 = vector.load %arg8[%c0_28, %c1, %c0_29, %c0_30] : memref<4x3x64x64xf32, #tpu.memory_space<vmem>>, vector<1x1x64x64xf32>
    %37 = vector.shape_cast %36 : vector<1x1x64x64xf32> to vector<64x64xf32>
    %cst_31 = arith.constant dense<0.000000e+00> : vector<16x64xf32>
    %38 = tpu.matmul %35, %37, %cst_31 {dimension_numbers = #tpu.dot_dimension_numbers<[1], [0], [0], [1], [0, 0, 1, 1], [], []>} : vector<16x64xf32>, vector<64x64xf32>, vector<16x64xf32> -> vector<16x64xf32>
    %39 = arith.addf %34, %38 : vector<16x64xf32>
    %40 = vector.extract_strided_slice %30 {offsets = [2, 0], sizes = [16, 64], strides = [1, 1]} : vector<18x64xf32> to vector<16x64xf32>
    %c0_32 = arith.constant 0 : index
    %c2 = arith.constant 2 : index
    %c0_33 = arith.constant 0 : index
    %c0_34 = arith.constant 0 : index
    %41 = vector.load %arg8[%c0_32, %c2, %c0_33, %c0_34] : memref<4x3x64x64xf32, #tpu.memory_space<vmem>>, vector<1x1x64x64xf32>
    %42 = vector.shape_cast %41 : vector<1x1x64x64xf32> to vector<64x64xf32>
    %cst_35 = arith.constant dense<0.000000e+00> : vector<16x64xf32>
    %43 = tpu.matmul %40, %42, %cst_35 {dimension_numbers = #tpu.dot_dimension_numbers<[1], [0], [0], [1], [0, 0, 1, 1], [], []>} : vector<16x64xf32>, vector<64x64xf32>, vector<16x64xf32> -> vector<16x64xf32>
    %44 = arith.addf %39, %43 : vector<16x64xf32>
    %c0_36 = arith.constant 0 : index
    %c0_37 = arith.constant 0 : index
    %c0_38 = arith.constant 0 : index
    %45 = vector.load %arg9[%c0_36, %c0_37, %c0_38] : memref<4x1x64xf32, #tpu.memory_space<vmem>>, vector<1x1x64xf32>
    %46 = vector.shape_cast %45 : vector<1x1x64xf32> to vector<1x64xf32>
    %47 = vector.broadcast %46 : vector<1x64xf32> to vector<16x64xf32>
    %48 = arith.addf %44, %47 : vector<16x64xf32>
    %c0_39 = arith.constant 0 : index
    %c0_40 = arith.constant 0 : index
    %c0_41 = arith.constant 0 : index
    %49 = vector.load %arg10[%c0_39, %c0_40, %c0_41] : memref<4x1x64xf32, #tpu.memory_space<vmem>>, vector<1x1x64xf32>
    %50 = vector.shape_cast %49 : vector<1x1x64xf32> to vector<1x64xf32>
    %51 = vector.broadcast %50 : vector<1x64xf32> to vector<16x64xf32>
    %52 = arith.mulf %48, %51 : vector<16x64xf32>
    %c0_42 = arith.constant 0 : index
    %c0_43 = arith.constant 0 : index
    %c0_44 = arith.constant 0 : index
    %53 = vector.load %arg11[%c0_42, %c0_43, %c0_44] : memref<4x1x64xf32, #tpu.memory_space<vmem>>, vector<1x1x64xf32>
    %54 = vector.shape_cast %53 : vector<1x1x64xf32> to vector<1x64xf32>
    %55 = vector.broadcast %54 : vector<1x64xf32> to vector<16x64xf32>
    %56 = arith.addf %52, %55 : vector<16x64xf32>
    %cst_45 = arith.constant 0.000000e+00 : f32
    %57 = vector.broadcast %cst_45 : f32 to vector<16x64xf32>
    %58 = arith.maximumf %56, %57 : vector<16x64xf32>
    %c0_46 = arith.constant 0 : index
    %c0_47 = arith.constant 0 : index
    %c0_48 = arith.constant 0 : index
    %59 = vector.load %arg12[%c0_46, %c0_47, %c0_48] : memref<4x64x256xf32, #tpu.memory_space<vmem>>, vector<1x64x256xf32>
    %60 = vector.shape_cast %59 : vector<1x64x256xf32> to vector<64x256xf32>
    %cst_49 = arith.constant dense<0.000000e+00> : vector<16x256xf32>
    %61 = tpu.matmul %58, %60, %cst_49 {dimension_numbers = #tpu.dot_dimension_numbers<[1], [0], [0], [1], [0, 0, 1, 1], [], []>} : vector<16x64xf32>, vector<64x256xf32>, vector<16x256xf32> -> vector<16x256xf32>
    %c0_50 = arith.constant 0 : index
    %c0_51 = arith.constant 0 : index
    %c0_52 = arith.constant 0 : index
    %62 = vector.load %arg13[%c0_50, %c0_51, %c0_52] : memref<4x1x256xf32, #tpu.memory_space<vmem>>, vector<1x1x256xf32>
    %63 = vector.shape_cast %62 : vector<1x1x256xf32> to vector<1x256xf32>
    %64 = vector.broadcast %63 : vector<1x256xf32> to vector<16x256xf32>
    %65 = arith.addf %61, %64 : vector<16x256xf32>
    %66 = arith.addf %65, %1 : vector<16x256xf32>
    %c1_53 = arith.constant 1 : index
    %c0_54 = arith.constant 0 : index
    %c0_55 = arith.constant 0 : index
    %67 = vector.load %arg2[%c1_53, %c0_54, %c0_55] : memref<4x1x256xf32, #tpu.memory_space<vmem>>, vector<1x1x256xf32>
    %68 = vector.shape_cast %67 : vector<1x1x256xf32> to vector<1x256xf32>
    %69 = vector.broadcast %68 : vector<1x256xf32> to vector<16x256xf32>
    %70 = arith.mulf %66, %69 : vector<16x256xf32>
    %c1_56 = arith.constant 1 : index
    %c0_57 = arith.constant 0 : index
    %c0_58 = arith.constant 0 : index
    %71 = vector.load %arg3[%c1_56, %c0_57, %c0_58] : memref<4x1x256xf32, #tpu.memory_space<vmem>>, vector<1x1x256xf32>
    %72 = vector.shape_cast %71 : vector<1x1x256xf32> to vector<1x256xf32>
    %73 = vector.broadcast %72 : vector<1x256xf32> to vector<16x256xf32>
    %74 = arith.addf %70, %73 : vector<16x256xf32>
    %cst_59 = arith.constant 0.000000e+00 : f32
    %75 = vector.broadcast %cst_59 : f32 to vector<16x256xf32>
    %76 = arith.maximumf %74, %75 : vector<16x256xf32>
    %c1_60 = arith.constant 1 : index
    %c0_61 = arith.constant 0 : index
    %c0_62 = arith.constant 0 : index
    %77 = vector.load %arg4[%c1_60, %c0_61, %c0_62] : memref<4x256x64xf32, #tpu.memory_space<vmem>>, vector<1x256x64xf32>
    %78 = vector.shape_cast %77 : vector<1x256x64xf32> to vector<256x64xf32>
    %cst_63 = arith.constant dense<0.000000e+00> : vector<16x64xf32>
    %79 = tpu.matmul %76, %78, %cst_63 {dimension_numbers = #tpu.dot_dimension_numbers<[1], [0], [0], [1], [0, 0, 1, 1], [], []>} : vector<16x256xf32>, vector<256x64xf32>, vector<16x64xf32> -> vector<16x64xf32>
    %c1_64 = arith.constant 1 : index
    %c0_65 = arith.constant 0 : index
    %c0_66 = arith.constant 0 : index
    %80 = vector.load %arg5[%c1_64, %c0_65, %c0_66] : memref<4x1x64xf32, #tpu.memory_space<vmem>>, vector<1x1x64xf32>
    %81 = vector.shape_cast %80 : vector<1x1x64xf32> to vector<1x64xf32>
    %82 = vector.broadcast %81 : vector<1x64xf32> to vector<16x64xf32>
    %83 = arith.addf %79, %82 : vector<16x64xf32>
    %c1_67 = arith.constant 1 : index
    %c0_68 = arith.constant 0 : index
    %c0_69 = arith.constant 0 : index
    %84 = vector.load %arg6[%c1_67, %c0_68, %c0_69] : memref<4x1x64xf32, #tpu.memory_space<vmem>>, vector<1x1x64xf32>
    %85 = vector.shape_cast %84 : vector<1x1x64xf32> to vector<1x64xf32>
    %86 = vector.broadcast %85 : vector<1x64xf32> to vector<16x64xf32>
    %87 = arith.mulf %83, %86 : vector<16x64xf32>
    %c1_70 = arith.constant 1 : index
    %c0_71 = arith.constant 0 : index
    %c0_72 = arith.constant 0 : index
    %88 = vector.load %arg7[%c1_70, %c0_71, %c0_72] : memref<4x1x64xf32, #tpu.memory_space<vmem>>, vector<1x1x64xf32>
    %89 = vector.shape_cast %88 : vector<1x1x64xf32> to vector<1x64xf32>
    %90 = vector.broadcast %89 : vector<1x64xf32> to vector<16x64xf32>
    %91 = arith.addf %87, %90 : vector<16x64xf32>
    %cst_73 = arith.constant 0.000000e+00 : f32
    %92 = vector.broadcast %cst_73 : f32 to vector<16x64xf32>
    %93 = arith.maximumf %91, %92 : vector<16x64xf32>
    %cst_74 = arith.constant 0.000000e+00 : f32
    %94 = vector.broadcast %cst_74 : f32 to vector<1x64xf32>
    %95 = tpu.concatenate %94, %93, %94 in 0 : vector<1x64xf32>, vector<16x64xf32>, vector<1x64xf32> -> vector<18x64xf32>
    %96 = vector.extract_strided_slice %95 {offsets = [0, 0], sizes = [16, 64], strides = [1, 1]} : vector<18x64xf32> to vector<16x64xf32>
    %c1_75 = arith.constant 1 : index
    %c0_76 = arith.constant 0 : index
    %c0_77 = arith.constant 0 : index
    %c0_78 = arith.constant 0 : index
    %97 = vector.load %arg8[%c1_75, %c0_76, %c0_77, %c0_78] : memref<4x3x64x64xf32, #tpu.memory_space<vmem>>, vector<1x1x64x64xf32>
    %98 = vector.shape_cast %97 : vector<1x1x64x64xf32> to vector<64x64xf32>
    %cst_79 = arith.constant dense<0.000000e+00> : vector<16x64xf32>
    %99 = tpu.matmul %96, %98, %cst_79 {dimension_numbers = #tpu.dot_dimension_numbers<[1], [0], [0], [1], [0, 0, 1, 1], [], []>} : vector<16x64xf32>, vector<64x64xf32>, vector<16x64xf32> -> vector<16x64xf32>
    %100 = vector.extract_strided_slice %95 {offsets = [1, 0], sizes = [16, 64], strides = [1, 1]} : vector<18x64xf32> to vector<16x64xf32>
    %c1_80 = arith.constant 1 : index
    %c1_81 = arith.constant 1 : index
    %c0_82 = arith.constant 0 : index
    %c0_83 = arith.constant 0 : index
    %101 = vector.load %arg8[%c1_80, %c1_81, %c0_82, %c0_83] : memref<4x3x64x64xf32, #tpu.memory_space<vmem>>, vector<1x1x64x64xf32>
    %102 = vector.shape_cast %101 : vector<1x1x64x64xf32> to vector<64x64xf32>
    %cst_84 = arith.constant dense<0.000000e+00> : vector<16x64xf32>
    %103 = tpu.matmul %100, %102, %cst_84 {dimension_numbers = #tpu.dot_dimension_numbers<[1], [0], [0], [1], [0, 0, 1, 1], [], []>} : vector<16x64xf32>, vector<64x64xf32>, vector<16x64xf32> -> vector<16x64xf32>
    %104 = arith.addf %99, %103 : vector<16x64xf32>
    %105 = vector.extract_strided_slice %95 {offsets = [2, 0], sizes = [16, 64], strides = [1, 1]} : vector<18x64xf32> to vector<16x64xf32>
    %c1_85 = arith.constant 1 : index
    %c2_86 = arith.constant 2 : index
    %c0_87 = arith.constant 0 : index
    %c0_88 = arith.constant 0 : index
    %106 = vector.load %arg8[%c1_85, %c2_86, %c0_87, %c0_88] : memref<4x3x64x64xf32, #tpu.memory_space<vmem>>, vector<1x1x64x64xf32>
    %107 = vector.shape_cast %106 : vector<1x1x64x64xf32> to vector<64x64xf32>
    %cst_89 = arith.constant dense<0.000000e+00> : vector<16x64xf32>
    %108 = tpu.matmul %105, %107, %cst_89 {dimension_numbers = #tpu.dot_dimension_numbers<[1], [0], [0], [1], [0, 0, 1, 1], [], []>} : vector<16x64xf32>, vector<64x64xf32>, vector<16x64xf32> -> vector<16x64xf32>
    %109 = arith.addf %104, %108 : vector<16x64xf32>
    %c1_90 = arith.constant 1 : index
    %c0_91 = arith.constant 0 : index
    %c0_92 = arith.constant 0 : index
    %110 = vector.load %arg9[%c1_90, %c0_91, %c0_92] : memref<4x1x64xf32, #tpu.memory_space<vmem>>, vector<1x1x64xf32>
    %111 = vector.shape_cast %110 : vector<1x1x64xf32> to vector<1x64xf32>
    %112 = vector.broadcast %111 : vector<1x64xf32> to vector<16x64xf32>
    %113 = arith.addf %109, %112 : vector<16x64xf32>
    %c1_93 = arith.constant 1 : index
    %c0_94 = arith.constant 0 : index
    %c0_95 = arith.constant 0 : index
    %114 = vector.load %arg10[%c1_93, %c0_94, %c0_95] : memref<4x1x64xf32, #tpu.memory_space<vmem>>, vector<1x1x64xf32>
    %115 = vector.shape_cast %114 : vector<1x1x64xf32> to vector<1x64xf32>
    %116 = vector.broadcast %115 : vector<1x64xf32> to vector<16x64xf32>
    %117 = arith.mulf %113, %116 : vector<16x64xf32>
    %c1_96 = arith.constant 1 : index
    %c0_97 = arith.constant 0 : index
    %c0_98 = arith.constant 0 : index
    %118 = vector.load %arg11[%c1_96, %c0_97, %c0_98] : memref<4x1x64xf32, #tpu.memory_space<vmem>>, vector<1x1x64xf32>
    %119 = vector.shape_cast %118 : vector<1x1x64xf32> to vector<1x64xf32>
    %120 = vector.broadcast %119 : vector<1x64xf32> to vector<16x64xf32>
    %121 = arith.addf %117, %120 : vector<16x64xf32>
    %cst_99 = arith.constant 0.000000e+00 : f32
    %122 = vector.broadcast %cst_99 : f32 to vector<16x64xf32>
    %123 = arith.maximumf %121, %122 : vector<16x64xf32>
    %c1_100 = arith.constant 1 : index
    %c0_101 = arith.constant 0 : index
    %c0_102 = arith.constant 0 : index
    %124 = vector.load %arg12[%c1_100, %c0_101, %c0_102] : memref<4x64x256xf32, #tpu.memory_space<vmem>>, vector<1x64x256xf32>
    %125 = vector.shape_cast %124 : vector<1x64x256xf32> to vector<64x256xf32>
    %cst_103 = arith.constant dense<0.000000e+00> : vector<16x256xf32>
    %126 = tpu.matmul %123, %125, %cst_103 {dimension_numbers = #tpu.dot_dimension_numbers<[1], [0], [0], [1], [0, 0, 1, 1], [], []>} : vector<16x64xf32>, vector<64x256xf32>, vector<16x256xf32> -> vector<16x256xf32>
    %c1_104 = arith.constant 1 : index
    %c0_105 = arith.constant 0 : index
    %c0_106 = arith.constant 0 : index
    %127 = vector.load %arg13[%c1_104, %c0_105, %c0_106] : memref<4x1x256xf32, #tpu.memory_space<vmem>>, vector<1x1x256xf32>
    %128 = vector.shape_cast %127 : vector<1x1x256xf32> to vector<1x256xf32>
    %129 = vector.broadcast %128 : vector<1x256xf32> to vector<16x256xf32>
    %130 = arith.addf %126, %129 : vector<16x256xf32>
    %131 = arith.addf %130, %66 : vector<16x256xf32>
    %c2_107 = arith.constant 2 : index
    %c0_108 = arith.constant 0 : index
    %c0_109 = arith.constant 0 : index
    %132 = vector.load %arg2[%c2_107, %c0_108, %c0_109] : memref<4x1x256xf32, #tpu.memory_space<vmem>>, vector<1x1x256xf32>
    %133 = vector.shape_cast %132 : vector<1x1x256xf32> to vector<1x256xf32>
    %134 = vector.broadcast %133 : vector<1x256xf32> to vector<16x256xf32>
    %135 = arith.mulf %131, %134 : vector<16x256xf32>
    %c2_110 = arith.constant 2 : index
    %c0_111 = arith.constant 0 : index
    %c0_112 = arith.constant 0 : index
    %136 = vector.load %arg3[%c2_110, %c0_111, %c0_112] : memref<4x1x256xf32, #tpu.memory_space<vmem>>, vector<1x1x256xf32>
    %137 = vector.shape_cast %136 : vector<1x1x256xf32> to vector<1x256xf32>
    %138 = vector.broadcast %137 : vector<1x256xf32> to vector<16x256xf32>
    %139 = arith.addf %135, %138 : vector<16x256xf32>
    %cst_113 = arith.constant 0.000000e+00 : f32
    %140 = vector.broadcast %cst_113 : f32 to vector<16x256xf32>
    %141 = arith.maximumf %139, %140 : vector<16x256xf32>
    %c2_114 = arith.constant 2 : index
    %c0_115 = arith.constant 0 : index
    %c0_116 = arith.constant 0 : index
    %142 = vector.load %arg4[%c2_114, %c0_115, %c0_116] : memref<4x256x64xf32, #tpu.memory_space<vmem>>, vector<1x256x64xf32>
    %143 = vector.shape_cast %142 : vector<1x256x64xf32> to vector<256x64xf32>
    %cst_117 = arith.constant dense<0.000000e+00> : vector<16x64xf32>
    %144 = tpu.matmul %141, %143, %cst_117 {dimension_numbers = #tpu.dot_dimension_numbers<[1], [0], [0], [1], [0, 0, 1, 1], [], []>} : vector<16x256xf32>, vector<256x64xf32>, vector<16x64xf32> -> vector<16x64xf32>
    %c2_118 = arith.constant 2 : index
    %c0_119 = arith.constant 0 : index
    %c0_120 = arith.constant 0 : index
    %145 = vector.load %arg5[%c2_118, %c0_119, %c0_120] : memref<4x1x64xf32, #tpu.memory_space<vmem>>, vector<1x1x64xf32>
    %146 = vector.shape_cast %145 : vector<1x1x64xf32> to vector<1x64xf32>
    %147 = vector.broadcast %146 : vector<1x64xf32> to vector<16x64xf32>
    %148 = arith.addf %144, %147 : vector<16x64xf32>
    %c2_121 = arith.constant 2 : index
    %c0_122 = arith.constant 0 : index
    %c0_123 = arith.constant 0 : index
    %149 = vector.load %arg6[%c2_121, %c0_122, %c0_123] : memref<4x1x64xf32, #tpu.memory_space<vmem>>, vector<1x1x64xf32>
    %150 = vector.shape_cast %149 : vector<1x1x64xf32> to vector<1x64xf32>
    %151 = vector.broadcast %150 : vector<1x64xf32> to vector<16x64xf32>
    %152 = arith.mulf %148, %151 : vector<16x64xf32>
    %c2_124 = arith.constant 2 : index
    %c0_125 = arith.constant 0 : index
    %c0_126 = arith.constant 0 : index
    %153 = vector.load %arg7[%c2_124, %c0_125, %c0_126] : memref<4x1x64xf32, #tpu.memory_space<vmem>>, vector<1x1x64xf32>
    %154 = vector.shape_cast %153 : vector<1x1x64xf32> to vector<1x64xf32>
    %155 = vector.broadcast %154 : vector<1x64xf32> to vector<16x64xf32>
    %156 = arith.addf %152, %155 : vector<16x64xf32>
    %cst_127 = arith.constant 0.000000e+00 : f32
    %157 = vector.broadcast %cst_127 : f32 to vector<16x64xf32>
    %158 = arith.maximumf %156, %157 : vector<16x64xf32>
    %cst_128 = arith.constant 0.000000e+00 : f32
    %159 = vector.broadcast %cst_128 : f32 to vector<1x64xf32>
    %160 = tpu.concatenate %159, %158, %159 in 0 : vector<1x64xf32>, vector<16x64xf32>, vector<1x64xf32> -> vector<18x64xf32>
    %161 = vector.extract_strided_slice %160 {offsets = [0, 0], sizes = [16, 64], strides = [1, 1]} : vector<18x64xf32> to vector<16x64xf32>
    %c2_129 = arith.constant 2 : index
    %c0_130 = arith.constant 0 : index
    %c0_131 = arith.constant 0 : index
    %c0_132 = arith.constant 0 : index
    %162 = vector.load %arg8[%c2_129, %c0_130, %c0_131, %c0_132] : memref<4x3x64x64xf32, #tpu.memory_space<vmem>>, vector<1x1x64x64xf32>
    %163 = vector.shape_cast %162 : vector<1x1x64x64xf32> to vector<64x64xf32>
    %cst_133 = arith.constant dense<0.000000e+00> : vector<16x64xf32>
    %164 = tpu.matmul %161, %163, %cst_133 {dimension_numbers = #tpu.dot_dimension_numbers<[1], [0], [0], [1], [0, 0, 1, 1], [], []>} : vector<16x64xf32>, vector<64x64xf32>, vector<16x64xf32> -> vector<16x64xf32>
    %165 = vector.extract_strided_slice %160 {offsets = [1, 0], sizes = [16, 64], strides = [1, 1]} : vector<18x64xf32> to vector<16x64xf32>
    %c2_134 = arith.constant 2 : index
    %c1_135 = arith.constant 1 : index
    %c0_136 = arith.constant 0 : index
    %c0_137 = arith.constant 0 : index
    %166 = vector.load %arg8[%c2_134, %c1_135, %c0_136, %c0_137] : memref<4x3x64x64xf32, #tpu.memory_space<vmem>>, vector<1x1x64x64xf32>
    %167 = vector.shape_cast %166 : vector<1x1x64x64xf32> to vector<64x64xf32>
    %cst_138 = arith.constant dense<0.000000e+00> : vector<16x64xf32>
    %168 = tpu.matmul %165, %167, %cst_138 {dimension_numbers = #tpu.dot_dimension_numbers<[1], [0], [0], [1], [0, 0, 1, 1], [], []>} : vector<16x64xf32>, vector<64x64xf32>, vector<16x64xf32> -> vector<16x64xf32>
    %169 = arith.addf %164, %168 : vector<16x64xf32>
    %170 = vector.extract_strided_slice %160 {offsets = [2, 0], sizes = [16, 64], strides = [1, 1]} : vector<18x64xf32> to vector<16x64xf32>
    %c2_139 = arith.constant 2 : index
    %c2_140 = arith.constant 2 : index
    %c0_141 = arith.constant 0 : index
    %c0_142 = arith.constant 0 : index
    %171 = vector.load %arg8[%c2_139, %c2_140, %c0_141, %c0_142] : memref<4x3x64x64xf32, #tpu.memory_space<vmem>>, vector<1x1x64x64xf32>
    %172 = vector.shape_cast %171 : vector<1x1x64x64xf32> to vector<64x64xf32>
    %cst_143 = arith.constant dense<0.000000e+00> : vector<16x64xf32>
    %173 = tpu.matmul %170, %172, %cst_143 {dimension_numbers = #tpu.dot_dimension_numbers<[1], [0], [0], [1], [0, 0, 1, 1], [], []>} : vector<16x64xf32>, vector<64x64xf32>, vector<16x64xf32> -> vector<16x64xf32>
    %174 = arith.addf %169, %173 : vector<16x64xf32>
    %c2_144 = arith.constant 2 : index
    %c0_145 = arith.constant 0 : index
    %c0_146 = arith.constant 0 : index
    %175 = vector.load %arg9[%c2_144, %c0_145, %c0_146] : memref<4x1x64xf32, #tpu.memory_space<vmem>>, vector<1x1x64xf32>
    %176 = vector.shape_cast %175 : vector<1x1x64xf32> to vector<1x64xf32>
    %177 = vector.broadcast %176 : vector<1x64xf32> to vector<16x64xf32>
    %178 = arith.addf %174, %177 : vector<16x64xf32>
    %c2_147 = arith.constant 2 : index
    %c0_148 = arith.constant 0 : index
    %c0_149 = arith.constant 0 : index
    %179 = vector.load %arg10[%c2_147, %c0_148, %c0_149] : memref<4x1x64xf32, #tpu.memory_space<vmem>>, vector<1x1x64xf32>
    %180 = vector.shape_cast %179 : vector<1x1x64xf32> to vector<1x64xf32>
    %181 = vector.broadcast %180 : vector<1x64xf32> to vector<16x64xf32>
    %182 = arith.mulf %178, %181 : vector<16x64xf32>
    %c2_150 = arith.constant 2 : index
    %c0_151 = arith.constant 0 : index
    %c0_152 = arith.constant 0 : index
    %183 = vector.load %arg11[%c2_150, %c0_151, %c0_152] : memref<4x1x64xf32, #tpu.memory_space<vmem>>, vector<1x1x64xf32>
    %184 = vector.shape_cast %183 : vector<1x1x64xf32> to vector<1x64xf32>
    %185 = vector.broadcast %184 : vector<1x64xf32> to vector<16x64xf32>
    %186 = arith.addf %182, %185 : vector<16x64xf32>
    %cst_153 = arith.constant 0.000000e+00 : f32
    %187 = vector.broadcast %cst_153 : f32 to vector<16x64xf32>
    %188 = arith.maximumf %186, %187 : vector<16x64xf32>
    %c2_154 = arith.constant 2 : index
    %c0_155 = arith.constant 0 : index
    %c0_156 = arith.constant 0 : index
    %189 = vector.load %arg12[%c2_154, %c0_155, %c0_156] : memref<4x64x256xf32, #tpu.memory_space<vmem>>, vector<1x64x256xf32>
    %190 = vector.shape_cast %189 : vector<1x64x256xf32> to vector<64x256xf32>
    %cst_157 = arith.constant dense<0.000000e+00> : vector<16x256xf32>
    %191 = tpu.matmul %188, %190, %cst_157 {dimension_numbers = #tpu.dot_dimension_numbers<[1], [0], [0], [1], [0, 0, 1, 1], [], []>} : vector<16x64xf32>, vector<64x256xf32>, vector<16x256xf32> -> vector<16x256xf32>
    %c2_158 = arith.constant 2 : index
    %c0_159 = arith.constant 0 : index
    %c0_160 = arith.constant 0 : index
    %192 = vector.load %arg13[%c2_158, %c0_159, %c0_160] : memref<4x1x256xf32, #tpu.memory_space<vmem>>, vector<1x1x256xf32>
    %193 = vector.shape_cast %192 : vector<1x1x256xf32> to vector<1x256xf32>
    %194 = vector.broadcast %193 : vector<1x256xf32> to vector<16x256xf32>
    %195 = arith.addf %191, %194 : vector<16x256xf32>
    %196 = arith.addf %195, %131 : vector<16x256xf32>
    %cst_161 = arith.constant 0xFF800000 : f32
    %197 = vector.broadcast %cst_161 : f32 to vector<1x256xf32>
    %198 = tpu.concatenate %197, %66, %197 in 0 : vector<1x256xf32>, vector<16x256xf32>, vector<1x256xf32> -> vector<18x256xf32>
    %199 = vector.extract_strided_slice %198 {offsets = [0, 0], sizes = [16, 256], strides = [1, 1]} : vector<18x256xf32> to vector<16x256xf32>
    %200 = vector.extract_strided_slice %198 {offsets = [1, 0], sizes = [16, 256], strides = [1, 1]} : vector<18x256xf32> to vector<16x256xf32>
    %201 = arith.maximumf %199, %200 : vector<16x256xf32>
    %202 = vector.extract_strided_slice %198 {offsets = [2, 0], sizes = [16, 256], strides = [1, 1]} : vector<18x256xf32> to vector<16x256xf32>
    %203 = arith.maximumf %201, %202 : vector<16x256xf32>
    %c0_162 = arith.constant 0 : index
    %c0_163 = arith.constant 0 : index
    %204 = vector.load %arg34[%c0_162, %c0_163] : memref<8x16xf32, #tpu.memory_space<vmem>>, vector<8x16xf32>
    %cst_164 = arith.constant dense<0.000000e+00> : vector<8x256xf32>
    %205 = tpu.matmul %204, %203, %cst_164 {dimension_numbers = #tpu.dot_dimension_numbers<[1], [0], [0], [1], [0, 0, 1, 1], [], []>} : vector<8x16xf32>, vector<16x256xf32>, vector<8x256xf32> -> vector<8x256xf32>
    %c0_165 = arith.constant 0 : index
    %c0_166 = arith.constant 0 : index
    %c0_167 = arith.constant 0 : index
    %206 = vector.load %arg35[%c0_165, %c0_166, %c0_167] : memref<3x256x128xf32, #tpu.memory_space<vmem>>, vector<1x256x128xf32>
    %207 = vector.shape_cast %206 : vector<1x256x128xf32> to vector<256x128xf32>
    %cst_168 = arith.constant dense<0.000000e+00> : vector<8x128xf32>
    %208 = tpu.matmul %205, %207, %cst_168 {dimension_numbers = #tpu.dot_dimension_numbers<[1], [0], [0], [1], [0, 0, 1, 1], [], []>} : vector<8x256xf32>, vector<256x128xf32>, vector<8x128xf32> -> vector<8x128xf32>
    %c1_169 = arith.constant 1 : index
    %c0_170 = arith.constant 0 : index
    %c0_171 = arith.constant 0 : index
    %209 = vector.load %arg35[%c1_169, %c0_170, %c0_171] : memref<3x256x128xf32, #tpu.memory_space<vmem>>, vector<1x256x128xf32>
    %210 = vector.shape_cast %209 : vector<1x256x128xf32> to vector<256x128xf32>
    %cst_172 = arith.constant dense<0.000000e+00> : vector<8x128xf32>
    %211 = tpu.matmul %205, %210, %cst_172 {dimension_numbers = #tpu.dot_dimension_numbers<[1], [0], [0], [1], [0, 0, 1, 1], [], []>} : vector<8x256xf32>, vector<256x128xf32>, vector<8x128xf32> -> vector<8x128xf32>
    %c2_173 = arith.constant 2 : index
    %c0_174 = arith.constant 0 : index
    %c0_175 = arith.constant 0 : index
    %212 = vector.load %arg35[%c2_173, %c0_174, %c0_175] : memref<3x256x128xf32, #tpu.memory_space<vmem>>, vector<1x256x128xf32>
    %213 = vector.shape_cast %212 : vector<1x256x128xf32> to vector<256x128xf32>
    %cst_176 = arith.constant dense<0.000000e+00> : vector<8x128xf32>
    %214 = tpu.matmul %205, %213, %cst_176 {dimension_numbers = #tpu.dot_dimension_numbers<[1], [0], [0], [1], [0, 0, 1, 1], [], []>} : vector<8x256xf32>, vector<256x128xf32>, vector<8x128xf32> -> vector<8x128xf32>
    %215 = arith.maximumf %208, %211 : vector<8x128xf32>
    %216 = arith.maximumf %215, %214 : vector<8x128xf32>
    %c0_177 = arith.constant 0 : index
    %c0_178 = arith.constant 0 : index
    %c0_179 = arith.constant 0 : index
    %217 = vector.load %arg14[%c0_177, %c0_178, %c0_179] : memref<4x1x128xf32, #tpu.memory_space<vmem>>, vector<1x1x128xf32>
    %218 = vector.shape_cast %217 : vector<1x1x128xf32> to vector<1x128xf32>
    %219 = vector.broadcast %218 : vector<1x128xf32> to vector<8x128xf32>
    %220 = arith.mulf %216, %219 : vector<8x128xf32>
    %c0_180 = arith.constant 0 : index
    %c0_181 = arith.constant 0 : index
    %c0_182 = arith.constant 0 : index
    %221 = vector.load %arg15[%c0_180, %c0_181, %c0_182] : memref<4x1x128xf32, #tpu.memory_space<vmem>>, vector<1x1x128xf32>
    %222 = vector.shape_cast %221 : vector<1x1x128xf32> to vector<1x128xf32>
    %223 = vector.broadcast %222 : vector<1x128xf32> to vector<8x128xf32>
    %224 = arith.addf %220, %223 : vector<8x128xf32>
    %cst_183 = arith.constant 0.000000e+00 : f32
    %225 = vector.broadcast %cst_183 : f32 to vector<8x128xf32>
    %226 = arith.maximumf %224, %225 : vector<8x128xf32>
    %c0_184 = arith.constant 0 : index
    %c0_185 = arith.constant 0 : index
    %c0_186 = arith.constant 0 : index
    %227 = vector.load %arg16[%c0_184, %c0_185, %c0_186] : memref<4x128x32xf32, #tpu.memory_space<vmem>>, vector<1x128x32xf32>
    %228 = vector.shape_cast %227 : vector<1x128x32xf32> to vector<128x32xf32>
    %cst_187 = arith.constant dense<0.000000e+00> : vector<8x32xf32>
    %229 = tpu.matmul %226, %228, %cst_187 {dimension_numbers = #tpu.dot_dimension_numbers<[1], [0], [0], [1], [0, 0, 1, 1], [], []>} : vector<8x128xf32>, vector<128x32xf32>, vector<8x32xf32> -> vector<8x32xf32>
    %c0_188 = arith.constant 0 : index
    %c0_189 = arith.constant 0 : index
    %c0_190 = arith.constant 0 : index
    %230 = vector.load %arg17[%c0_188, %c0_189, %c0_190] : memref<4x1x32xf32, #tpu.memory_space<vmem>>, vector<1x1x32xf32>
    %231 = vector.shape_cast %230 : vector<1x1x32xf32> to vector<1x32xf32>
    %232 = vector.broadcast %231 : vector<1x32xf32> to vector<8x32xf32>
    %233 = arith.addf %229, %232 : vector<8x32xf32>
    %c0_191 = arith.constant 0 : index
    %c0_192 = arith.constant 0 : index
    %c0_193 = arith.constant 0 : index
    %234 = vector.load %arg18[%c0_191, %c0_192, %c0_193] : memref<4x1x32xf32, #tpu.memory_space<vmem>>, vector<1x1x32xf32>
    %235 = vector.shape_cast %234 : vector<1x1x32xf32> to vector<1x32xf32>
    %236 = vector.broadcast %235 : vector<1x32xf32> to vector<8x32xf32>
    %237 = arith.mulf %233, %236 : vector<8x32xf32>
    %c0_194 = arith.constant 0 : index
    %c0_195 = arith.constant 0 : index
    %c0_196 = arith.constant 0 : index
    %238 = vector.load %arg19[%c0_194, %c0_195, %c0_196] : memref<4x1x32xf32, #tpu.memory_space<vmem>>, vector<1x1x32xf32>
    %239 = vector.shape_cast %238 : vector<1x1x32xf32> to vector<1x32xf32>
    %240 = vector.broadcast %239 : vector<1x32xf32> to vector<8x32xf32>
    %241 = arith.addf %237, %240 : vector<8x32xf32>
    %cst_197 = arith.constant 0.000000e+00 : f32
    %242 = vector.broadcast %cst_197 : f32 to vector<8x32xf32>
    %243 = arith.maximumf %241, %242 : vector<8x32xf32>
    %cst_198 = arith.constant 0.000000e+00 : f32
    %244 = vector.broadcast %cst_198 : f32 to vector<1x32xf32>
    %245 = tpu.concatenate %244, %243, %244 in 0 : vector<1x32xf32>, vector<8x32xf32>, vector<1x32xf32> -> vector<10x32xf32>
    %246 = vector.extract_strided_slice %245 {offsets = [0, 0], sizes = [8, 32], strides = [1, 1]} : vector<10x32xf32> to vector<8x32xf32>
    %c0_199 = arith.constant 0 : index
    %c0_200 = arith.constant 0 : index
    %c0_201 = arith.constant 0 : index
    %c0_202 = arith.constant 0 : index
    %247 = vector.load %arg20[%c0_199, %c0_200, %c0_201, %c0_202] : memref<4x3x32x32xf32, #tpu.memory_space<vmem>>, vector<1x1x32x32xf32>
    %248 = vector.shape_cast %247 : vector<1x1x32x32xf32> to vector<32x32xf32>
    %cst_203 = arith.constant dense<0.000000e+00> : vector<8x32xf32>
    %249 = tpu.matmul %246, %248, %cst_203 {dimension_numbers = #tpu.dot_dimension_numbers<[1], [0], [0], [1], [0, 0, 1, 1], [], []>} : vector<8x32xf32>, vector<32x32xf32>, vector<8x32xf32> -> vector<8x32xf32>
    %250 = vector.extract_strided_slice %245 {offsets = [1, 0], sizes = [8, 32], strides = [1, 1]} : vector<10x32xf32> to vector<8x32xf32>
    %c0_204 = arith.constant 0 : index
    %c1_205 = arith.constant 1 : index
    %c0_206 = arith.constant 0 : index
    %c0_207 = arith.constant 0 : index
    %251 = vector.load %arg20[%c0_204, %c1_205, %c0_206, %c0_207] : memref<4x3x32x32xf32, #tpu.memory_space<vmem>>, vector<1x1x32x32xf32>
    %252 = vector.shape_cast %251 : vector<1x1x32x32xf32> to vector<32x32xf32>
    %cst_208 = arith.constant dense<0.000000e+00> : vector<8x32xf32>
    %253 = tpu.matmul %250, %252, %cst_208 {dimension_numbers = #tpu.dot_dimension_numbers<[1], [0], [0], [1], [0, 0, 1, 1], [], []>} : vector<8x32xf32>, vector<32x32xf32>, vector<8x32xf32> -> vector<8x32xf32>
    %254 = arith.addf %249, %253 : vector<8x32xf32>
    %255 = vector.extract_strided_slice %245 {offsets = [2, 0], sizes = [8, 32], strides = [1, 1]} : vector<10x32xf32> to vector<8x32xf32>
    %c0_209 = arith.constant 0 : index
    %c2_210 = arith.constant 2 : index
    %c0_211 = arith.constant 0 : index
    %c0_212 = arith.constant 0 : index
    %256 = vector.load %arg20[%c0_209, %c2_210, %c0_211, %c0_212] : memref<4x3x32x32xf32, #tpu.memory_space<vmem>>, vector<1x1x32x32xf32>
    %257 = vector.shape_cast %256 : vector<1x1x32x32xf32> to vector<32x32xf32>
    %cst_213 = arith.constant dense<0.000000e+00> : vector<8x32xf32>
    %258 = tpu.matmul %255, %257, %cst_213 {dimension_numbers = #tpu.dot_dimension_numbers<[1], [0], [0], [1], [0, 0, 1, 1], [], []>} : vector<8x32xf32>, vector<32x32xf32>, vector<8x32xf32> -> vector<8x32xf32>
    %259 = arith.addf %254, %258 : vector<8x32xf32>
    %c0_214 = arith.constant 0 : index
    %c0_215 = arith.constant 0 : index
    %c0_216 = arith.constant 0 : index
    %260 = vector.load %arg21[%c0_214, %c0_215, %c0_216] : memref<4x1x32xf32, #tpu.memory_space<vmem>>, vector<1x1x32xf32>
    %261 = vector.shape_cast %260 : vector<1x1x32xf32> to vector<1x32xf32>
    %262 = vector.broadcast %261 : vector<1x32xf32> to vector<8x32xf32>
    %263 = arith.addf %259, %262 : vector<8x32xf32>
    %c0_217 = arith.constant 0 : index
    %c0_218 = arith.constant 0 : index
    %c0_219 = arith.constant 0 : index
    %264 = vector.load %arg22[%c0_217, %c0_218, %c0_219] : memref<4x1x32xf32, #tpu.memory_space<vmem>>, vector<1x1x32xf32>
    %265 = vector.shape_cast %264 : vector<1x1x32xf32> to vector<1x32xf32>
    %266 = vector.broadcast %265 : vector<1x32xf32> to vector<8x32xf32>
    %267 = arith.mulf %263, %266 : vector<8x32xf32>
    %c0_220 = arith.constant 0 : index
    %c0_221 = arith.constant 0 : index
    %c0_222 = arith.constant 0 : index
    %268 = vector.load %arg23[%c0_220, %c0_221, %c0_222] : memref<4x1x32xf32, #tpu.memory_space<vmem>>, vector<1x1x32xf32>
    %269 = vector.shape_cast %268 : vector<1x1x32xf32> to vector<1x32xf32>
    %270 = vector.broadcast %269 : vector<1x32xf32> to vector<8x32xf32>
    %271 = arith.addf %267, %270 : vector<8x32xf32>
    %cst_223 = arith.constant 0.000000e+00 : f32
    %272 = vector.broadcast %cst_223 : f32 to vector<8x32xf32>
    %273 = arith.maximumf %271, %272 : vector<8x32xf32>
    %c0_224 = arith.constant 0 : index
    %c0_225 = arith.constant 0 : index
    %c0_226 = arith.constant 0 : index
    %274 = vector.load %arg24[%c0_224, %c0_225, %c0_226] : memref<4x32x128xf32, #tpu.memory_space<vmem>>, vector<1x32x128xf32>
    %275 = vector.shape_cast %274 : vector<1x32x128xf32> to vector<32x128xf32>
    %cst_227 = arith.constant dense<0.000000e+00> : vector<8x128xf32>
    %276 = tpu.matmul %273, %275, %cst_227 {dimension_numbers = #tpu.dot_dimension_numbers<[1], [0], [0], [1], [0, 0, 1, 1], [], []>} : vector<8x32xf32>, vector<32x128xf32>, vector<8x128xf32> -> vector<8x128xf32>
    %c0_228 = arith.constant 0 : index
    %c0_229 = arith.constant 0 : index
    %c0_230 = arith.constant 0 : index
    %277 = vector.load %arg25[%c0_228, %c0_229, %c0_230] : memref<4x1x128xf32, #tpu.memory_space<vmem>>, vector<1x1x128xf32>
    %278 = vector.shape_cast %277 : vector<1x1x128xf32> to vector<1x128xf32>
    %279 = vector.broadcast %278 : vector<1x128xf32> to vector<8x128xf32>
    %280 = arith.addf %276, %279 : vector<8x128xf32>
    %281 = arith.addf %280, %216 : vector<8x128xf32>
    %c1_231 = arith.constant 1 : index
    %c0_232 = arith.constant 0 : index
    %c0_233 = arith.constant 0 : index
    %282 = vector.load %arg14[%c1_231, %c0_232, %c0_233] : memref<4x1x128xf32, #tpu.memory_space<vmem>>, vector<1x1x128xf32>
    %283 = vector.shape_cast %282 : vector<1x1x128xf32> to vector<1x128xf32>
    %284 = vector.broadcast %283 : vector<1x128xf32> to vector<8x128xf32>
    %285 = arith.mulf %281, %284 : vector<8x128xf32>
    %c1_234 = arith.constant 1 : index
    %c0_235 = arith.constant 0 : index
    %c0_236 = arith.constant 0 : index
    %286 = vector.load %arg15[%c1_234, %c0_235, %c0_236] : memref<4x1x128xf32, #tpu.memory_space<vmem>>, vector<1x1x128xf32>
    %287 = vector.shape_cast %286 : vector<1x1x128xf32> to vector<1x128xf32>
    %288 = vector.broadcast %287 : vector<1x128xf32> to vector<8x128xf32>
    %289 = arith.addf %285, %288 : vector<8x128xf32>
    %cst_237 = arith.constant 0.000000e+00 : f32
    %290 = vector.broadcast %cst_237 : f32 to vector<8x128xf32>
    %291 = arith.maximumf %289, %290 : vector<8x128xf32>
    %c1_238 = arith.constant 1 : index
    %c0_239 = arith.constant 0 : index
    %c0_240 = arith.constant 0 : index
    %292 = vector.load %arg16[%c1_238, %c0_239, %c0_240] : memref<4x128x32xf32, #tpu.memory_space<vmem>>, vector<1x128x32xf32>
    %293 = vector.shape_cast %292 : vector<1x128x32xf32> to vector<128x32xf32>
    %cst_241 = arith.constant dense<0.000000e+00> : vector<8x32xf32>
    %294 = tpu.matmul %291, %293, %cst_241 {dimension_numbers = #tpu.dot_dimension_numbers<[1], [0], [0], [1], [0, 0, 1, 1], [], []>} : vector<8x128xf32>, vector<128x32xf32>, vector<8x32xf32> -> vector<8x32xf32>
    %c1_242 = arith.constant 1 : index
    %c0_243 = arith.constant 0 : index
    %c0_244 = arith.constant 0 : index
    %295 = vector.load %arg17[%c1_242, %c0_243, %c0_244] : memref<4x1x32xf32, #tpu.memory_space<vmem>>, vector<1x1x32xf32>
    %296 = vector.shape_cast %295 : vector<1x1x32xf32> to vector<1x32xf32>
    %297 = vector.broadcast %296 : vector<1x32xf32> to vector<8x32xf32>
    %298 = arith.addf %294, %297 : vector<8x32xf32>
    %c1_245 = arith.constant 1 : index
    %c0_246 = arith.constant 0 : index
    %c0_247 = arith.constant 0 : index
    %299 = vector.load %arg18[%c1_245, %c0_246, %c0_247] : memref<4x1x32xf32, #tpu.memory_space<vmem>>, vector<1x1x32xf32>
    %300 = vector.shape_cast %299 : vector<1x1x32xf32> to vector<1x32xf32>
    %301 = vector.broadcast %300 : vector<1x32xf32> to vector<8x32xf32>
    %302 = arith.mulf %298, %301 : vector<8x32xf32>
    %c1_248 = arith.constant 1 : index
    %c0_249 = arith.constant 0 : index
    %c0_250 = arith.constant 0 : index
    %303 = vector.load %arg19[%c1_248, %c0_249, %c0_250] : memref<4x1x32xf32, #tpu.memory_space<vmem>>, vector<1x1x32xf32>
    %304 = vector.shape_cast %303 : vector<1x1x32xf32> to vector<1x32xf32>
    %305 = vector.broadcast %304 : vector<1x32xf32> to vector<8x32xf32>
    %306 = arith.addf %302, %305 : vector<8x32xf32>
    %cst_251 = arith.constant 0.000000e+00 : f32
    %307 = vector.broadcast %cst_251 : f32 to vector<8x32xf32>
    %308 = arith.maximumf %306, %307 : vector<8x32xf32>
    %cst_252 = arith.constant 0.000000e+00 : f32
    %309 = vector.broadcast %cst_252 : f32 to vector<1x32xf32>
    %310 = tpu.concatenate %309, %308, %309 in 0 : vector<1x32xf32>, vector<8x32xf32>, vector<1x32xf32> -> vector<10x32xf32>
    %311 = vector.extract_strided_slice %310 {offsets = [0, 0], sizes = [8, 32], strides = [1, 1]} : vector<10x32xf32> to vector<8x32xf32>
    %c1_253 = arith.constant 1 : index
    %c0_254 = arith.constant 0 : index
    %c0_255 = arith.constant 0 : index
    %c0_256 = arith.constant 0 : index
    %312 = vector.load %arg20[%c1_253, %c0_254, %c0_255, %c0_256] : memref<4x3x32x32xf32, #tpu.memory_space<vmem>>, vector<1x1x32x32xf32>
    %313 = vector.shape_cast %312 : vector<1x1x32x32xf32> to vector<32x32xf32>
    %cst_257 = arith.constant dense<0.000000e+00> : vector<8x32xf32>
    %314 = tpu.matmul %311, %313, %cst_257 {dimension_numbers = #tpu.dot_dimension_numbers<[1], [0], [0], [1], [0, 0, 1, 1], [], []>} : vector<8x32xf32>, vector<32x32xf32>, vector<8x32xf32> -> vector<8x32xf32>
    %315 = vector.extract_strided_slice %310 {offsets = [1, 0], sizes = [8, 32], strides = [1, 1]} : vector<10x32xf32> to vector<8x32xf32>
    %c1_258 = arith.constant 1 : index
    %c1_259 = arith.constant 1 : index
    %c0_260 = arith.constant 0 : index
    %c0_261 = arith.constant 0 : index
    %316 = vector.load %arg20[%c1_258, %c1_259, %c0_260, %c0_261] : memref<4x3x32x32xf32, #tpu.memory_space<vmem>>, vector<1x1x32x32xf32>
    %317 = vector.shape_cast %316 : vector<1x1x32x32xf32> to vector<32x32xf32>
    %cst_262 = arith.constant dense<0.000000e+00> : vector<8x32xf32>
    %318 = tpu.matmul %315, %317, %cst_262 {dimension_numbers = #tpu.dot_dimension_numbers<[1], [0], [0], [1], [0, 0, 1, 1], [], []>} : vector<8x32xf32>, vector<32x32xf32>, vector<8x32xf32> -> vector<8x32xf32>
    %319 = arith.addf %314, %318 : vector<8x32xf32>
    %320 = vector.extract_strided_slice %310 {offsets = [2, 0], sizes = [8, 32], strides = [1, 1]} : vector<10x32xf32> to vector<8x32xf32>
    %c1_263 = arith.constant 1 : index
    %c2_264 = arith.constant 2 : index
    %c0_265 = arith.constant 0 : index
    %c0_266 = arith.constant 0 : index
    %321 = vector.load %arg20[%c1_263, %c2_264, %c0_265, %c0_266] : memref<4x3x32x32xf32, #tpu.memory_space<vmem>>, vector<1x1x32x32xf32>
    %322 = vector.shape_cast %321 : vector<1x1x32x32xf32> to vector<32x32xf32>
    %cst_267 = arith.constant dense<0.000000e+00> : vector<8x32xf32>
    %323 = tpu.matmul %320, %322, %cst_267 {dimension_numbers = #tpu.dot_dimension_numbers<[1], [0], [0], [1], [0, 0, 1, 1], [], []>} : vector<8x32xf32>, vector<32x32xf32>, vector<8x32xf32> -> vector<8x32xf32>
    %324 = arith.addf %319, %323 : vector<8x32xf32>
    %c1_268 = arith.constant 1 : index
    %c0_269 = arith.constant 0 : index
    %c0_270 = arith.constant 0 : index
    %325 = vector.load %arg21[%c1_268, %c0_269, %c0_270] : memref<4x1x32xf32, #tpu.memory_space<vmem>>, vector<1x1x32xf32>
    %326 = vector.shape_cast %325 : vector<1x1x32xf32> to vector<1x32xf32>
    %327 = vector.broadcast %326 : vector<1x32xf32> to vector<8x32xf32>
    %328 = arith.addf %324, %327 : vector<8x32xf32>
    %c1_271 = arith.constant 1 : index
    %c0_272 = arith.constant 0 : index
    %c0_273 = arith.constant 0 : index
    %329 = vector.load %arg22[%c1_271, %c0_272, %c0_273] : memref<4x1x32xf32, #tpu.memory_space<vmem>>, vector<1x1x32xf32>
    %330 = vector.shape_cast %329 : vector<1x1x32xf32> to vector<1x32xf32>
    %331 = vector.broadcast %330 : vector<1x32xf32> to vector<8x32xf32>
    %332 = arith.mulf %328, %331 : vector<8x32xf32>
    %c1_274 = arith.constant 1 : index
    %c0_275 = arith.constant 0 : index
    %c0_276 = arith.constant 0 : index
    %333 = vector.load %arg23[%c1_274, %c0_275, %c0_276] : memref<4x1x32xf32, #tpu.memory_space<vmem>>, vector<1x1x32xf32>
    %334 = vector.shape_cast %333 : vector<1x1x32xf32> to vector<1x32xf32>
    %335 = vector.broadcast %334 : vector<1x32xf32> to vector<8x32xf32>
    %336 = arith.addf %332, %335 : vector<8x32xf32>
    %cst_277 = arith.constant 0.000000e+00 : f32
    %337 = vector.broadcast %cst_277 : f32 to vector<8x32xf32>
    %338 = arith.maximumf %336, %337 : vector<8x32xf32>
    %c1_278 = arith.constant 1 : index
    %c0_279 = arith.constant 0 : index
    %c0_280 = arith.constant 0 : index
    %339 = vector.load %arg24[%c1_278, %c0_279, %c0_280] : memref<4x32x128xf32, #tpu.memory_space<vmem>>, vector<1x32x128xf32>
    %340 = vector.shape_cast %339 : vector<1x32x128xf32> to vector<32x128xf32>
    %cst_281 = arith.constant dense<0.000000e+00> : vector<8x128xf32>
    %341 = tpu.matmul %338, %340, %cst_281 {dimension_numbers = #tpu.dot_dimension_numbers<[1], [0], [0], [1], [0, 0, 1, 1], [], []>} : vector<8x32xf32>, vector<32x128xf32>, vector<8x128xf32> -> vector<8x128xf32>
    %c1_282 = arith.constant 1 : index
    %c0_283 = arith.constant 0 : index
    %c0_284 = arith.constant 0 : index
    %342 = vector.load %arg25[%c1_282, %c0_283, %c0_284] : memref<4x1x128xf32, #tpu.memory_space<vmem>>, vector<1x1x128xf32>
    %343 = vector.shape_cast %342 : vector<1x1x128xf32> to vector<1x128xf32>
    %344 = vector.broadcast %343 : vector<1x128xf32> to vector<8x128xf32>
    %345 = arith.addf %341, %344 : vector<8x128xf32>
    %346 = arith.addf %345, %281 : vector<8x128xf32>
    %c2_285 = arith.constant 2 : index
    %c0_286 = arith.constant 0 : index
    %c0_287 = arith.constant 0 : index
    %347 = vector.load %arg14[%c2_285, %c0_286, %c0_287] : memref<4x1x128xf32, #tpu.memory_space<vmem>>, vector<1x1x128xf32>
    %348 = vector.shape_cast %347 : vector<1x1x128xf32> to vector<1x128xf32>
    %349 = vector.broadcast %348 : vector<1x128xf32> to vector<8x128xf32>
    %350 = arith.mulf %346, %349 : vector<8x128xf32>
    %c2_288 = arith.constant 2 : index
    %c0_289 = arith.constant 0 : index
    %c0_290 = arith.constant 0 : index
    %351 = vector.load %arg15[%c2_288, %c0_289, %c0_290] : memref<4x1x128xf32, #tpu.memory_space<vmem>>, vector<1x1x128xf32>
    %352 = vector.shape_cast %351 : vector<1x1x128xf32> to vector<1x128xf32>
    %353 = vector.broadcast %352 : vector<1x128xf32> to vector<8x128xf32>
    %354 = arith.addf %350, %353 : vector<8x128xf32>
    %cst_291 = arith.constant 0.000000e+00 : f32
    %355 = vector.broadcast %cst_291 : f32 to vector<8x128xf32>
    %356 = arith.maximumf %354, %355 : vector<8x128xf32>
    %c2_292 = arith.constant 2 : index
    %c0_293 = arith.constant 0 : index
    %c0_294 = arith.constant 0 : index
    %357 = vector.load %arg16[%c2_292, %c0_293, %c0_294] : memref<4x128x32xf32, #tpu.memory_space<vmem>>, vector<1x128x32xf32>
    %358 = vector.shape_cast %357 : vector<1x128x32xf32> to vector<128x32xf32>
    %cst_295 = arith.constant dense<0.000000e+00> : vector<8x32xf32>
    %359 = tpu.matmul %356, %358, %cst_295 {dimension_numbers = #tpu.dot_dimension_numbers<[1], [0], [0], [1], [0, 0, 1, 1], [], []>} : vector<8x128xf32>, vector<128x32xf32>, vector<8x32xf32> -> vector<8x32xf32>
    %c2_296 = arith.constant 2 : index
    %c0_297 = arith.constant 0 : index
    %c0_298 = arith.constant 0 : index
    %360 = vector.load %arg17[%c2_296, %c0_297, %c0_298] : memref<4x1x32xf32, #tpu.memory_space<vmem>>, vector<1x1x32xf32>
    %361 = vector.shape_cast %360 : vector<1x1x32xf32> to vector<1x32xf32>
    %362 = vector.broadcast %361 : vector<1x32xf32> to vector<8x32xf32>
    %363 = arith.addf %359, %362 : vector<8x32xf32>
    %c2_299 = arith.constant 2 : index
    %c0_300 = arith.constant 0 : index
    %c0_301 = arith.constant 0 : index
    %364 = vector.load %arg18[%c2_299, %c0_300, %c0_301] : memref<4x1x32xf32, #tpu.memory_space<vmem>>, vector<1x1x32xf32>
    %365 = vector.shape_cast %364 : vector<1x1x32xf32> to vector<1x32xf32>
    %366 = vector.broadcast %365 : vector<1x32xf32> to vector<8x32xf32>
    %367 = arith.mulf %363, %366 : vector<8x32xf32>
    %c2_302 = arith.constant 2 : index
    %c0_303 = arith.constant 0 : index
    %c0_304 = arith.constant 0 : index
    %368 = vector.load %arg19[%c2_302, %c0_303, %c0_304] : memref<4x1x32xf32, #tpu.memory_space<vmem>>, vector<1x1x32xf32>
    %369 = vector.shape_cast %368 : vector<1x1x32xf32> to vector<1x32xf32>
    %370 = vector.broadcast %369 : vector<1x32xf32> to vector<8x32xf32>
    %371 = arith.addf %367, %370 : vector<8x32xf32>
    %cst_305 = arith.constant 0.000000e+00 : f32
    %372 = vector.broadcast %cst_305 : f32 to vector<8x32xf32>
    %373 = arith.maximumf %371, %372 : vector<8x32xf32>
    %cst_306 = arith.constant 0.000000e+00 : f32
    %374 = vector.broadcast %cst_306 : f32 to vector<1x32xf32>
    %375 = tpu.concatenate %374, %373, %374 in 0 : vector<1x32xf32>, vector<8x32xf32>, vector<1x32xf32> -> vector<10x32xf32>
    %376 = vector.extract_strided_slice %375 {offsets = [0, 0], sizes = [8, 32], strides = [1, 1]} : vector<10x32xf32> to vector<8x32xf32>
    %c2_307 = arith.constant 2 : index
    %c0_308 = arith.constant 0 : index
    %c0_309 = arith.constant 0 : index
    %c0_310 = arith.constant 0 : index
    %377 = vector.load %arg20[%c2_307, %c0_308, %c0_309, %c0_310] : memref<4x3x32x32xf32, #tpu.memory_space<vmem>>, vector<1x1x32x32xf32>
    %378 = vector.shape_cast %377 : vector<1x1x32x32xf32> to vector<32x32xf32>
    %cst_311 = arith.constant dense<0.000000e+00> : vector<8x32xf32>
    %379 = tpu.matmul %376, %378, %cst_311 {dimension_numbers = #tpu.dot_dimension_numbers<[1], [0], [0], [1], [0, 0, 1, 1], [], []>} : vector<8x32xf32>, vector<32x32xf32>, vector<8x32xf32> -> vector<8x32xf32>
    %380 = vector.extract_strided_slice %375 {offsets = [1, 0], sizes = [8, 32], strides = [1, 1]} : vector<10x32xf32> to vector<8x32xf32>
    %c2_312 = arith.constant 2 : index
    %c1_313 = arith.constant 1 : index
    %c0_314 = arith.constant 0 : index
    %c0_315 = arith.constant 0 : index
    %381 = vector.load %arg20[%c2_312, %c1_313, %c0_314, %c0_315] : memref<4x3x32x32xf32, #tpu.memory_space<vmem>>, vector<1x1x32x32xf32>
    %382 = vector.shape_cast %381 : vector<1x1x32x32xf32> to vector<32x32xf32>
    %cst_316 = arith.constant dense<0.000000e+00> : vector<8x32xf32>
    %383 = tpu.matmul %380, %382, %cst_316 {dimension_numbers = #tpu.dot_dimension_numbers<[1], [0], [0], [1], [0, 0, 1, 1], [], []>} : vector<8x32xf32>, vector<32x32xf32>, vector<8x32xf32> -> vector<8x32xf32>
    %384 = arith.addf %379, %383 : vector<8x32xf32>
    %385 = vector.extract_strided_slice %375 {offsets = [2, 0], sizes = [8, 32], strides = [1, 1]} : vector<10x32xf32> to vector<8x32xf32>
    %c2_317 = arith.constant 2 : index
    %c2_318 = arith.constant 2 : index
    %c0_319 = arith.constant 0 : index
    %c0_320 = arith.constant 0 : index
    %386 = vector.load %arg20[%c2_317, %c2_318, %c0_319, %c0_320] : memref<4x3x32x32xf32, #tpu.memory_space<vmem>>, vector<1x1x32x32xf32>
    %387 = vector.shape_cast %386 : vector<1x1x32x32xf32> to vector<32x32xf32>
    %cst_321 = arith.constant dense<0.000000e+00> : vector<8x32xf32>
    %388 = tpu.matmul %385, %387, %cst_321 {dimension_numbers = #tpu.dot_dimension_numbers<[1], [0], [0], [1], [0, 0, 1, 1], [], []>} : vector<8x32xf32>, vector<32x32xf32>, vector<8x32xf32> -> vector<8x32xf32>
    %389 = arith.addf %384, %388 : vector<8x32xf32>
    %c2_322 = arith.constant 2 : index
    %c0_323 = arith.constant 0 : index
    %c0_324 = arith.constant 0 : index
    %390 = vector.load %arg21[%c2_322, %c0_323, %c0_324] : memref<4x1x32xf32, #tpu.memory_space<vmem>>, vector<1x1x32xf32>
    %391 = vector.shape_cast %390 : vector<1x1x32xf32> to vector<1x32xf32>
    %392 = vector.broadcast %391 : vector<1x32xf32> to vector<8x32xf32>
    %393 = arith.addf %389, %392 : vector<8x32xf32>
    %c2_325 = arith.constant 2 : index
    %c0_326 = arith.constant 0 : index
    %c0_327 = arith.constant 0 : index
    %394 = vector.load %arg22[%c2_325, %c0_326, %c0_327] : memref<4x1x32xf32, #tpu.memory_space<vmem>>, vector<1x1x32xf32>
    %395 = vector.shape_cast %394 : vector<1x1x32xf32> to vector<1x32xf32>
    %396 = vector.broadcast %395 : vector<1x32xf32> to vector<8x32xf32>
    %397 = arith.mulf %393, %396 : vector<8x32xf32>
    %c2_328 = arith.constant 2 : index
    %c0_329 = arith.constant 0 : index
    %c0_330 = arith.constant 0 : index
    %398 = vector.load %arg23[%c2_328, %c0_329, %c0_330] : memref<4x1x32xf32, #tpu.memory_space<vmem>>, vector<1x1x32xf32>
    %399 = vector.shape_cast %398 : vector<1x1x32xf32> to vector<1x32xf32>
    %400 = vector.broadcast %399 : vector<1x32xf32> to vector<8x32xf32>
    %401 = arith.addf %397, %400 : vector<8x32xf32>
    %cst_331 = arith.constant 0.000000e+00 : f32
    %402 = vector.broadcast %cst_331 : f32 to vector<8x32xf32>
    %403 = arith.maximumf %401, %402 : vector<8x32xf32>
    %c2_332 = arith.constant 2 : index
    %c0_333 = arith.constant 0 : index
    %c0_334 = arith.constant 0 : index
    %404 = vector.load %arg24[%c2_332, %c0_333, %c0_334] : memref<4x32x128xf32, #tpu.memory_space<vmem>>, vector<1x32x128xf32>
    %405 = vector.shape_cast %404 : vector<1x32x128xf32> to vector<32x128xf32>
    %cst_335 = arith.constant dense<0.000000e+00> : vector<8x128xf32>
    %406 = tpu.matmul %403, %405, %cst_335 {dimension_numbers = #tpu.dot_dimension_numbers<[1], [0], [0], [1], [0, 0, 1, 1], [], []>} : vector<8x32xf32>, vector<32x128xf32>, vector<8x128xf32> -> vector<8x128xf32>
    %c2_336 = arith.constant 2 : index
    %c0_337 = arith.constant 0 : index
    %c0_338 = arith.constant 0 : index
    %407 = vector.load %arg25[%c2_336, %c0_337, %c0_338] : memref<4x1x128xf32, #tpu.memory_space<vmem>>, vector<1x1x128xf32>
    %408 = vector.shape_cast %407 : vector<1x1x128xf32> to vector<1x128xf32>
    %409 = vector.broadcast %408 : vector<1x128xf32> to vector<8x128xf32>
    %410 = arith.addf %406, %409 : vector<8x128xf32>
    %411 = arith.addf %410, %346 : vector<8x128xf32>
    %c3 = arith.constant 3 : index
    %c0_339 = arith.constant 0 : index
    %c0_340 = arith.constant 0 : index
    %412 = vector.load %arg14[%c3, %c0_339, %c0_340] : memref<4x1x128xf32, #tpu.memory_space<vmem>>, vector<1x1x128xf32>
    %413 = vector.shape_cast %412 : vector<1x1x128xf32> to vector<1x128xf32>
    %414 = vector.broadcast %413 : vector<1x128xf32> to vector<8x128xf32>
    %415 = arith.mulf %411, %414 : vector<8x128xf32>
    %c3_341 = arith.constant 3 : index
    %c0_342 = arith.constant 0 : index
    %c0_343 = arith.constant 0 : index
    %416 = vector.load %arg15[%c3_341, %c0_342, %c0_343] : memref<4x1x128xf32, #tpu.memory_space<vmem>>, vector<1x1x128xf32>
    %417 = vector.shape_cast %416 : vector<1x1x128xf32> to vector<1x128xf32>
    %418 = vector.broadcast %417 : vector<1x128xf32> to vector<8x128xf32>
    %419 = arith.addf %415, %418 : vector<8x128xf32>
    %cst_344 = arith.constant 0.000000e+00 : f32
    %420 = vector.broadcast %cst_344 : f32 to vector<8x128xf32>
    %421 = arith.maximumf %419, %420 : vector<8x128xf32>
    %c3_345 = arith.constant 3 : index
    %c0_346 = arith.constant 0 : index
    %c0_347 = arith.constant 0 : index
    %422 = vector.load %arg16[%c3_345, %c0_346, %c0_347] : memref<4x128x32xf32, #tpu.memory_space<vmem>>, vector<1x128x32xf32>
    %423 = vector.shape_cast %422 : vector<1x128x32xf32> to vector<128x32xf32>
    %cst_348 = arith.constant dense<0.000000e+00> : vector<8x32xf32>
    %424 = tpu.matmul %421, %423, %cst_348 {dimension_numbers = #tpu.dot_dimension_numbers<[1], [0], [0], [1], [0, 0, 1, 1], [], []>} : vector<8x128xf32>, vector<128x32xf32>, vector<8x32xf32> -> vector<8x32xf32>
    %c3_349 = arith.constant 3 : index
    %c0_350 = arith.constant 0 : index
    %c0_351 = arith.constant 0 : index
    %425 = vector.load %arg17[%c3_349, %c0_350, %c0_351] : memref<4x1x32xf32, #tpu.memory_space<vmem>>, vector<1x1x32xf32>
    %426 = vector.shape_cast %425 : vector<1x1x32xf32> to vector<1x32xf32>
    %427 = vector.broadcast %426 : vector<1x32xf32> to vector<8x32xf32>
    %428 = arith.addf %424, %427 : vector<8x32xf32>
    %c3_352 = arith.constant 3 : index
    %c0_353 = arith.constant 0 : index
    %c0_354 = arith.constant 0 : index
    %429 = vector.load %arg18[%c3_352, %c0_353, %c0_354] : memref<4x1x32xf32, #tpu.memory_space<vmem>>, vector<1x1x32xf32>
    %430 = vector.shape_cast %429 : vector<1x1x32xf32> to vector<1x32xf32>
    %431 = vector.broadcast %430 : vector<1x32xf32> to vector<8x32xf32>
    %432 = arith.mulf %428, %431 : vector<8x32xf32>
    %c3_355 = arith.constant 3 : index
    %c0_356 = arith.constant 0 : index
    %c0_357 = arith.constant 0 : index
    %433 = vector.load %arg19[%c3_355, %c0_356, %c0_357] : memref<4x1x32xf32, #tpu.memory_space<vmem>>, vector<1x1x32xf32>
    %434 = vector.shape_cast %433 : vector<1x1x32xf32> to vector<1x32xf32>
    %435 = vector.broadcast %434 : vector<1x32xf32> to vector<8x32xf32>
    %436 = arith.addf %432, %435 : vector<8x32xf32>
    %cst_358 = arith.constant 0.000000e+00 : f32
    %437 = vector.broadcast %cst_358 : f32 to vector<8x32xf32>
    %438 = arith.maximumf %436, %437 : vector<8x32xf32>
    %cst_359 = arith.constant 0.000000e+00 : f32
    %439 = vector.broadcast %cst_359 : f32 to vector<1x32xf32>
    %440 = tpu.concatenate %439, %438, %439 in 0 : vector<1x32xf32>, vector<8x32xf32>, vector<1x32xf32> -> vector<10x32xf32>
    %441 = vector.extract_strided_slice %440 {offsets = [0, 0], sizes = [8, 32], strides = [1, 1]} : vector<10x32xf32> to vector<8x32xf32>
    %c3_360 = arith.constant 3 : index
    %c0_361 = arith.constant 0 : index
    %c0_362 = arith.constant 0 : index
    %c0_363 = arith.constant 0 : index
    %442 = vector.load %arg20[%c3_360, %c0_361, %c0_362, %c0_363] : memref<4x3x32x32xf32, #tpu.memory_space<vmem>>, vector<1x1x32x32xf32>
    %443 = vector.shape_cast %442 : vector<1x1x32x32xf32> to vector<32x32xf32>
    %cst_364 = arith.constant dense<0.000000e+00> : vector<8x32xf32>
    %444 = tpu.matmul %441, %443, %cst_364 {dimension_numbers = #tpu.dot_dimension_numbers<[1], [0], [0], [1], [0, 0, 1, 1], [], []>} : vector<8x32xf32>, vector<32x32xf32>, vector<8x32xf32> -> vector<8x32xf32>
    %445 = vector.extract_strided_slice %440 {offsets = [1, 0], sizes = [8, 32], strides = [1, 1]} : vector<10x32xf32> to vector<8x32xf32>
    %c3_365 = arith.constant 3 : index
    %c1_366 = arith.constant 1 : index
    %c0_367 = arith.constant 0 : index
    %c0_368 = arith.constant 0 : index
    %446 = vector.load %arg20[%c3_365, %c1_366, %c0_367, %c0_368] : memref<4x3x32x32xf32, #tpu.memory_space<vmem>>, vector<1x1x32x32xf32>
    %447 = vector.shape_cast %446 : vector<1x1x32x32xf32> to vector<32x32xf32>
    %cst_369 = arith.constant dense<0.000000e+00> : vector<8x32xf32>
    %448 = tpu.matmul %445, %447, %cst_369 {dimension_numbers = #tpu.dot_dimension_numbers<[1], [0], [0], [1], [0, 0, 1, 1], [], []>} : vector<8x32xf32>, vector<32x32xf32>, vector<8x32xf32> -> vector<8x32xf32>
    %449 = arith.addf %444, %448 : vector<8x32xf32>
    %450 = vector.extract_strided_slice %440 {offsets = [2, 0], sizes = [8, 32], strides = [1, 1]} : vector<10x32xf32> to vector<8x32xf32>
    %c3_370 = arith.constant 3 : index
    %c2_371 = arith.constant 2 : index
    %c0_372 = arith.constant 0 : index
    %c0_373 = arith.constant 0 : index
    %451 = vector.load %arg20[%c3_370, %c2_371, %c0_372, %c0_373] : memref<4x3x32x32xf32, #tpu.memory_space<vmem>>, vector<1x1x32x32xf32>
    %452 = vector.shape_cast %451 : vector<1x1x32x32xf32> to vector<32x32xf32>
    %cst_374 = arith.constant dense<0.000000e+00> : vector<8x32xf32>
    %453 = tpu.matmul %450, %452, %cst_374 {dimension_numbers = #tpu.dot_dimension_numbers<[1], [0], [0], [1], [0, 0, 1, 1], [], []>} : vector<8x32xf32>, vector<32x32xf32>, vector<8x32xf32> -> vector<8x32xf32>
    %454 = arith.addf %449, %453 : vector<8x32xf32>
    %c3_375 = arith.constant 3 : index
    %c0_376 = arith.constant 0 : index
    %c0_377 = arith.constant 0 : index
    %455 = vector.load %arg21[%c3_375, %c0_376, %c0_377] : memref<4x1x32xf32, #tpu.memory_space<vmem>>, vector<1x1x32xf32>
    %456 = vector.shape_cast %455 : vector<1x1x32xf32> to vector<1x32xf32>
    %457 = vector.broadcast %456 : vector<1x32xf32> to vector<8x32xf32>
    %458 = arith.addf %454, %457 : vector<8x32xf32>
    %c3_378 = arith.constant 3 : index
    %c0_379 = arith.constant 0 : index
    %c0_380 = arith.constant 0 : index
    %459 = vector.load %arg22[%c3_378, %c0_379, %c0_380] : memref<4x1x32xf32, #tpu.memory_space<vmem>>, vector<1x1x32xf32>
    %460 = vector.shape_cast %459 : vector<1x1x32xf32> to vector<1x32xf32>
    %461 = vector.broadcast %460 : vector<1x32xf32> to vector<8x32xf32>
    %462 = arith.mulf %458, %461 : vector<8x32xf32>
    %c3_381 = arith.constant 3 : index
    %c0_382 = arith.constant 0 : index
    %c0_383 = arith.constant 0 : index
    %463 = vector.load %arg23[%c3_381, %c0_382, %c0_383] : memref<4x1x32xf32, #tpu.memory_space<vmem>>, vector<1x1x32xf32>
    %464 = vector.shape_cast %463 : vector<1x1x32xf32> to vector<1x32xf32>
    %465 = vector.broadcast %464 : vector<1x32xf32> to vector<8x32xf32>
    %466 = arith.addf %462, %465 : vector<8x32xf32>
    %cst_384 = arith.constant 0.000000e+00 : f32
    %467 = vector.broadcast %cst_384 : f32 to vector<8x32xf32>
    %468 = arith.maximumf %466, %467 : vector<8x32xf32>
    %c3_385 = arith.constant 3 : index
    %c0_386 = arith.constant 0 : index
    %c0_387 = arith.constant 0 : index
    %469 = vector.load %arg24[%c3_385, %c0_386, %c0_387] : memref<4x32x128xf32, #tpu.memory_space<vmem>>, vector<1x32x128xf32>
    %470 = vector.shape_cast %469 : vector<1x32x128xf32> to vector<32x128xf32>
    %cst_388 = arith.constant dense<0.000000e+00> : vector<8x128xf32>
    %471 = tpu.matmul %468, %470, %cst_388 {dimension_numbers = #tpu.dot_dimension_numbers<[1], [0], [0], [1], [0, 0, 1, 1], [], []>} : vector<8x32xf32>, vector<32x128xf32>, vector<8x128xf32> -> vector<8x128xf32>
    %c3_389 = arith.constant 3 : index
    %c0_390 = arith.constant 0 : index
    %c0_391 = arith.constant 0 : index
    %472 = vector.load %arg25[%c3_389, %c0_390, %c0_391] : memref<4x1x128xf32, #tpu.memory_space<vmem>>, vector<1x1x128xf32>
    %473 = vector.shape_cast %472 : vector<1x1x128xf32> to vector<1x128xf32>
    %474 = vector.broadcast %473 : vector<1x128xf32> to vector<8x128xf32>
    %475 = arith.addf %471, %474 : vector<8x128xf32>
    %476 = arith.addf %475, %411 : vector<8x128xf32>
    %c0_392 = arith.constant 0 : index
    %c0_393 = arith.constant 0 : index
    %477 = vector.load %arg36[%c0_392, %c0_393] : memref<16x8xf32, #tpu.memory_space<vmem>>, vector<16x8xf32>
    %cst_394 = arith.constant dense<0.000000e+00> : vector<16x128xf32>
    %478 = tpu.matmul %477, %476, %cst_394 {dimension_numbers = #tpu.dot_dimension_numbers<[1], [0], [0], [1], [0, 0, 1, 1], [], []>} : vector<16x8xf32>, vector<8x128xf32>, vector<16x128xf32> -> vector<16x128xf32>
    %c0_395 = arith.constant 0 : index
    %c0_396 = arith.constant 0 : index
    %479 = vector.load %arg37[%c0_395, %c0_396] : memref<128x256xf32, #tpu.memory_space<vmem>>, vector<128x256xf32>
    %cst_397 = arith.constant dense<0.000000e+00> : vector<16x256xf32>
    %480 = tpu.matmul %478, %479, %cst_397 {dimension_numbers = #tpu.dot_dimension_numbers<[1], [0], [0], [1], [0, 0, 1, 1], [], []>} : vector<16x128xf32>, vector<128x256xf32>, vector<16x256xf32> -> vector<16x256xf32>
    %c0_398 = arith.constant 0 : index
    %c0_399 = arith.constant 0 : index
    %481 = vector.load %arg26[%c0_398, %c0_399] : memref<1x256xf32, #tpu.memory_space<vmem>>, vector<1x256xf32>
    %482 = vector.broadcast %481 : vector<1x256xf32> to vector<16x256xf32>
    %483 = arith.mulf %480, %482 : vector<16x256xf32>
    %c0_400 = arith.constant 0 : index
    %c0_401 = arith.constant 0 : index
    %484 = vector.load %arg27[%c0_400, %c0_401] : memref<1x256xf32, #tpu.memory_space<vmem>>, vector<1x256xf32>
    %485 = vector.broadcast %484 : vector<1x256xf32> to vector<16x256xf32>
    %486 = arith.addf %483, %485 : vector<16x256xf32>
    %cst_402 = arith.constant 0.000000e+00 : f32
    %487 = vector.broadcast %cst_402 : f32 to vector<16x256xf32>
    %488 = arith.maximumf %486, %487 : vector<16x256xf32>
    %c0_403 = arith.constant 0 : index
    %c0_404 = arith.constant 0 : index
    %489 = vector.load %arg28[%c0_403, %c0_404] : memref<256x256xf32, #tpu.memory_space<vmem>>, vector<256x256xf32>
    %cst_405 = arith.constant dense<0.000000e+00> : vector<16x256xf32>
    %490 = tpu.matmul %488, %489, %cst_405 {dimension_numbers = #tpu.dot_dimension_numbers<[1], [0], [0], [1], [0, 0, 1, 1], [], []>} : vector<16x256xf32>, vector<256x256xf32>, vector<16x256xf32> -> vector<16x256xf32>
    %c0_406 = arith.constant 0 : index
    %c0_407 = arith.constant 0 : index
    %491 = vector.load %arg29[%c0_406, %c0_407] : memref<1x256xf32, #tpu.memory_space<vmem>>, vector<1x256xf32>
    %492 = vector.broadcast %491 : vector<1x256xf32> to vector<16x256xf32>
    %493 = arith.addf %490, %492 : vector<16x256xf32>
    %c0_408 = arith.constant 0 : index
    %c0_409 = arith.constant 0 : index
    %494 = vector.load %arg30[%c0_408, %c0_409] : memref<1x256xf32, #tpu.memory_space<vmem>>, vector<1x256xf32>
    %495 = vector.broadcast %494 : vector<1x256xf32> to vector<16x256xf32>
    %496 = arith.mulf %493, %495 : vector<16x256xf32>
    %c0_410 = arith.constant 0 : index
    %c0_411 = arith.constant 0 : index
    %497 = vector.load %arg31[%c0_410, %c0_411] : memref<1x256xf32, #tpu.memory_space<vmem>>, vector<1x256xf32>
    %498 = vector.broadcast %497 : vector<1x256xf32> to vector<16x256xf32>
    %499 = arith.addf %496, %498 : vector<16x256xf32>
    %cst_412 = arith.constant 0.000000e+00 : f32
    %500 = vector.broadcast %cst_412 : f32 to vector<16x256xf32>
    %501 = arith.maximumf %499, %500 : vector<16x256xf32>
    %c0_413 = arith.constant 0 : index
    %c0_414 = arith.constant 0 : index
    %502 = vector.load %arg32[%c0_413, %c0_414] : memref<256x256xf32, #tpu.memory_space<vmem>>, vector<256x256xf32>
    %cst_415 = arith.constant dense<0.000000e+00> : vector<16x256xf32>
    %503 = tpu.matmul %501, %502, %cst_415 {dimension_numbers = #tpu.dot_dimension_numbers<[1], [0], [0], [1], [0, 0, 1, 1], [], []>} : vector<16x256xf32>, vector<256x256xf32>, vector<16x256xf32> -> vector<16x256xf32>
    %c0_416 = arith.constant 0 : index
    %c0_417 = arith.constant 0 : index
    %504 = vector.load %arg33[%c0_416, %c0_417] : memref<1x256xf32, #tpu.memory_space<vmem>>, vector<1x256xf32>
    %505 = vector.broadcast %504 : vector<1x256xf32> to vector<16x256xf32>
    %506 = arith.addf %503, %505 : vector<16x256xf32>
    %507 = arith.negf %506 : vector<16x256xf32>
    %508 = math.exp %507 : vector<16x256xf32>
    %cst_418 = arith.constant 1.000000e+00 : f32
    %509 = vector.broadcast %cst_418 : f32 to vector<16x256xf32>
    %510 = arith.addf %509, %508 : vector<16x256xf32>
    %511 = arith.divf %509, %510 : vector<16x256xf32>
    %cst_419 = arith.constant 1.000000e+00 : f32
    %512 = vector.broadcast %cst_419 : f32 to vector<16x256xf32>
    %513 = arith.addf %512, %511 : vector<16x256xf32>
    %514 = arith.mulf %513, %196 : vector<16x256xf32>
    %c3_420 = arith.constant 3 : index
    %c0_421 = arith.constant 0 : index
    %c0_422 = arith.constant 0 : index
    %515 = vector.load %arg2[%c3_420, %c0_421, %c0_422] : memref<4x1x256xf32, #tpu.memory_space<vmem>>, vector<1x1x256xf32>
    %516 = vector.shape_cast %515 : vector<1x1x256xf32> to vector<1x256xf32>
    %517 = vector.broadcast %516 : vector<1x256xf32> to vector<16x256xf32>
    %518 = arith.mulf %514, %517 : vector<16x256xf32>
    %c3_423 = arith.constant 3 : index
    %c0_424 = arith.constant 0 : index
    %c0_425 = arith.constant 0 : index
    %519 = vector.load %arg3[%c3_423, %c0_424, %c0_425] : memref<4x1x256xf32, #tpu.memory_space<vmem>>, vector<1x1x256xf32>
    %520 = vector.shape_cast %519 : vector<1x1x256xf32> to vector<1x256xf32>
    %521 = vector.broadcast %520 : vector<1x256xf32> to vector<16x256xf32>
    %522 = arith.addf %518, %521 : vector<16x256xf32>
    %cst_426 = arith.constant 0.000000e+00 : f32
    %523 = vector.broadcast %cst_426 : f32 to vector<16x256xf32>
    %524 = arith.maximumf %522, %523 : vector<16x256xf32>
    %c3_427 = arith.constant 3 : index
    %c0_428 = arith.constant 0 : index
    %c0_429 = arith.constant 0 : index
    %525 = vector.load %arg4[%c3_427, %c0_428, %c0_429] : memref<4x256x64xf32, #tpu.memory_space<vmem>>, vector<1x256x64xf32>
    %526 = vector.shape_cast %525 : vector<1x256x64xf32> to vector<256x64xf32>
    %cst_430 = arith.constant dense<0.000000e+00> : vector<16x64xf32>
    %527 = tpu.matmul %524, %526, %cst_430 {dimension_numbers = #tpu.dot_dimension_numbers<[1], [0], [0], [1], [0, 0, 1, 1], [], []>} : vector<16x256xf32>, vector<256x64xf32>, vector<16x64xf32> -> vector<16x64xf32>
    %c3_431 = arith.constant 3 : index
    %c0_432 = arith.constant 0 : index
    %c0_433 = arith.constant 0 : index
    %528 = vector.load %arg5[%c3_431, %c0_432, %c0_433] : memref<4x1x64xf32, #tpu.memory_space<vmem>>, vector<1x1x64xf32>
    %529 = vector.shape_cast %528 : vector<1x1x64xf32> to vector<1x64xf32>
    %530 = vector.broadcast %529 : vector<1x64xf32> to vector<16x64xf32>
    %531 = arith.addf %527, %530 : vector<16x64xf32>
    %c3_434 = arith.constant 3 : index
    %c0_435 = arith.constant 0 : index
    %c0_436 = arith.constant 0 : index
    %532 = vector.load %arg6[%c3_434, %c0_435, %c0_436] : memref<4x1x64xf32, #tpu.memory_space<vmem>>, vector<1x1x64xf32>
    %533 = vector.shape_cast %532 : vector<1x1x64xf32> to vector<1x64xf32>
    %534 = vector.broadcast %533 : vector<1x64xf32> to vector<16x64xf32>
    %535 = arith.mulf %531, %534 : vector<16x64xf32>
    %c3_437 = arith.constant 3 : index
    %c0_438 = arith.constant 0 : index
    %c0_439 = arith.constant 0 : index
    %536 = vector.load %arg7[%c3_437, %c0_438, %c0_439] : memref<4x1x64xf32, #tpu.memory_space<vmem>>, vector<1x1x64xf32>
    %537 = vector.shape_cast %536 : vector<1x1x64xf32> to vector<1x64xf32>
    %538 = vector.broadcast %537 : vector<1x64xf32> to vector<16x64xf32>
    %539 = arith.addf %535, %538 : vector<16x64xf32>
    %cst_440 = arith.constant 0.000000e+00 : f32
    %540 = vector.broadcast %cst_440 : f32 to vector<16x64xf32>
    %541 = arith.maximumf %539, %540 : vector<16x64xf32>
    %cst_441 = arith.constant 0.000000e+00 : f32
    %542 = vector.broadcast %cst_441 : f32 to vector<1x64xf32>
    %543 = tpu.concatenate %542, %541, %542 in 0 : vector<1x64xf32>, vector<16x64xf32>, vector<1x64xf32> -> vector<18x64xf32>
    %544 = vector.extract_strided_slice %543 {offsets = [0, 0], sizes = [16, 64], strides = [1, 1]} : vector<18x64xf32> to vector<16x64xf32>
    %c3_442 = arith.constant 3 : index
    %c0_443 = arith.constant 0 : index
    %c0_444 = arith.constant 0 : index
    %c0_445 = arith.constant 0 : index
    %545 = vector.load %arg8[%c3_442, %c0_443, %c0_444, %c0_445] : memref<4x3x64x64xf32, #tpu.memory_space<vmem>>, vector<1x1x64x64xf32>
    %546 = vector.shape_cast %545 : vector<1x1x64x64xf32> to vector<64x64xf32>
    %cst_446 = arith.constant dense<0.000000e+00> : vector<16x64xf32>
    %547 = tpu.matmul %544, %546, %cst_446 {dimension_numbers = #tpu.dot_dimension_numbers<[1], [0], [0], [1], [0, 0, 1, 1], [], []>} : vector<16x64xf32>, vector<64x64xf32>, vector<16x64xf32> -> vector<16x64xf32>
    %548 = vector.extract_strided_slice %543 {offsets = [1, 0], sizes = [16, 64], strides = [1, 1]} : vector<18x64xf32> to vector<16x64xf32>
    %c3_447 = arith.constant 3 : index
    %c1_448 = arith.constant 1 : index
    %c0_449 = arith.constant 0 : index
    %c0_450 = arith.constant 0 : index
    %549 = vector.load %arg8[%c3_447, %c1_448, %c0_449, %c0_450] : memref<4x3x64x64xf32, #tpu.memory_space<vmem>>, vector<1x1x64x64xf32>
    %550 = vector.shape_cast %549 : vector<1x1x64x64xf32> to vector<64x64xf32>
    %cst_451 = arith.constant dense<0.000000e+00> : vector<16x64xf32>
    %551 = tpu.matmul %548, %550, %cst_451 {dimension_numbers = #tpu.dot_dimension_numbers<[1], [0], [0], [1], [0, 0, 1, 1], [], []>} : vector<16x64xf32>, vector<64x64xf32>, vector<16x64xf32> -> vector<16x64xf32>
    %552 = arith.addf %547, %551 : vector<16x64xf32>
    %553 = vector.extract_strided_slice %543 {offsets = [2, 0], sizes = [16, 64], strides = [1, 1]} : vector<18x64xf32> to vector<16x64xf32>
    %c3_452 = arith.constant 3 : index
    %c2_453 = arith.constant 2 : index
    %c0_454 = arith.constant 0 : index
    %c0_455 = arith.constant 0 : index
    %554 = vector.load %arg8[%c3_452, %c2_453, %c0_454, %c0_455] : memref<4x3x64x64xf32, #tpu.memory_space<vmem>>, vector<1x1x64x64xf32>
    %555 = vector.shape_cast %554 : vector<1x1x64x64xf32> to vector<64x64xf32>
    %cst_456 = arith.constant dense<0.000000e+00> : vector<16x64xf32>
    %556 = tpu.matmul %553, %555, %cst_456 {dimension_numbers = #tpu.dot_dimension_numbers<[1], [0], [0], [1], [0, 0, 1, 1], [], []>} : vector<16x64xf32>, vector<64x64xf32>, vector<16x64xf32> -> vector<16x64xf32>
    %557 = arith.addf %552, %556 : vector<16x64xf32>
    %c3_457 = arith.constant 3 : index
    %c0_458 = arith.constant 0 : index
    %c0_459 = arith.constant 0 : index
    %558 = vector.load %arg9[%c3_457, %c0_458, %c0_459] : memref<4x1x64xf32, #tpu.memory_space<vmem>>, vector<1x1x64xf32>
    %559 = vector.shape_cast %558 : vector<1x1x64xf32> to vector<1x64xf32>
    %560 = vector.broadcast %559 : vector<1x64xf32> to vector<16x64xf32>
    %561 = arith.addf %557, %560 : vector<16x64xf32>
    %c3_460 = arith.constant 3 : index
    %c0_461 = arith.constant 0 : index
    %c0_462 = arith.constant 0 : index
    %562 = vector.load %arg10[%c3_460, %c0_461, %c0_462] : memref<4x1x64xf32, #tpu.memory_space<vmem>>, vector<1x1x64xf32>
    %563 = vector.shape_cast %562 : vector<1x1x64xf32> to vector<1x64xf32>
    %564 = vector.broadcast %563 : vector<1x64xf32> to vector<16x64xf32>
    %565 = arith.mulf %561, %564 : vector<16x64xf32>
    %c3_463 = arith.constant 3 : index
    %c0_464 = arith.constant 0 : index
    %c0_465 = arith.constant 0 : index
    %566 = vector.load %arg11[%c3_463, %c0_464, %c0_465] : memref<4x1x64xf32, #tpu.memory_space<vmem>>, vector<1x1x64xf32>
    %567 = vector.shape_cast %566 : vector<1x1x64xf32> to vector<1x64xf32>
    %568 = vector.broadcast %567 : vector<1x64xf32> to vector<16x64xf32>
    %569 = arith.addf %565, %568 : vector<16x64xf32>
    %cst_466 = arith.constant 0.000000e+00 : f32
    %570 = vector.broadcast %cst_466 : f32 to vector<16x64xf32>
    %571 = arith.maximumf %569, %570 : vector<16x64xf32>
    %c3_467 = arith.constant 3 : index
    %c0_468 = arith.constant 0 : index
    %c0_469 = arith.constant 0 : index
    %572 = vector.load %arg12[%c3_467, %c0_468, %c0_469] : memref<4x64x256xf32, #tpu.memory_space<vmem>>, vector<1x64x256xf32>
    %573 = vector.shape_cast %572 : vector<1x64x256xf32> to vector<64x256xf32>
    %cst_470 = arith.constant dense<0.000000e+00> : vector<16x256xf32>
    %574 = tpu.matmul %571, %573, %cst_470 {dimension_numbers = #tpu.dot_dimension_numbers<[1], [0], [0], [1], [0, 0, 1, 1], [], []>} : vector<16x64xf32>, vector<64x256xf32>, vector<16x256xf32> -> vector<16x256xf32>
    %c3_471 = arith.constant 3 : index
    %c0_472 = arith.constant 0 : index
    %c0_473 = arith.constant 0 : index
    %575 = vector.load %arg13[%c3_471, %c0_472, %c0_473] : memref<4x1x256xf32, #tpu.memory_space<vmem>>, vector<1x1x256xf32>
    %576 = vector.shape_cast %575 : vector<1x1x256xf32> to vector<1x256xf32>
    %577 = vector.broadcast %576 : vector<1x256xf32> to vector<16x256xf32>
    %578 = arith.addf %574, %577 : vector<16x256xf32>
    %579 = arith.addf %578, %514 : vector<16x256xf32>
    %c0_474 = arith.constant 0 : index
    %c0_475 = arith.constant 0 : index
    %c0_476 = arith.constant 0 : index
    %580 = vector.load %arg38[%c0_474, %c0_475, %c0_476] : memref<1x16x256xf32, #tpu.memory_space<vmem>>, vector<1x16x256xf32>
    %581 = vector.shape_cast %580 : vector<1x16x256xf32> to vector<16x256xf32>
    %582 = vector.shape_cast %579 : vector<16x256xf32> to vector<1x16x256xf32>
    tpu.vector_store %arg38[%c0_474, %c0_475, %c0_476], %582 {strides = array<i32>} : memref<1x16x256xf32, #tpu.memory_space<vmem>>, vector<1x16x256xf32>,
    return
  }
  func.func @transform_0(%arg0: i32) -> (i32, i32, i32) {
    %c0_i32 = arith.constant 0 : i32
    %c0_i32_0 = arith.constant 0 : i32
    %c0_i32_1 = arith.constant 0 : i32
    return %arg0, %c0_i32, %c0_i32_0 : i32, i32, i32
  }
  func.func @transform_1(%arg0: i32) -> (i32, i32, i32) {
    %c0_i32 = arith.constant 0 : i32
    %c0_i32_0 = arith.constant 0 : i32
    %c0_i32_1 = arith.constant 0 : i32
    %c0_i32_2 = arith.constant 0 : i32
    return %c0_i32, %c0_i32_0, %c0_i32_1 : i32, i32, i32
  }
  func.func @transform_2(%arg0: i32) -> (i32, i32, i32) {
    %c0_i32 = arith.constant 0 : i32
    %c0_i32_0 = arith.constant 0 : i32
    %c0_i32_1 = arith.constant 0 : i32
    %c0_i32_2 = arith.constant 0 : i32
    return %c0_i32, %c0_i32_0, %c0_i32_1 : i32, i32, i32
  }
  func.func @transform_3(%arg0: i32) -> (i32, i32, i32) {
    %c0_i32 = arith.constant 0 : i32
    %c0_i32_0 = arith.constant 0 : i32
    %c0_i32_1 = arith.constant 0 : i32
    %c0_i32_2 = arith.constant 0 : i32
    return %c0_i32, %c0_i32_0, %c0_i32_1 : i32, i32, i32
  }
  func.func @transform_4(%arg0: i32) -> (i32, i32, i32) {
    %c0_i32 = arith.constant 0 : i32
    %c0_i32_0 = arith.constant 0 : i32
    %c0_i32_1 = arith.constant 0 : i32
    %c0_i32_2 = arith.constant 0 : i32
    return %c0_i32, %c0_i32_0, %c0_i32_1 : i32, i32, i32
  }
  func.func @transform_5(%arg0: i32) -> (i32, i32, i32) {
    %c0_i32 = arith.constant 0 : i32
    %c0_i32_0 = arith.constant 0 : i32
    %c0_i32_1 = arith.constant 0 : i32
    %c0_i32_2 = arith.constant 0 : i32
    return %c0_i32, %c0_i32_0, %c0_i32_1 : i32, i32, i32
  }
  func.func @transform_6(%arg0: i32) -> (i32, i32, i32) {
    %c0_i32 = arith.constant 0 : i32
    %c0_i32_0 = arith.constant 0 : i32
    %c0_i32_1 = arith.constant 0 : i32
    %c0_i32_2 = arith.constant 0 : i32
    return %c0_i32, %c0_i32_0, %c0_i32_1 : i32, i32, i32
  }
  func.func @transform_7(%arg0: i32) -> (i32, i32, i32, i32) {
    %c0_i32 = arith.constant 0 : i32
    %c0_i32_0 = arith.constant 0 : i32
    %c0_i32_1 = arith.constant 0 : i32
    %c0_i32_2 = arith.constant 0 : i32
    %c0_i32_3 = arith.constant 0 : i32
    return %c0_i32, %c0_i32_0, %c0_i32_1, %c0_i32_2 : i32, i32, i32, i32
  }
  func.func @transform_8(%arg0: i32) -> (i32, i32, i32) {
    %c0_i32 = arith.constant 0 : i32
    %c0_i32_0 = arith.constant 0 : i32
    %c0_i32_1 = arith.constant 0 : i32
    %c0_i32_2 = arith.constant 0 : i32
    return %c0_i32, %c0_i32_0, %c0_i32_1 : i32, i32, i32
  }
  func.func @transform_9(%arg0: i32) -> (i32, i32, i32) {
    %c0_i32 = arith.constant 0 : i32
    %c0_i32_0 = arith.constant 0 : i32
    %c0_i32_1 = arith.constant 0 : i32
    %c0_i32_2 = arith.constant 0 : i32
    return %c0_i32, %c0_i32_0, %c0_i32_1 : i32, i32, i32
  }
  func.func @transform_10(%arg0: i32) -> (i32, i32, i32) {
    %c0_i32 = arith.constant 0 : i32
    %c0_i32_0 = arith.constant 0 : i32
    %c0_i32_1 = arith.constant 0 : i32
    %c0_i32_2 = arith.constant 0 : i32
    return %c0_i32, %c0_i32_0, %c0_i32_1 : i32, i32, i32
  }
  func.func @transform_11(%arg0: i32) -> (i32, i32, i32) {
    %c0_i32 = arith.constant 0 : i32
    %c0_i32_0 = arith.constant 0 : i32
    %c0_i32_1 = arith.constant 0 : i32
    %c0_i32_2 = arith.constant 0 : i32
    return %c0_i32, %c0_i32_0, %c0_i32_1 : i32, i32, i32
  }
  func.func @transform_12(%arg0: i32) -> (i32, i32, i32) {
    %c0_i32 = arith.constant 0 : i32
    %c0_i32_0 = arith.constant 0 : i32
    %c0_i32_1 = arith.constant 0 : i32
    %c0_i32_2 = arith.constant 0 : i32
    return %c0_i32, %c0_i32_0, %c0_i32_1 : i32, i32, i32
  }
  func.func @transform_13(%arg0: i32) -> (i32, i32, i32) {
    %c0_i32 = arith.constant 0 : i32
    %c0_i32_0 = arith.constant 0 : i32
    %c0_i32_1 = arith.constant 0 : i32
    %c0_i32_2 = arith.constant 0 : i32
    return %c0_i32, %c0_i32_0, %c0_i32_1 : i32, i32, i32
  }
  func.func @transform_14(%arg0: i32) -> (i32, i32, i32) {
    %c0_i32 = arith.constant 0 : i32
    %c0_i32_0 = arith.constant 0 : i32
    %c0_i32_1 = arith.constant 0 : i32
    %c0_i32_2 = arith.constant 0 : i32
    return %c0_i32, %c0_i32_0, %c0_i32_1 : i32, i32, i32
  }
  func.func @transform_15(%arg0: i32) -> (i32, i32, i32) {
    %c0_i32 = arith.constant 0 : i32
    %c0_i32_0 = arith.constant 0 : i32
    %c0_i32_1 = arith.constant 0 : i32
    %c0_i32_2 = arith.constant 0 : i32
    return %c0_i32, %c0_i32_0, %c0_i32_1 : i32, i32, i32
  }
  func.func @transform_16(%arg0: i32) -> (i32, i32, i32) {
    %c0_i32 = arith.constant 0 : i32
    %c0_i32_0 = arith.constant 0 : i32
    %c0_i32_1 = arith.constant 0 : i32
    %c0_i32_2 = arith.constant 0 : i32
    return %c0_i32, %c0_i32_0, %c0_i32_1 : i32, i32, i32
  }
  func.func @transform_17(%arg0: i32) -> (i32, i32, i32) {
    %c0_i32 = arith.constant 0 : i32
    %c0_i32_0 = arith.constant 0 : i32
    %c0_i32_1 = arith.constant 0 : i32
    %c0_i32_2 = arith.constant 0 : i32
    return %c0_i32, %c0_i32_0, %c0_i32_1 : i32, i32, i32
  }
  func.func @transform_18(%arg0: i32) -> (i32, i32, i32) {
    %c0_i32 = arith.constant 0 : i32
    %c0_i32_0 = arith.constant 0 : i32
    %c0_i32_1 = arith.constant 0 : i32
    %c0_i32_2 = arith.constant 0 : i32
    return %c0_i32, %c0_i32_0, %c0_i32_1 : i32, i32, i32
  }
  func.func @transform_19(%arg0: i32) -> (i32, i32, i32, i32) {
    %c0_i32 = arith.constant 0 : i32
    %c0_i32_0 = arith.constant 0 : i32
    %c0_i32_1 = arith.constant 0 : i32
    %c0_i32_2 = arith.constant 0 : i32
    %c0_i32_3 = arith.constant 0 : i32
    return %c0_i32, %c0_i32_0, %c0_i32_1, %c0_i32_2 : i32, i32, i32, i32
  }
  func.func @transform_20(%arg0: i32) -> (i32, i32, i32) {
    %c0_i32 = arith.constant 0 : i32
    %c0_i32_0 = arith.constant 0 : i32
    %c0_i32_1 = arith.constant 0 : i32
    %c0_i32_2 = arith.constant 0 : i32
    return %c0_i32, %c0_i32_0, %c0_i32_1 : i32, i32, i32
  }
  func.func @transform_21(%arg0: i32) -> (i32, i32, i32) {
    %c0_i32 = arith.constant 0 : i32
    %c0_i32_0 = arith.constant 0 : i32
    %c0_i32_1 = arith.constant 0 : i32
    %c0_i32_2 = arith.constant 0 : i32
    return %c0_i32, %c0_i32_0, %c0_i32_1 : i32, i32, i32
  }
  func.func @transform_22(%arg0: i32) -> (i32, i32, i32) {
    %c0_i32 = arith.constant 0 : i32
    %c0_i32_0 = arith.constant 0 : i32
    %c0_i32_1 = arith.constant 0 : i32
    %c0_i32_2 = arith.constant 0 : i32
    return %c0_i32, %c0_i32_0, %c0_i32_1 : i32, i32, i32
  }
  func.func @transform_23(%arg0: i32) -> (i32, i32, i32) {
    %c0_i32 = arith.constant 0 : i32
    %c0_i32_0 = arith.constant 0 : i32
    %c0_i32_1 = arith.constant 0 : i32
    %c0_i32_2 = arith.constant 0 : i32
    return %c0_i32, %c0_i32_0, %c0_i32_1 : i32, i32, i32
  }
  func.func @transform_24(%arg0: i32) -> (i32, i32, i32) {
    %c0_i32 = arith.constant 0 : i32
    %c0_i32_0 = arith.constant 0 : i32
    %c0_i32_1 = arith.constant 0 : i32
    %c0_i32_2 = arith.constant 0 : i32
    return %c0_i32, %c0_i32_0, %c0_i32_1 : i32, i32, i32
  }
  func.func @transform_25(%arg0: i32) -> (i32, i32) {
    %c0_i32 = arith.constant 0 : i32
    %c0_i32_0 = arith.constant 0 : i32
    %c0_i32_1 = arith.constant 0 : i32
    return %c0_i32, %c0_i32_0 : i32, i32
  }
  func.func @transform_26(%arg0: i32) -> (i32, i32) {
    %c0_i32 = arith.constant 0 : i32
    %c0_i32_0 = arith.constant 0 : i32
    %c0_i32_1 = arith.constant 0 : i32
    return %c0_i32, %c0_i32_0 : i32, i32
  }
  func.func @transform_27(%arg0: i32) -> (i32, i32) {
    %c0_i32 = arith.constant 0 : i32
    %c0_i32_0 = arith.constant 0 : i32
    %c0_i32_1 = arith.constant 0 : i32
    return %c0_i32, %c0_i32_0 : i32, i32
  }
  func.func @transform_28(%arg0: i32) -> (i32, i32) {
    %c0_i32 = arith.constant 0 : i32
    %c0_i32_0 = arith.constant 0 : i32
    %c0_i32_1 = arith.constant 0 : i32
    return %c0_i32, %c0_i32_0 : i32, i32
  }
  func.func @transform_29(%arg0: i32) -> (i32, i32) {
    %c0_i32 = arith.constant 0 : i32
    %c0_i32_0 = arith.constant 0 : i32
    %c0_i32_1 = arith.constant 0 : i32
    return %c0_i32, %c0_i32_0 : i32, i32
  }
  func.func @transform_30(%arg0: i32) -> (i32, i32) {
    %c0_i32 = arith.constant 0 : i32
    %c0_i32_0 = arith.constant 0 : i32
    %c0_i32_1 = arith.constant 0 : i32
    return %c0_i32, %c0_i32_0 : i32, i32
  }
  func.func @transform_31(%arg0: i32) -> (i32, i32) {
    %c0_i32 = arith.constant 0 : i32
    %c0_i32_0 = arith.constant 0 : i32
    %c0_i32_1 = arith.constant 0 : i32
    return %c0_i32, %c0_i32_0 : i32, i32
  }
  func.func @transform_32(%arg0: i32) -> (i32, i32) {
    %c0_i32 = arith.constant 0 : i32
    %c0_i32_0 = arith.constant 0 : i32
    %c0_i32_1 = arith.constant 0 : i32
    return %c0_i32, %c0_i32_0 : i32, i32
  }
  func.func @transform_33(%arg0: i32) -> (i32, i32) {
    %c0_i32 = arith.constant 0 : i32
    %c0_i32_0 = arith.constant 0 : i32
    %c0_i32_1 = arith.constant 0 : i32
    return %c0_i32, %c0_i32_0 : i32, i32
  }
  func.func @transform_34(%arg0: i32) -> (i32, i32, i32) {
    %c0_i32 = arith.constant 0 : i32
    %c0_i32_0 = arith.constant 0 : i32
    %c0_i32_1 = arith.constant 0 : i32
    %c0_i32_2 = arith.constant 0 : i32
    return %c0_i32, %c0_i32_0, %c0_i32_1 : i32, i32, i32
  }
  func.func @transform_35(%arg0: i32) -> (i32, i32) {
    %c0_i32 = arith.constant 0 : i32
    %c0_i32_0 = arith.constant 0 : i32
    %c0_i32_1 = arith.constant 0 : i32
    return %c0_i32, %c0_i32_0 : i32, i32
  }
  func.func @transform_36(%arg0: i32) -> (i32, i32) {
    %c0_i32 = arith.constant 0 : i32
    %c0_i32_0 = arith.constant 0 : i32
    %c0_i32_1 = arith.constant 0 : i32
    return %c0_i32, %c0_i32_0 : i32, i32
  }
  func.func @transform_37(%arg0: i32) -> (i32, i32, i32) {
    %c0_i32 = arith.constant 0 : i32
    %c0_i32_0 = arith.constant 0 : i32
    %c0_i32_1 = arith.constant 0 : i32
    return %arg0, %c0_i32, %c0_i32_0 : i32, i32, i32
  }
}

</mosaic_0001>

<bundles_post_ra>
// kernel: attention_module3_forward.1
= control target key start
LH: loop header
LB: loop body
LE: loop exit
PB: predicated region body
PF: predicated region fallthrough
CT: control target
= control target key end

     0   :  { %s9260_s6 = smov 1   ;;  %s9261_s10 = smov 2   ;;  %s10646_s0 = inlined_call_operand.smem [shape: u32[38], index: -1, kind: input, shape index: {}] }
   0x1   :  { %s9308_s5 = sld [smem:[%s10646_s0]]   ;;  %s9262_s14 = smov 3  }
   0x2   :  { %s9313_s9 = sld [smem:[%s10646_s0 + %s9260_s6]]   ;;  %s9263_s18 = smov 4  }
   0x3   :  { %s9318_s13 = sld [smem:[%s10646_s0 + %s9261_s10]]   ;;  %s9264_s22 = smov 5  }
   0x4   :  { %s9323_s17 = sld [smem:[%s10646_s0 + %s9262_s14]]   ;;  %s9265_s26 = smov 6  }
   0x5   :  { %s9328_s21 = sld [smem:[%s10646_s0 + %s9263_s18]]   ;;  %s9266_s30 = smov 7  }
   0x6   :  { %s9333_s25 = sld [smem:[%s10646_s0 + %s9264_s22]]   ;;  %s9267_s4 = smov 8  }
   0x7   :  { %s9338_s29 = sld [smem:[%s10646_s0 + %s9265_s26]]   ;;  %s9268_s10 = smov 9  }
   0x8   :  { %s9343_s3 = sld [smem:[%s10646_s0 + %s9266_s30]]   ;;  %s9269_s15 = smov 10  }
   0x9   :  { %s9348_s8 = sld [smem:[%s10646_s0 + %s9267_s4]]   ;;  %s9270_s20 = smov 11  }
   0xa   :  { %s9353_s14 = sld [smem:[%s10646_s0 + %s9268_s10]]   ;;  %s9271_s26 = smov 12  }
   0xb   :  { %s9358_s19 = sld [smem:[%s10646_s0 + %s9269_s15]]   ;;  %s9272_s1 = smov 13  }
   0xc   :  { %s9363_s24 = sld [smem:[%s10646_s0 + %s9270_s20]]   ;;  %s9273_s7 = smov 14  }
   0xd   :  { %s9368_s30 = sld [smem:[%s10646_s0 + %s9271_s26]]   ;;  %s9274_s15 = smov 15  }
   0xe   :  { %s9373_s6 = sld [smem:[%s10646_s0 + %s9272_s1]]   ;;  %s9275_s22 = smov 16  }
   0xf   :  { %s9378_s12 = sld [smem:[%s10646_s0 + %s9273_s7]]   ;;  %s9276_s28 = smov 17  }
  0x10   :  { %s9383_s20 = sld [smem:[%s10646_s0 + %s9274_s15]]   ;;  %s9277_s7 = smov 18  }
  0x11   :  { %s9388_s27 = sld [smem:[%s10646_s0 + %s9275_s22]]   ;;  %s9278_s15 = smov 19  }
  0x12   :  { %s9393_s4 = sld [smem:[%s10646_s0 + %s9276_s28]]   ;;  %s9279_s22 = smov 20  }
  0x13   :  { %s9280_s28 = smov 21  }
  0x14   :  { %10667 = sst [smem:[#allocation2_spill]] %s9373_s6 }
  0x15   :  { %10668 = sst [smem:[#allocation3_spill]] %s9378_s12 }
  0x16   :  { %10669 = sst [smem:[#allocation4_spill]] %s9383_s20 }
  0x17   :  { %10670 = sst [smem:[#allocation5_spill]] %s9388_s27 }
  0x18   :  { %10671 = sst [smem:[#allocation6_spill]] %s9393_s4 }
  0x19   :  { %s9398_s12 = sld [smem:[%s10646_s0 + %s9277_s7]]   ;;  %s9281_s7 = smov 22  }
  0x1a   :  { %s9403_s6 = sld [smem:[%s10646_s0 + %s9278_s15]]   ;;  %s9282_s15 = smov 23  }
  0x1b   :  { %s9408_s27 = sld [smem:[%s10646_s0 + %s9279_s22]]   ;;  %s9283_s22 = smov 24  }
  0x1c   :  { %s9413_s4 = sld [smem:[%s10646_s0 + %s9280_s28]]   ;;  %s9284_s28 = smov 25  }
  0x1f   :  { %10672 = sst [smem:[#allocation7_spill]] %s9398_s12 }
  0x20   :  { %10673 = sst [smem:[#allocation8_spill]] %s9403_s6 }
  0x21   :  { %10674 = sst [smem:[#allocation9_spill]] %s9408_s27 }
  0x22   :  { %10675 = sst [smem:[#allocation10_spill]] %s9413_s4 }
  0x23   :  { %s9418_s12 = sld [smem:[%s10646_s0 + %s9281_s7]]   ;;  %s9285_s7 = smov 26  }
  0x24   :  { %s9423_s6 = sld [smem:[%s10646_s0 + %s9282_s15]]   ;;  %s9286_s15 = smov 27  }
  0x25   :  { %s9428_s27 = sld [smem:[%s10646_s0 + %s9283_s22]]   ;;  %s9287_s22 = smov 28  }
  0x26   :  { %s9433_s4 = sld [smem:[%s10646_s0 + %s9284_s28]]   ;;  %s9288_s28 = smov 29  }
  0x29   :  { %10676 = sst [smem:[#allocation11_spill]] %s9418_s12 }
  0x2a   :  { %10677 = sst [smem:[#allocation12_spill]] %s9423_s6 }
  0x2b   :  { %10678 = sst [smem:[#allocation13_spill]] %s9428_s27 }
  0x2c   :  { %10679 = sst [smem:[#allocation14_spill]] %s9433_s4 }
  0x2d   :  { %s9438_s12 = sld [smem:[%s10646_s0 + %s9285_s7]]   ;;  %s9289_s7 = smov 30  }
  0x2e   :  { %s9443_s6 = sld [smem:[%s10646_s0 + %s9286_s15]]   ;;  %s9290_s15 = smov 31  }
  0x2f   :  { %s9448_s27 = sld [smem:[%s10646_s0 + %s9287_s22]]   ;;  %s9291_s22 = smov 32  }
  0x30   :  { %s9453_s4 = sld [smem:[%s10646_s0 + %s9288_s28]]   ;;  %s9292_s28 = smov 33  }
  0x33   :  { %10680 = sst [smem:[#allocation15_spill]] %s9438_s12 }
  0x34   :  { %10681 = sst [smem:[#allocation16_spill]] %s9443_s6 }
  0x35   :  { %10682 = sst [smem:[#allocation17_spill]] %s9448_s27 }
  0x36   :  { %10683 = sst [smem:[#allocation18_spill]] %s9453_s4 }
  0x37   :  { %s9458_s12 = sld [smem:[%s10646_s0 + %s9289_s7]]   ;;  %s9293_s7 = smov 34  }
  0x38   :  { %s9463_s6 = sld [smem:[%s10646_s0 + %s9290_s15]]   ;;  %s9294_s15 = smov 35  }
  0x39   :  { %s9468_s27 = sld [smem:[%s10646_s0 + %s9291_s22]]   ;;  %s9295_s22 = smov 36  }
  0x3a   :  { %s9473_s4 = sld [smem:[%s10646_s0 + %s9292_s28]]   ;;  %s9296_s28 = smov 37  }
  0x3b   :  { %s9493_s20 = sld [smem:[%s10646_s0 + %s9296_s28]]  }
  0x3d   :  { %10684 = sst [smem:[#allocation19_spill]] %s9458_s12 }
  0x3e   :  { %10685 = sst [smem:[#allocation20_spill]] %s9463_s6 }
  0x3f   :  { %10686 = sst [smem:[#allocation21_spill]] %s9468_s27 }
  0x40   :  { %10687 = sst [smem:[#allocation22_spill]] %s9473_s4 }
  0x41   :  { %s9478_s12 = sld [smem:[%s10646_s0 + %s9293_s7]]   ;;  %s9495_s7 = smov 0  }
  0x42   :  { %s9483_s6 = sld [smem:[%s10646_s0 + %s9294_s15]]  }
  0x43   :  { %s9488_s27 = sld [smem:[%s10646_s0 + %s9295_s22]]  }
  0x44 LB: > { %s6677_s10 = sadd.s32 4294967295, %s9258_s7   ;;  %p6681_p0 = scmp.ge.s32.totalorder %s9258_s7, 1  ;;  %s9258_s7 = sphi %s9495_s7, %s85_s7  }
  0x45   : > { %p1025_p1 = scmp.lt.s32.totalorder %s9258_s7, 3 }
  0x47   : > { %p1026_p2 = pnand %p6681_p0, %p1025_p1 }
  0x48   : > { %v1183_v0 = vld [vmem:[%s9323_s17 + $0x80] sm:$0xff] (!%p1026_p2)  ;;  %v1184_v1 = vld [vmem:[%s9323_s17 + $0x88] sm:$0xff] (!%p1026_p2)  ;;  %p1117_p3 = scmp.lt.s32.totalorder (!%p1026_p2), %s6677_s10, 1  ;;  %v1133_v3 = vlaneseq (!%p1026_p2)  ;;  %v1185_v6 = vld [vmem:[%s9323_s17 + $0x90] sm:$0xff] (!%p1026_p2)  ;;  %vm1303_vm0 = vcmask (!%p1026_p2), 1040384   ;;  %vm1330_vm1 = vcmask (!%p1026_p2), 1046528  }
  0x49   : > { %1029 = sbr.rel (%p1026_p2) target bundleno = 6651 (0x19fb), region = 168  ;;  %v1167_v2 = vld [vmem:[%s9323_s17] sm:$0xff] (!%p1026_p2)  ;;  %v8336_v4 = vpack.c.bf16 (!%p1026_p2), %v1184_v1, %v1183_v0  ;;  %v1168_v5 = vld [vmem:[%s9323_s17 + $0x8] sm:$0xff] (!%p1026_p2)  ;;  %v1186_v7 = vld [vmem:[%s9323_s17 + $0x98] sm:$0xff] (!%p1026_p2)  ;;  %vm1336_vm2 = vcmask (!%p1026_p2), 523264   ;;  %vm1504_vm3 = vcmask (!%p1026_p2), 1045504  }
  0x4a   : > { %v8338_v8 = vpack.c.bf16 (!%p1026_p2), %v1168_v5, %v1167_v2  ;;  %v8340_v9 = vpack.c.bf16 (!%p1026_p2), %v1186_v7, %v1185_v6  ;;  %v1169_v10 = vld [vmem:[%s9323_s17 + $0x10] sm:$0xff] (!%p1026_p2)  ;;  %v1170_v11 = vld [vmem:[%s9323_s17 + $0x18] sm:$0xff] (!%p1026_p2)  ;;  %v1187_v12 = vld [vmem:[%s9323_s17 + $0xa0] sm:$0xff] (!%p1026_p2)  ;;  %v1134_v15 = vshrl.u32 (!%p1026_p2), %v1133_v3, 7  ;;  %s10688_s4 = sld [smem:[#allocation22_spill]] (!%p1026_p2)  ;;  %vm3020_vm4 = vcmask (!%p1026_p2), 130048  }
  0x4b   : > { %8337 = vmatprep.subr.bf16.mxu0 (!%p1026_p2), %v8336_v4  ;;  %v1188_v13 = vld [vmem:[%s9323_s17 + $0xa8] sm:$0xff] (!%p1026_p2)  ;;  %v8342_v14 = vpack.c.bf16 (!%p1026_p2), %v1170_v11, %v1169_v10  ;;  %v1171_v17 = vld [vmem:[%s9323_s17 + $0x20] sm:$0xff] (!%p1026_p2)  ;;  %v1189_v19 = vld [vmem:[%s9323_s17 + $0xb0] sm:$0xff] (!%p1026_p2)  ;;  %s10689_s15 = sld [smem:[#allocation4_spill]] (!%p1026_p2)  ;;  %vm9299_vm5 = vmmov (!%p1026_p2), 0   ;;  %s10690_s16 = sld [smem:[#allocation2_spill]] (!%p1026_p2) }
  0x4c   : > { %8339 = vmatpush3.bf16.msra.mxu0 (!%p1026_p2), %v8338_v8  ;;  %v8344_v16 = vpack.c.bf16 (!%p1026_p2), %v1188_v13, %v1187_v12  ;;  %v1172_v18 = vld [vmem:[%s9323_s17 + $0x28] sm:$0xff] (!%p1026_p2)  ;;  %v1190_v20 = vld [vmem:[%s9323_s17 + $0xb8] sm:$0xff] (!%p1026_p2)  ;;  %v9525_v22 = vsub.s32 (!%p1026_p2), 1, %v1134_v15  ;;  %v1173_v24 = vld [vmem:[%s9323_s17 + $0x30] sm:$0xff] (!%p1026_p2)  ;;  %v9543_v40 = vsub.s32 (!%p1026_p2), 0, %v1134_v15  ;;  %s10691_s18 = sld [smem:[#allocation3_spill]] (!%p1026_p2) }
  0x4d   : > { %8341 = vmatprep.subr.bf16.mxu0 (!%p1026_p2), %v8340_v9  ;;  %v8346_v21 = vpack.c.bf16 (!%p1026_p2), %v1172_v18, %v1171_v17  ;;  %v8348_v23 = vpack.c.bf16 (!%p1026_p2), %v1190_v20, %v1189_v19  ;;  %v1174_v25 = vld [vmem:[%s9323_s17 + $0x38] sm:$0xff] (!%p1026_p2)  ;;  %v1191_v26 = vld [vmem:[%s9323_s17 + $0xc0] sm:$0xff] (!%p1026_p2)  ;;  %v1192_v27 = vld [vmem:[%s9323_s17 + $0xc8] sm:$0xff] (!%p1026_p2)  ;;  %s10692_s22 = sld [smem:[#allocation8_spill]] (!%p1026_p2)  ;;  %s10693_s23 = sld [smem:[#allocation5_spill]] (!%p1026_p2)  ;;  %vm3551_vm6 = vcmask (!%p1026_p2), 261120  }
  0x4e   : > { %v1131_v29 = vld [vmem:[%s9313_s9] sm:$0x3] (!%p1026_p2)  ;;  %v8350_v31 = vpack.c.bf16 (!%p1026_p2), %v1174_v25, %v1173_v24  ;;  %v8352_v34 = vpack.c.bf16 (!%p1026_p2), %v1192_v27, %v1191_v26  ;;  %v1176_v36 = vld [vmem:[%s9323_s17 + $0x48] sm:$0xff] (!%p1026_p2)  ;;  %v1193_v37 = vld [vmem:[%s9323_s17 + $0xd0] sm:$0xff] (!%p1026_p2)  ;;  %s10694_s26 = sld [smem:[#allocation6_spill]] (!%p1026_p2)  ;;  %s10695_s28 = sld [smem:[#allocation7_spill]] (!%p1026_p2) }
  0x4f   : > { %v1147_v30 = vld [vmem:[%s9318_s13] sm:$0x3] (!%p1026_p2)  ;;  %v1140_v32 = vrot.slane (!%p1026_p2), %v1131_v29, %v9525_v22  ;;  %v1194_v38 = vld [vmem:[%s9323_s17 + $0xd8] sm:$0xff] (!%p1026_p2)  ;;  %v1177_v44 = vld [vmem:[%s9323_s17 + $0x50] sm:$0xff] (!%p1026_p2)  ;;  %v1136_v49 = vrot.slane (!%p1026_p2), %v1131_v29, %v9543_v40  ;;  %s10696_s1 = sld [smem:[#allocation12_spill]] (!%p1026_p2)  ;;  %s10697_s2 = sld [smem:[#allocation9_spill]] (!%p1026_p2) }
  0x50   : > { %s10711_s10 = smov (!%p1117_p3, %s6677_s10), 1  ;;  %8343 = vmatpush3.bf16.msra.mxu0 %v8342_v14  ;;  %v1156_v33 = vrot.slane %v1147_v30, %v9525_v22  ;;  %v1175_v35 = vld [vmem:[%s9323_s17 + $0x40] sm:$0xff]  ;;  %v8356_v43 = vpack.c.bf16 %v1194_v38, %v1193_v37  ;;  %v1178_v45 = vld [vmem:[%s9323_s17 + $0x58] sm:$0xff]  ;;  %v1196_v47 = vld [vmem:[%s9323_s17 + $0xe8] sm:$0xff]  ;;  %v1152_v58 = vrot.slane %v1147_v30, %v9543_v40  ;;  %vm5368_vm7 = vcmask 64512  }
  0x51   : > { %s10661_s0 = sshll.u32 %s10711_s10, 5  ;;  %8345 = vmatprep.subr.bf16.mxu0 %v8344_v16  ;;  %v8354_v41 = vpack.c.bf16 %v1176_v36, %v1175_v35  ;;  %v1195_v46 = vld [vmem:[%s9323_s17 + $0xe0] sm:$0xff]  ;;  %v8358_v50 = vpack.c.bf16 %v1178_v45, %v1177_v44  ;;  %v1180_v54 = vld [vmem:[%s9323_s17 + $0x68] sm:$0xff]  ;;  %v1197_v56 = vld [vmem:[%s9323_s17 + $0xf0] sm:$0xff] }
  0x52   : > { %s9523_s11 = scalar_lea.vmem %s9308_s5, %s10661_s0  ;;  %v8360_v52 = vpack.c.bf16 %v1196_v47, %v1195_v46  ;;  %v1179_v53 = vld [vmem:[%s9323_s17 + $0x60] sm:$0xff]  ;;  %v1198_v57 = vld [vmem:[%s9323_s17 + $0xf8] sm:$0xff]  ;;  %v1181_v0 = vld [vmem:[%s9323_s17 + $0x70] sm:$0xff]  ;;  %s10699_s0 = sld [smem:[#allocation11_spill]] }
  0x53   : > { %v9532_v28 = vld [vmem:[%s9523_s11 + $0x8] sm:$0xff]  ;;  %v9551_v51 = vld [vmem:[%s9523_s11] sm:$0xff]  ;;  %v9556_v55 = vld [vmem:[%s9523_s11 + $0x18] sm:$0xff]  ;;  %v8362_v60 = vpack.c.bf16 %v1180_v54, %v1179_v53  ;;  %v8364_v63 = vpack.c.bf16 %v1198_v57, %v1197_v56 }
  0x54   : > { %8347 = vmatpush3.bf16.msra.mxu0 %v8346_v21  ;;  %v1144_v39 = vmul.f32 %v1140_v32, %v9532_v28  ;;  %v1143_v59 = vmul.f32 %v1136_v49, %v9551_v51  ;;  %v1146_v61 = vmul.f32 %v1140_v32, %v9556_v55  ;;  %v9564_v62 = vld [vmem:[%s9523_s11 + $0x10] sm:$0xff]  ;;  %v1182_v1 = vld [vmem:[%s9323_s17 + $0x78] sm:$0xff]  ;;  %v6689_v10 = vld [vmem:[%s9343_s3 + $0x40] sm:$0xff]  ;;  %s10698_s11 = sld [smem:[#allocation10_spill]] }
  0x55   : > { %8349 = vmatprep.subr.bf16.mxu0 %v8348_v23  ;;  %v1145_v3 = vmul.f32 %v1136_v49, %v9564_v62  ;;  %v8366_v4 = vpack.c.bf16 %v1182_v1, %v1181_v0  ;;  %v6690_v11 = vld [vmem:[%s9343_s3 + $0x48] sm:$0xff]  ;;  %v6691_v13 = vld [vmem:[%s9343_s3 + $0x50] sm:$0xff]  ;;  %v6692_v14 = vld [vmem:[%s9343_s3 + $0x58] sm:$0xff] }
  0x56   : > { %v1160_v42 = vadd.f32 %v1156_v33, %v1144_v39  ;;  %v1159_v2 = vadd.f32 %v1152_v58, %v1143_v59  ;;  %v1162_v5 = vadd.f32 %v1156_v33, %v1146_v61  ;;  %v8368_v12 = vpack.c.bf16 %v6690_v11, %v6689_v10  ;;  %v6693_v16 = vld [vmem:[%s9343_s3 + $0x60] sm:$0xff]  ;;  %v6694_v17 = vld [vmem:[%s9343_s3 + $0x68] sm:$0xff]  ;;  %v6695_v19 = vld [vmem:[%s9343_s3 + $0x70] sm:$0xff] }
  0x57   : > { %v1161_v7 = vadd.f32 %v1152_v58, %v1145_v3  ;;  %v8372_v15 = vpack.c.bf16 %v6692_v14, %v6691_v13  ;;  %v8376_v18 = vpack.c.bf16 %v6694_v17, %v6693_v16  ;;  %v6696_v20 = vld [vmem:[%s9343_s3 + $0x78] sm:$0xff]  ;;  %v1311_v23 = vld [vmem:[%s9343_s3] sm:$0xff]  ;;  %v1312_v24 = vld [vmem:[%s9343_s3 + $0x8] sm:$0xff] }
  0x58   : > { %8351 = vmatpush3.bf16.msra.mxu0 %v8350_v31  ;;  %v1164_v48 = vmax.f32 %v1160_v42, 0.0  ;;  %v1163_v6 = vmax.f32 %v1159_v2, 0.0  ;;  %v1166_v8 = vmax.f32 %v1162_v5, 0.0  ;;  %8369 = vmatprep.subr.bf16.mxu1 %v8368_v12  ;;  %v8380_v21 = vpack.c.bf16 %v6696_v20, %v6695_v19  ;;  %v6686_v27 = vld [vmem:[%s9328_s21] ss:$0 sm:$0xff]  ;;  %v1314_v49 = vld [vmem:[%s9343_s3 + $0x18] sm:$0xff] }
  0x59   : > { %8353 = vmatprep.subr.bf16.mxu0 %v8352_v34  ;;  %v1165_v9 = vmax.f32 %v1161_v7, 0.0  ;;  %8371 = vmatpush3.bf16.msra.mxu1 %v8368_v12  ;;  %v8384_v25 = vpack.c.bf16 %v1312_v24, %v1311_v23  ;;  %v6687_v31 = vld [vmem:[%s9333_s25] ss:$0 sm:$0xff]  ;;  %v1316_v3 = vld [vmem:[%s9343_s3 + $0x28] sm:$0xff]  ;;  %v1317_v5 = vld [vmem:[%s9343_s3 + $0x30] sm:$0xff] }
  0x5a   : > { %1270 = vmatprep.mubr.f32.mxu0 %v1164_v48  ;;  %8373 = vmatprep.subr.bf16.mxu1 %v8372_v15  ;;  %v6688_v34 = vld [vmem:[%s9338_s29] ss:$0 sm:$0xff]  ;;  %v1313_v48 = vld [vmem:[%s9343_s3 + $0x10] sm:$0xff]  ;;  %v6704_v12 = vld [vmem:[%s9343_s3 + $0x98] sm:$0xff] }
  0x5b   : > { %v1315_v2 = vld [vmem:[%s9343_s3 + $0x20] sm:$0xff]  ;;  %v6703_v11 = vld [vmem:[%s9343_s3 + $0x90] sm:$0xff]  ;;  %v1621_v20 = vld [vmem:[%s9363_s24 + $0x8] sm:$0xff] }
  0x5c   : > { %8355 = vmatpush3.bf16.msra.mxu0 %v8354_v41  ;;  %v8404_v13 = vpack.c.bf16 %v6704_v12, %v6703_v11  ;;  %v6705_v14 = vld [vmem:[%s9343_s3 + $0xa0] sm:$0xff]  ;;  %v6707_v17 = vld [vmem:[%s9343_s3 + $0xb0] sm:$0xff]  ;;  %v6743_v11 = vld [vmem:[%s9323_s17 + $0x1c8] sm:$0xff] }
  0x5d   : > { %8357 = vmatprep.subr.bf16.mxu0 %v8356_v43  ;;  %8375 = vmatpush3.bf16.msra.mxu1 %v8372_v15  ;;  %v6706_v15 = vld [vmem:[%s9343_s3 + $0xa8] sm:$0xff]  ;;  %v1620_v24 = vld [vmem:[%s9363_s24] sm:$0xff] }
  0x5e   : > { %8377 = vmatprep.subr.bf16.mxu1 %v8376_v18  ;;  %v8408_v16 = vpack.c.bf16 %v6706_v15, %v6705_v14  ;;  %v6726_v14 = vld [vmem:[%s9323_s17 + $0x140] sm:$0xff]  ;;  %v6727_v15 = vld [vmem:[%s9323_s17 + $0x148] sm:$0xff] }
  0x60   : > { %8359 = vmatpush3.bf16.msra.mxu0 %v8358_v50 }
  0x61   : > { %8361 = vmatprep.subr.bf16.mxu0 %v8360_v52  ;;  %8379 = vmatpush3.bf16.msra.mxu1 %v8376_v18  ;;  %v6708_v18 = vld [vmem:[%s9343_s3 + $0xb8] sm:$0xff] }
  0x62   : > { %8381 = vmatprep.subr.bf16.mxu1 %v8380_v21  ;;  %v8412_v19 = vpack.c.bf16 %v6708_v18, %v6707_v17  ;;  %v6711_v17 = vld [vmem:[%s9348_s8] ss:$0 sm:$0xff] }
  0x64   : > { %8363 = vmatpush3.bf16.msra.mxu0 %v8362_v60  ;;  %v8388_v60 = vpack.c.bf16 %v1314_v49, %v1313_v48  ;;  %v6734_v48 = vld [vmem:[%s9323_s17 + $0x180] sm:$0xff]  ;;  %v6735_v49 = vld [vmem:[%s9323_s17 + $0x188] sm:$0xff] }
  0x65   : > { %8365 = vmatprep.subr.bf16.mxu0 %v8364_v63  ;;  %8383 = vmatpush3.bf16.msra.mxu1 %v8380_v21  ;;  %v1623_v21 = vld [vmem:[%s9363_s24 + $0x18] sm:$0xff] }
  0x66   : > { %8385 = vmatprep.subr.bf16.mxu1 %v8384_v25  ;;  %v8416_v23 = vpack.c.bf16 %v1623_v21, %v1621_v20  ;;  %v6712_v20 = vld [vmem:[%s9353_s14] ss:$0 sm:$0xff] }
  0x68   : > { %8367 = vmatpush3.bf16.msra.mxu0 %v8366_v4  ;;  %v8392_v4 = vpack.c.bf16 %v1316_v3, %v1315_v2  ;;  %v6722_v2 = vld [vmem:[%s9323_s17 + $0x120] sm:$0xff]  ;;  %v6723_v3 = vld [vmem:[%s9323_s17 + $0x128] sm:$0xff] }
  0x6b   : > { %1271 = vmatmul.mubr.f32.vlgmr.msra.gmra.mrb[0].mxu0 %v1163_v6  ;;  %v1318_v6 = vld [vmem:[%s9343_s3 + $0x38] sm:$0xff] }
  0x6c   : > { %1275 = vmatprep.mubr.f32.mxu0 %v1166_v8  ;;  %v8396_v7 = vpack.c.bf16 %v1318_v6, %v1317_v5  ;;  %v6701_v8 = vld [vmem:[%s9343_s3 + $0x80] sm:$0xff]  ;;  %v6741_v5 = vld [vmem:[%s9323_s17 + $0x1b8] sm:$0xff]  ;;  %v8442_v6 = vpack.c.bf16 %v6723_v3, %v6722_v2 }
  0x6f   : > { %1276 = vmatmul.mubr.f32.gmra.mrb[2].mxu0 %v1165_v9  ;;  %v6702_v9 = vld [vmem:[%s9343_s3 + $0x88] sm:$0xff] }
  0x70   : > { %v8400_v10 = vpack.c.bf16 %v6702_v9, %v6701_v8  ;;  %v6724_v8 = vld [vmem:[%s9323_s17 + $0x130] sm:$0xff]  ;;  %v6725_v9 = vld [vmem:[%s9323_s17 + $0x138] sm:$0xff] }
  0x71   : > { %v8446_v12 = vpack.c.bf16 %v6725_v9, %v6724_v8 }
 0x13e   : > { %v7291_v26 = vpop.f32.mrb[0].mxu0 }
 0x13f   : > { %v7292_v29 = vpop.f32.mrb[1].mxu0 }
 0x140   : > { %v7293_v30 = vadd.f32 %v7292_v29, %v7291_v26  ;;  %v1625_v26 = vld [vmem:[%s9363_s24 + $0x28] sm:$0xff] }
 0x142   : > { %v1273_v32 = vadd.f32 %v7293_v30, %v6686_v27  ;;  %v7294_v33 = vpop.f32.mrb[2].mxu0 }
 0x143   : > { %v7295_v35 = vpop.f32.mrb[3].mxu0 }
 0x144   : > { %v1288_v36 = vmul.f32 %v6687_v31, %v1273_v32  ;;  %v7296_v37 = vadd.f32 %v7295_v35, %v7294_v33  ;;  %v1626_v32 = vld [vmem:[%s9363_s24 + $0x30] sm:$0xff]  ;;  %v1631_v35 = vld [vmem:[%s9363_s24 + $0x58] sm:$0xff] }
 0x146   : > { %v1297_v38 = vadd.f32 %v6688_v34, %v1288_v36  ;;  %v1278_v39 = vadd.f32 %v7296_v37, %v6686_v27  ;;  %v1627_v27 = vld [vmem:[%s9363_s24 + $0x38] sm:$0xff]  ;;  %v1628_v37 = vld [vmem:[%s9363_s24 + $0x40] sm:$0xff] }
 0x147   : > { %v8420_v30 = vpack.c.bf16 %v1627_v27, %v1625_v26 }
 0x148   : > { %v1299_v41 = vmax.f32 %v1297_v38, 0.0  ;;  %v1289_v42 = vmul.f32 %v6687_v31, %v1278_v39  ;;  %v1624_v31 = vld [vmem:[%s9363_s24 + $0x20] sm:$0xff]  ;;  %v1630_v38 = vld [vmem:[%s9363_s24 + $0x50] sm:$0xff] }
 0x149   : > { %v8422_v33 = vpack.c.bf16 %v1626_v32, %v1624_v31  ;;  %v8426_v39 = vpack.c.bf16 %v1630_v38, %v1628_v37  ;;  %v6744_v32 = vld [vmem:[%s9323_s17 + $0x1d0] sm:$0xff]  ;;  %v6746_v38 = vld [vmem:[%s9323_s17 + $0x1e0] sm:$0xff] }
 0x14a   : > { %v1304_v43 = vrot.slane %v1299_v41, 7  ;;  %v1298_v44 = vadd.f32 %v6688_v34, %v1289_v42  ;;  %v1629_v34 = vld [vmem:[%s9363_s24 + $0x48] sm:$0xff]  ;;  %v1635_v42 = vld [vmem:[%s9363_s24 + $0x78] sm:$0xff] }
 0x14b   : > { %v8424_v36 = vpack.c.bf16 %v1631_v35, %v1629_v34  ;;  %v1633_v41 = vld [vmem:[%s9363_s24 + $0x68] sm:$0xff]  ;;  %v6728_v35 = vld [vmem:[%s9323_s17 + $0x150] sm:$0xff] }
 0x14c   : > { %v1300_v45 = vmax.f32 %v1298_v44, 0.0  ;;  %v1309_v46 = vsel %vm1303_vm0, 0.0, %v1304_v43  ;;  %v1632_v44 = vld [vmem:[%s9363_s24 + $0x60] sm:$0xff] }
 0x14d   : > { %v1331_v52 = vrot.slane %v1309_v46, 1  ;;  %v1505_v54 = vrot.slane %v1309_v46, 2 }
 0x14e   : > { %v1305_v47 = vrot.slane %v1300_v45, 7  ;;  %v1634_v45 = vld [vmem:[%s9363_s24 + $0x70] sm:$0xff] }
 0x150   : > { %v1306_v50 = vsel %vm1303_vm0, %v1304_v43, %v1305_v47  ;;  %v1310_v53 = vsel %vm1303_vm0, %v1305_v47, 0.0  ;;  %v8428_v43 = vpack.c.bf16 %v1635_v42, %v1633_v41  ;;  %v9297_v47 = vmov 0.0   ;;  %v6730_v42 = vld [vmem:[%s9323_s17 + $0x160] sm:$0xff] }
 0x151   : > { %v1332_v56 = vrot.slane %v1306_v50, 1  ;;  %v1334_v57 = vrot.slane %v1310_v53, 1  ;;  %v1508_v58 = vrot.slane %v1310_v53, 2  ;;  %v1506_v59 = vrot.slane %v1306_v50, 2  ;;  %v6719_v53 = vld [vmem:[%s9323_s17 + $0x108] sm:$0xff] }
 0x153   : > { %v1333_v61 = vsel %vm1330_vm1, %v1331_v52, %v1332_v56  ;;  %v1335_v63 = vsel %vm1330_vm1, %v1332_v56, %v1334_v57  ;;  %v1507_v0 = vsel %vm1504_vm3, %v1505_v54, %v1506_v59  ;;  %v1509_v1 = vsel %vm1504_vm3, %v1506_v59, %v1508_v58  ;;  %v6736_v54 = vld [vmem:[%s9323_s17 + $0x190] sm:$0xff]  ;;  %v6737_v56 = vld [vmem:[%s9323_s17 + $0x198] sm:$0xff] }
 0x154   : > { %7803 = vmatprep.mubr.msk.f32.mxu1 %vm1336_vm2, %v1333_v61  ;;  %v8432_v52 = vpack.c.bf16 %v6735_v49, %v6734_v48  ;;  %v8436_v58 = vpack.c.bf16 %v6737_v56, %v6736_v54  ;;  %v6720_v59 = vld [vmem:[%s9323_s17 + $0x110] sm:$0xff]  ;;  %v6738_v61 = vld [vmem:[%s9323_s17 + $0x1a0] sm:$0xff] }
 0x155   : > { %7804 = vmatmul.mubr.msk.f32.vlgmr.msra.gmra.mrb[0].mxu1 %vm1336_vm2, %v1335_v63  ;;  %v6739_v63 = vld [vmem:[%s9323_s17 + $0x1a8] sm:$0xff]  ;;  %v6732_v49 = vld [vmem:[%s9323_s17 + $0x170] sm:$0xff]  ;;  %v6716_v56 = vld [vmem:[%s9313_s9 + $0x2] sm:$0x3] }
 0x156   : > { %8387 = vmatpush3.bf16.msra.mxu1 %v8384_v25  ;;  %7822 = vmatprep.mubr.msk.f32.mxu1 %vm1336_vm2, %v1309_v46  ;;  %v1622_v25 = vld [vmem:[%s9363_s24 + $0x10] sm:$0xff]  ;;  %v8430_v46 = vpack.c.bf16 %v1634_v45, %v1632_v44 }
 0x157   : > { %8389 = vmatprep.subr.bf16.mxu1 %v8388_v60  ;;  %v8418_v29 = vpack.c.bf16 %v1622_v25, %v1620_v24  ;;  %8433 = vmatprep.subr.bf16.mxu0 %v8432_v52  ;;  %v6713_v24 = vld [vmem:[%s9358_s19] ss:$0 sm:$0xff]  ;;  %v6748_v45 = vld [vmem:[%s9323_s17 + $0x1f0] sm:$0xff] }
 0x15a   : > { %8391 = vmatpush3.bf16.msra.mxu1 %v8388_v60  ;;  %v6721_v60 = vld [vmem:[%s9323_s17 + $0x118] sm:$0xff] }
 0x15b   : > { %8393 = vmatprep.subr.bf16.mxu1 %v8392_v4 }
 0x15e   : > { %8395 = vmatpush3.bf16.msra.mxu1 %v8392_v4  ;;  %v6740_v4 = vld [vmem:[%s9323_s17 + $0x1b0] sm:$0xff] }
 0x15f   : > { %8397 = vmatprep.subr.bf16.mxu1 %v8396_v7 }
 0x162   : > { %8399 = vmatpush3.bf16.msra.mxu1 %v8396_v7  ;;  %v8444_v7 = vpack.c.bf16 %v6741_v5, %v6740_v4 }
 0x163   : > { %8401 = vmatprep.subr.bf16.mxu1 %v8400_v10 }
 0x165   : > { %7823 = vmatmul.mubr.msk.f32.vlgmr.msra.gmra.mrb[0].mxu1 %vm1336_vm2, %v1306_v50  ;;  %v6718_v50 = vld [vmem:[%s9323_s17 + $0x100] sm:$0xff] }
 0x166   : > { %8403 = vmatpush3.bf16.msra.mxu1 %v8400_v10  ;;  %7841 = vmatprep.mubr.msk.f32.mxu1 %vm1336_vm2, %v1507_v0  ;;  %v8434_v57 = vpack.c.bf16 %v6719_v53, %v6718_v50  ;;  %v8438_v0 = vpack.c.bf16 %v6721_v60, %v6720_v59  ;;  %v6742_v10 = vld [vmem:[%s9323_s17 + $0x1c0] sm:$0xff]  ;;  %v6733_v50 = vld [vmem:[%s9323_s17 + $0x178] sm:$0xff]  ;;  %v1741_v60 = vrot.slane %v6716_v56, %v9543_v40 }
 0x167   : > { %8405 = vmatprep.subr.bf16.mxu1 %v8404_v13  ;;  %v8462_v52 = vpack.c.bf16 %v6733_v50, %v6732_v49  ;;  %v1636_v53 = vld [vmem:[%s9368_s30] sm:$0x3]  ;;  %v6798_v49 = vld [vmem:[%s9363_s24 + $0xb0] sm:$0xff] }
 0x168   : > { %8435 = vmatpush3.bf16.msra.mxu0 %v8434_v57  ;;  %v1641_v54 = vrot.slane %v1636_v53, %v9543_v40  ;;  %v1645_v57 = vrot.slane %v1636_v53, %v9525_v22  ;;  %v6751_v53 = vld [vmem:[%s9328_s21 + $0x1] ss:$0 sm:$0xff] }
 0x169   : > { %8437 = vmatprep.subr.bf16.mxu0 %v8436_v58 }
 0x16a   : > { %8407 = vmatpush3.bf16.msra.mxu1 %v8404_v13  ;;  %v8448_v13 = vpack.c.bf16 %v6743_v11, %v6742_v10 }
 0x16b   : > { %8409 = vmatprep.subr.bf16.mxu1 %v8408_v16 }
 0x16c   : > { %8439 = vmatpush3.bf16.msra.mxu0 %v8438_v0 }
 0x16e   : > { %8411 = vmatpush3.bf16.msra.mxu1 %v8408_v16  ;;  %v8450_v16 = vpack.c.bf16 %v6727_v15, %v6726_v14 }
 0x16f   : > { %8413 = vmatprep.subr.bf16.mxu1 %v8412_v19 }
 0x172   : > { %8415 = vmatpush3.bf16.msra.mxu1 %v8412_v19 }
 0x173   : > { %8417 = vmatprep.subr.bf16.mxu1 %v8416_v23 }
 0x175   : > { %7842 = vmatmul.mubr.msk.f32.vlgmr.msra.gmra.mrb[0].mxu1 %vm1336_vm2, %v1509_v1  ;;  %v8440_v1 = vpack.c.bf16 %v6739_v63, %v6738_v61  ;;  %v6717_v63 = vld [vmem:[%s9318_s13 + $0x2] sm:$0x3] }
 0x176   : > { %8419 = vmatpush1.bf16.msra.mxu1 %v8418_v29  ;;  %1718 = vmatprep.mubr.f32.mxu1 %v9297_v47  ;;  %v1758_v5 = vrot.slane %v6717_v63, %v9543_v40  ;;  %v1762_v9 = vrot.slane %v6717_v63, %v9525_v22 }
 0x177   : > { %8421 = vmatprep.subr.bf16.mxu1 %v8420_v30  ;;  %8441 = vmatprep.subr.bf16.mxu0 %v8440_v1  ;;  %v1745_v1 = vrot.slane %v6716_v56, %v9525_v22 }
 0x178   : > { %8443 = vmatpush3.bf16.msra.mxu0 %v8442_v6 }
 0x179   : > { %8445 = vmatprep.subr.bf16.mxu0 %v8444_v7 }
 0x17a   : > { %8423 = vmatpush1.bf16.msra.mxu1 %v8422_v33  ;;  %v6745_v33 = vld [vmem:[%s9323_s17 + $0x1d8] sm:$0xff] }
 0x17b   : > { %8425 = vmatprep.subr.bf16.mxu1 %v8424_v36  ;;  %v8452_v34 = vpack.c.bf16 %v6745_v33, %v6744_v32  ;;  %v6729_v36 = vld [vmem:[%s9323_s17 + $0x158] sm:$0xff] }
 0x17c   : > { %8447 = vmatpush3.bf16.msra.mxu0 %v8446_v12  ;;  %v8454_v37 = vpack.c.bf16 %v6729_v36, %v6728_v35  ;;  %v6771_v32 = vld [vmem:[%s9343_s3 + $0x138] sm:$0xff]  ;;  %v6757_v35 = vld [vmem:[%s9343_s3 + $0xc8] sm:$0xff] }
 0x17d   : > { %8449 = vmatprep.subr.bf16.mxu0 %v8448_v13 }
 0x17e   : > { %8427 = vmatpush1.bf16.msra.mxu1 %v8426_v39  ;;  %v6747_v39 = vld [vmem:[%s9323_s17 + $0x1e8] sm:$0xff] }
 0x17f   : > { %8429 = vmatprep.subr.bf16.mxu1 %v8428_v43  ;;  %v8456_v41 = vpack.c.bf16 %v6747_v39, %v6746_v38  ;;  %v6731_v43 = vld [vmem:[%s9323_s17 + $0x168] sm:$0xff]  ;;  %v6795_v38 = vld [vmem:[%s9363_s24 + $0x98] sm:$0xff]  ;;  %v6792_v39 = vld [vmem:[%s9363_s24 + $0x80] sm:$0xff] }
 0x180   : > { %8451 = vmatpush3.bf16.msra.mxu0 %v8450_v16  ;;  %v8458_v44 = vpack.c.bf16 %v6731_v43, %v6730_v42  ;;  %v6794_v42 = vld [vmem:[%s9363_s24 + $0x90] sm:$0xff]  ;;  %v6797_v43 = vld [vmem:[%s9363_s24 + $0xa8] sm:$0xff] }
 0x181   : > { %8453 = vmatprep.subr.bf16.mxu0 %v8452_v34  ;;  %v6756_v34 = vld [vmem:[%s9343_s3 + $0xc0] sm:$0xff] }
 0x182   : > { %8431 = vmatpush1.bf16.msra.mxu1 %v8430_v46  ;;  %v6749_v46 = vld [vmem:[%s9323_s17 + $0x1f8] sm:$0xff]  ;;  %v8480_v36 = vpack.c.bf16 %v6757_v35, %v6756_v34  ;;  %v6777_v34 = vld [vmem:[%s9343_s3 + $0x148] sm:$0xff] }
 0x183   : > { %v8460_v48 = vpack.c.bf16 %v6749_v46, %v6748_v45  ;;  %v8514_v45 = vpack.c.bf16 %v6794_v42, %v6792_v39  ;;  %v6780_v39 = vld [vmem:[%s9343_s3 + $0x160] sm:$0xff] }
 0x184   : > { %8455 = vmatpush3.bf16.msra.mxu0 %v8454_v37  ;;  %v6793_v37 = vld [vmem:[%s9363_s24 + $0x88] sm:$0xff] }
 0x185   : > { %8457 = vmatprep.subr.bf16.mxu0 %v8456_v41  ;;  %v8512_v41 = vpack.c.bf16 %v6795_v38, %v6793_v37  ;;  %v6778_v37 = vld [vmem:[%s9343_s3 + $0x150] sm:$0xff] }
 0x188   : > { %8459 = vmatpush3.bf16.msra.mxu0 %v8458_v44  ;;  %v6799_v44 = vld [vmem:[%s9363_s24 + $0xb8] sm:$0xff] }
 0x189   : > { %8461 = vmatprep.subr.bf16.mxu0 %v8460_v48  ;;  %v8516_v46 = vpack.c.bf16 %v6799_v44, %v6797_v43  ;;  %v6796_v48 = vld [vmem:[%s9363_s24 + $0xa0] sm:$0xff]  ;;  %v6782_v43 = vld [vmem:[%s9343_s3 + $0x170] sm:$0xff]  ;;  %v6783_v44 = vld [vmem:[%s9343_s3 + $0x178] sm:$0xff] }
 0x18a   : > { %v8518_v50 = vpack.c.bf16 %v6798_v49, %v6796_v48  ;;  %v6803_v48 = vld [vmem:[%s9363_s24 + $0xd8] sm:$0xff] }
 0x18c   : > { %8463 = vmatpush3.bf16.msra.mxu0 %v8462_v52 }
 0x18d   : > { %8513 = vmatprep.subr.bf16.mxu0 %v8512_v41  ;;  %v6781_v41 = vld [vmem:[%s9343_s3 + $0x168] sm:$0xff] }
 0x18e   : > { %v8504_v42 = vpack.c.bf16 %v6781_v41, %v6780_v39  ;;  %v6821_v41 = vld [vmem:[%s9323_s17 + $0x240] sm:$0xff] }
 0x248   : > { %v7843_v18 = vpop.f32.mrb[0].mxu1 }
 0x249   : > { %v1599_v19 = vadd.f32 %v7843_v18, %v6711_v17  ;;  %v1580_v21 = vpop.f32.mrb[1].mxu1 }
 0x24a   : > { %v1598_v23 = vadd.f32 %v6711_v17, %v1580_v21  ;;  %v6765_v21 = vld [vmem:[%s9343_s3 + $0x108] sm:$0xff] }
 0x24b   : > { %v1608_v25 = vmul.f32 %v6712_v20, %v1599_v19 }
 0x24c   : > { %v1607_v26 = vmul.f32 %v6712_v20, %v1598_v23  ;;  %v6764_v20 = vld [vmem:[%s9343_s3 + $0x100] sm:$0xff] }
 0x24d   : > { %v1617_v29 = vadd.f32 %v6713_v24, %v1608_v25  ;;  %v8464_v23 = vpack.c.bf16 %v6765_v21, %v6764_v20  ;;  %v6767_v25 = vld [vmem:[%s9343_s3 + $0x118] sm:$0xff] }
 0x24e   : > { %v1616_v27 = vadd.f32 %v6713_v24, %v1607_v26  ;;  %v6766_v24 = vld [vmem:[%s9343_s3 + $0x110] sm:$0xff] }
 0x24f   : > { %v1619_v31 = vmax.f32 %v1617_v29, 0.0  ;;  %8465 = vmatprep.subr.bf16.mxu1 %v8464_v23  ;;  %v8468_v26 = vpack.c.bf16 %v6767_v25, %v6766_v24  ;;  %v6769_v29 = vld [vmem:[%s9343_s3 + $0x128] sm:$0xff] }
 0x250   : > { %v1618_v30 = vmax.f32 %v1616_v27, 0.0  ;;  %v6768_v27 = vld [vmem:[%s9343_s3 + $0x120] sm:$0xff] }
 0x252   : > { %6714 = vmatmul.mubr.msk.f32.vlgmr.msra.gmra.mrb[2].mxu1 %vm1336_vm2, %v1618_v30  ;;  %v8472_v30 = vpack.c.bf16 %v6769_v29, %v6768_v27  ;;  %v6761_v27 = vld [vmem:[%s9343_s3 + $0xe8] sm:$0xff] }
 0x253   : > { %1724 = vmatprep.mubr.f32.mxu1 %v9297_v47  ;;  %8467 = vmatpush3.bf16.msra.mxu1 %v8464_v23 }
 0x254   : > { %8469 = vmatprep.subr.bf16.mxu1 %v8468_v26 }
 0x256   : > { %6715 = vmatmul.mubr.msk.f32.gmra.mrb[4].mxu1 %vm1336_vm2, %v1619_v31  ;;  %v6770_v31 = vld [vmem:[%s9343_s3 + $0x130] sm:$0xff] }
 0x257   : > { %8471 = vmatpush3.bf16.msra.mxu1 %v8468_v26  ;;  %v8476_v33 = vpack.c.bf16 %v6771_v32, %v6770_v31  ;;  %v6760_v26 = vld [vmem:[%s9343_s3 + $0xe0] sm:$0xff]  ;;  %v6763_v31 = vld [vmem:[%s9343_s3 + $0xf8] sm:$0xff] }
 0x258   : > { %8473 = vmatprep.subr.bf16.mxu1 %v8472_v30  ;;  %v8488_v29 = vpack.c.bf16 %v6761_v27, %v6760_v26  ;;  %v6817_v27 = vld [vmem:[%s9323_s17 + $0x220] sm:$0xff] }
 0x25b   : > { %8475 = vmatpush3.bf16.msra.mxu1 %v8472_v30  ;;  %v6762_v30 = vld [vmem:[%s9343_s3 + $0xf0] sm:$0xff] }
 0x25c   : > { %8477 = vmatprep.subr.bf16.mxu1 %v8476_v33  ;;  %v8492_v32 = vpack.c.bf16 %v6763_v31, %v6762_v30  ;;  %v6835_v30 = vld [vmem:[%s9323_s17 + $0x2b0] sm:$0xff]  ;;  %v6836_v31 = vld [vmem:[%s9323_s17 + $0x2b8] sm:$0xff] }
 0x25f   : > { %8479 = vmatpush3.bf16.msra.mxu1 %v8476_v33  ;;  %v6776_v33 = vld [vmem:[%s9343_s3 + $0x140] sm:$0xff] }
 0x260   : > { %8481 = vmatprep.subr.bf16.mxu1 %v8480_v36  ;;  %v8496_v35 = vpack.c.bf16 %v6777_v34, %v6776_v33  ;;  %v8540_v33 = vpack.c.bf16 %v6836_v31, %v6835_v30  ;;  %v6819_v34 = vld [vmem:[%s9323_s17 + $0x230] sm:$0xff] }
 0x325   : > { %v1720_v58 = vpop.f32.mrb[2].mxu1 }
 0x326   : > { %v1721_v59 = vadd.f32 %v1720_v58, %v1641_v54  ;;  %v1722_v61 = vpop.f32.mrb[3].mxu1 }
 0x327   : > { %v1723_v0 = vadd.f32 %v1722_v61, %v1645_v57 }
 0x328   : > { %v9672_v2 = vadd.f32 %v1721_v59, %v9551_v51 }
 0x329   : > { %v9675_v3 = vadd.f32 %v1723_v0, %v9532_v28  ;;  %v1726_v4 = vpop.f32.mrb[4].mxu1 }
 0x32a   : > { %v1748_v6 = vmul.f32 %v1741_v60, %v9672_v2  ;;  %v1727_v7 = vadd.f32 %v1726_v4, %v1641_v54  ;;  %v1728_v8 = vpop.f32.mrb[5].mxu1 }
 0x32b   : > { %v1729_v10 = vadd.f32 %v1728_v8, %v1645_v57  ;;  %v1749_v11 = vmul.f32 %v1745_v1, %v9675_v3  ;;  %v6753_v57 = vld [vmem:[%s9333_s25 + $0x1] ss:$0 sm:$0xff] }
 0x32c   : > { %v9682_v12 = vadd.f32 %v1727_v7, %v9564_v62  ;;  %v1765_v28 = vadd.f32 %v1758_v5, %v1748_v6 }
 0x32d   : > { %v9685_v51 = vadd.f32 %v1729_v10, %v9556_v55  ;;  %v1766_v13 = vadd.f32 %v1762_v9, %v1749_v11 }
 0x32e   : > { %v1750_v15 = vmul.f32 %v1741_v60, %v9682_v12  ;;  %v1769_v17 = vmax.f32 %v1765_v28, 0.0  ;;  %v6755_v60 = vld [vmem:[%s9338_s29 + $0x1] ss:$0 sm:$0xff]  ;;  %v6758_v28 = vld [vmem:[%s9343_s3 + $0xd0] sm:$0xff] }
 0x32f   : > { %v1751_v14 = vmul.f32 %v1745_v1, %v9685_v51  ;;  %v1770_v16 = vmax.f32 %v1766_v13, 0.0  ;;  %v6759_v13 = vld [vmem:[%s9343_s3 + $0xd8] sm:$0xff] }
 0x330   : > { %v1767_v19 = vadd.f32 %v1758_v5, %v1750_v15  ;;  %v8484_v20 = vpack.c.bf16 %v6759_v13, %v6758_v28  ;;  %v6813_v28 = vld [vmem:[%s9323_s17 + $0x200] sm:$0xff]  ;;  %v6814_v13 = vld [vmem:[%s9323_s17 + $0x208] sm:$0xff] }
 0x331   : > { %1878 = vmatprep.mubr.f32.mxu0 %v1770_v16  ;;  %v1768_v18 = vadd.f32 %v1762_v9, %v1751_v14 }
 0x332   : > { %1879 = vmatmul.mubr.f32.vlgmr.msra.gmra.mrb[4].mxu0 %v1769_v17  ;;  %v1771_v55 = vmax.f32 %v1767_v19, 0.0 }
 0x333   : > { %v1772_v62 = vmax.f32 %v1768_v18, 0.0  ;;  %8515 = vmatpush1.bf16.msra.mxu0 %v8514_v45  ;;  %v8508_v45 = vpack.c.bf16 %v6783_v44, %v6782_v43  ;;  %v6839_v44 = vld [vmem:[%s9323_s17 + $0x2d0] sm:$0xff] }
 0x334   : > { %8517 = vmatprep.subr.bf16.mxu0 %v8516_v46  ;;  %v6801_v46 = vld [vmem:[%s9363_s24 + $0xc8] sm:$0xff] }
 0x335   : > { %1883 = vmatprep.mubr.f32.mxu0 %v1772_v62  ;;  %v8520_v49 = vpack.c.bf16 %v6803_v48, %v6801_v46  ;;  %v6823_v48 = vld [vmem:[%s9323_s17 + $0x250] sm:$0xff] }
 0x336   : > { %1884 = vmatmul.mubr.f32.gmra.mrb[6].mxu0 %v1771_v55 }
 0x337   : > { %2330 = vmatprep.mubr.f32.mxu0 %v9297_v47  ;;  %8519 = vmatpush1.bf16.msra.mxu0 %v8518_v50  ;;  %v6800_v50 = vld [vmem:[%s9363_s24 + $0xc0] sm:$0xff] }
 0x338   : > { %8521 = vmatprep.subr.bf16.mxu0 %v8520_v49  ;;  %v6824_v49 = vld [vmem:[%s9323_s17 + $0x258] sm:$0xff] }
 0x405   : > { %v7359_v52 = vpop.f32.mrb[4].mxu0 }
 0x406   : > { %v7360_v54 = vpop.f32.mrb[5].mxu0 }
 0x407   : > { %v7361_v56 = vadd.f32 %v7360_v54, %v7359_v52  ;;  %v6802_v52 = vld [vmem:[%s9363_s24 + $0xd0] sm:$0xff]  ;;  %v6805_v54 = vld [vmem:[%s9363_s24 + $0xe8] sm:$0xff] }
 0x409   : > { %v1881_v58 = vadd.f32 %v7361_v56, %v6751_v53  ;;  %v7362_v59 = vpop.f32.mrb[6].mxu0  ;;  %v6807_v56 = vld [vmem:[%s9363_s24 + $0xf8] sm:$0xff] }
 0x40a   : > { %v7363_v61 = vpop.f32.mrb[7].mxu0 }
 0x40b   : > { %v1897_v63 = vmul.f32 %v6753_v57, %v1881_v58  ;;  %v7364_v0 = vadd.f32 %v7363_v61, %v7362_v59  ;;  %v6804_v58 = vld [vmem:[%s9363_s24 + $0xe0] sm:$0xff]  ;;  %v6806_v59 = vld [vmem:[%s9363_s24 + $0xf0] sm:$0xff] }
 0x40c   : > { %v6829_v61 = vld [vmem:[%s9323_s17 + $0x280] sm:$0xff] }
 0x40d   : > { %v1907_v1 = vadd.f32 %v6755_v60, %v1897_v63  ;;  %v1886_v4 = vadd.f32 %v7364_v0, %v6751_v53  ;;  %v8522_v53 = vpack.c.bf16 %v6802_v52, %v6800_v50  ;;  %v6830_v63 = vld [vmem:[%s9323_s17 + $0x288] sm:$0xff]  ;;  %v8550_v50 = vpack.c.bf16 %v6824_v49, %v6823_v48  ;;  %v6841_v52 = vld [vmem:[%s9323_s17 + $0x2e0] sm:$0xff]  ;;  %v6865_v48 = vld [vmem:[%s9343_s3 + $0x1f0] sm:$0xff] }
 0x40e   : > { %v8528_v0 = vpack.c.bf16 %v6830_v63, %v6829_v61  ;;  %v6827_v63 = vld [vmem:[%s9323_s17 + $0x270] sm:$0xff]  ;;  %v6866_v49 = vld [vmem:[%s9343_s3 + $0x1f8] sm:$0xff] }
 0x40f   : > { %v1909_v5 = vmax.f32 %v1907_v1, 0.0  ;;  %v1898_v6 = vmul.f32 %v6753_v57, %v1886_v4  ;;  %8523 = vmatpush1.bf16.msra.mxu0 %v8522_v53  ;;  %v8524_v57 = vpack.c.bf16 %v6807_v56, %v6805_v54  ;;  %v6787_v1 = vld [vmem:[%s9348_s8 + $0x1] ss:$0 sm:$0xff]  ;;  %v6842_v53 = vld [vmem:[%s9323_s17 + $0x2e8] sm:$0xff] }
 0x410   : > { %v8552_v54 = vpack.c.bf16 %v6842_v53, %v6841_v52  ;;  %v6825_v56 = vld [vmem:[%s9323_s17 + $0x260] sm:$0xff]  ;;  %v6852_v53 = vld [vmem:[%s9343_s3 + $0x188] sm:$0xff] }
 0x411   : > { %v1913_v7 = vrot.slane %v1909_v5, 7  ;;  %v1908_v8 = vadd.f32 %v6755_v60, %v1898_v6  ;;  %v8526_v60 = vpack.c.bf16 %v6806_v59, %v6804_v58  ;;  %8525 = vmatprep.subr.bf16.mxu0 %v8524_v57  ;;  %v6789_v6 = vld [vmem:[%s9353_s14 + $0x1] ss:$0 sm:$0xff]  ;;  %v6826_v57 = vld [vmem:[%s9323_s17 + $0x268] sm:$0xff]  ;;  %v6843_v59 = vld [vmem:[%s9323_s17 + $0x2f0] sm:$0xff] }
 0x412   : > { %v8554_v58 = vpack.c.bf16 %v6826_v57, %v6825_v56  ;;  %v6851_v52 = vld [vmem:[%s9343_s3 + $0x180] sm:$0xff]  ;;  %v6888_v56 = vld [vmem:[%s9363_s24 + $0x108] sm:$0xff]  ;;  %v6890_v57 = vld [vmem:[%s9363_s24 + $0x118] sm:$0xff] }
 0x413   : > { %v1910_v9 = vmax.f32 %v1908_v8, 0.0  ;;  %v1918_v10 = vsel %vm1303_vm0, 0.0, %v1913_v7  ;;  %8527 = vmatpush1.bf16.msra.mxu0 %v8526_v60  ;;  %v6844_v60 = vld [vmem:[%s9323_s17 + $0x2f8] sm:$0xff] }
 0x414   : > { %v1940_v16 = vrot.slane %v1918_v10, 1  ;;  %v2112_v17 = vrot.slane %v1918_v10, 2  ;;  %8529 = vmatprep.subr.bf16.mxu0 %v8528_v0  ;;  %v8556_v61 = vpack.c.bf16 %v6844_v60, %v6843_v59  ;;  %v6828_v0 = vld [vmem:[%s9323_s17 + $0x278] sm:$0xff]  ;;  %v8608_v59 = vpack.c.bf16 %v6890_v57, %v6888_v56  ;;  %v6889_v60 = vld [vmem:[%s9363_s24 + $0x110] sm:$0xff] }
 0x415   : > { %v1914_v11 = vrot.slane %v1910_v9, 7  ;;  %v6791_v9 = vld [vmem:[%s9358_s19 + $0x1] ss:$0 sm:$0xff]  ;;  %v2967_v56 = vrot.slane %v9685_v51, 7 }
 0x417   : > { %v1919_v14 = vsel %vm1303_vm0, %v1914_v11, 0.0  ;;  %v1915_v15 = vsel %vm1303_vm0, %v1913_v7, %v1914_v11 }
 0x418   : > { %v1943_v18 = vrot.slane %v1919_v14, 1  ;;  %v1941_v19 = vrot.slane %v1915_v15, 1  ;;  %v2113_v62 = vrot.slane %v1915_v15, 2  ;;  %v2115_v55 = vrot.slane %v1919_v14, 2  ;;  %v6831_v14 = vld [vmem:[%s9323_s17 + $0x290] sm:$0xff] }
 0x41a   : > { %v1942_v21 = vsel %vm1330_vm1, %v1940_v16, %v1941_v19  ;;  %v1944_v23 = vsel %vm1330_vm1, %v1941_v19, %v1943_v18  ;;  %v2114_v24 = vsel %vm1504_vm3, %v2112_v17, %v2113_v62  ;;  %v2116_v25 = vsel %vm1504_vm3, %v2113_v62, %v2115_v55  ;;  %v6815_v55 = vld [vmem:[%s9323_s17 + $0x210] sm:$0xff] }
 0x41b   : > { %7860 = vmatprep.mubr.msk.f32.mxu1 %vm1336_vm2, %v1942_v21  ;;  %v8530_v17 = vpack.c.bf16 %v6814_v13, %v6813_v28  ;;  %v6833_v21 = vld [vmem:[%s9323_s17 + $0x2a0] sm:$0xff] }
 0x41c   : > { %7861 = vmatmul.mubr.msk.f32.vlgmr.msra.gmra.mrb[6].mxu1 %vm1336_vm2, %v1944_v23  ;;  %v6834_v23 = vld [vmem:[%s9323_s17 + $0x2a8] sm:$0xff] }
 0x41d   : > { %8483 = vmatpush3.bf16.msra.mxu1 %v8480_v36  ;;  %7879 = vmatprep.mubr.msk.f32.mxu1 %vm1336_vm2, %v1918_v10  ;;  %v6779_v36 = vld [vmem:[%s9343_s3 + $0x158] sm:$0xff]  ;;  %v8536_v26 = vpack.c.bf16 %v6834_v23, %v6833_v21 }
 0x41e   : > { %8485 = vmatprep.subr.bf16.mxu1 %v8484_v20  ;;  %v8500_v38 = vpack.c.bf16 %v6779_v36, %v6778_v37  ;;  %v6837_v37 = vld [vmem:[%s9323_s17 + $0x2c0] sm:$0xff]  ;;  %v6838_v36 = vld [vmem:[%s9323_s17 + $0x2c8] sm:$0xff] }
 0x41f   : > { %v8544_v39 = vpack.c.bf16 %v6838_v36, %v6837_v37  ;;  %v6859_v36 = vld [vmem:[%s9343_s3 + $0x1c0] sm:$0xff] }
 0x421   : > { %8487 = vmatpush3.bf16.msra.mxu1 %v8484_v20  ;;  %v6816_v20 = vld [vmem:[%s9323_s17 + $0x218] sm:$0xff] }
 0x422   : > { %8489 = vmatprep.subr.bf16.mxu1 %v8488_v29 }
 0x425   : > { %8491 = vmatpush3.bf16.msra.mxu1 %v8488_v29  ;;  %v6818_v29 = vld [vmem:[%s9323_s17 + $0x228] sm:$0xff] }
 0x426   : > { %8493 = vmatprep.subr.bf16.mxu1 %v8492_v32 }
 0x429   : > { %8495 = vmatpush3.bf16.msra.mxu1 %v8492_v32  ;;  %v8538_v32 = vpack.c.bf16 %v6818_v29, %v6817_v27 }
 0x42a   : > { %8497 = vmatprep.subr.bf16.mxu1 %v8496_v35 }
 0x42c   : > { %7880 = vmatmul.mubr.msk.f32.vlgmr.msra.gmra.mrb[6].mxu1 %vm1336_vm2, %v1915_v15  ;;  %v6832_v15 = vld [vmem:[%s9323_s17 + $0x298] sm:$0xff] }
 0x42d   : > { %8499 = vmatpush3.bf16.msra.mxu1 %v8496_v35  ;;  %7898 = vmatprep.mubr.msk.f32.mxu1 %vm1336_vm2, %v2114_v24  ;;  %v8532_v62 = vpack.c.bf16 %v6832_v15, %v6831_v14  ;;  %v8534_v24 = vpack.c.bf16 %v6816_v20, %v6815_v55  ;;  %v6820_v35 = vld [vmem:[%s9323_s17 + $0x238] sm:$0xff] }
 0x42e   : > { %8501 = vmatprep.subr.bf16.mxu1 %v8500_v38 }
 0x431   : > { %8503 = vmatpush3.bf16.msra.mxu1 %v8500_v38  ;;  %v8542_v38 = vpack.c.bf16 %v6820_v35, %v6819_v34 }
 0x432   : > { %8505 = vmatprep.subr.bf16.mxu1 %v8504_v42 }
 0x435   : > { %8507 = vmatpush3.bf16.msra.mxu1 %v8504_v42  ;;  %v6822_v42 = vld [vmem:[%s9323_s17 + $0x248] sm:$0xff] }
 0x436   : > { %8509 = vmatprep.subr.bf16.mxu1 %v8508_v45  ;;  %v8546_v43 = vpack.c.bf16 %v6822_v42, %v6821_v41  ;;  %v6861_v41 = vld [vmem:[%s9343_s3 + $0x1d0] sm:$0xff]  ;;  %v6862_v42 = vld [vmem:[%s9343_s3 + $0x1d8] sm:$0xff] }
 0x439   : > { %8511 = vmatpush3.bf16.msra.mxu1 %v8508_v45  ;;  %v6840_v45 = vld [vmem:[%s9323_s17 + $0x2d8] sm:$0xff] }
 0x43a   : > { %v8548_v46 = vpack.c.bf16 %v6840_v45, %v6839_v44  ;;  %v6863_v44 = vld [vmem:[%s9343_s3 + $0x1e0] sm:$0xff]  ;;  %v6864_v45 = vld [vmem:[%s9343_s3 + $0x1e8] sm:$0xff] }
 0x43c   : > { %7899 = vmatmul.mubr.msk.f32.vlgmr.msra.gmra.mrb[6].mxu1 %vm1336_vm2, %v2116_v25 }
 0x50f   : > { %v7900_v4 = vpop.f32.mrb[6].mxu1 }
 0x510   : > { %v2207_v5 = vadd.f32 %v7900_v4, %v6787_v1  ;;  %v2187_v7 = vpop.f32.mrb[7].mxu1  ;;  %v6808_v4 = vld [vmem:[%s9368_s30 + $0x2] sm:$0x3] }
 0x511   : > { %v2206_v8 = vadd.f32 %v6787_v1, %v2187_v7  ;;  %v8558_v1 = vpack.c.bf16 %v6828_v0, %v6827_v63  ;;  %v2257_v7 = vrot.slane %v6808_v4, %v9525_v22  ;;  %v6894_v63 = vld [vmem:[%s9363_s24 + $0x138] sm:$0xff] }
 0x512   : > { %v2217_v10 = vmul.f32 %v6789_v6, %v2207_v5  ;;  %v2253_v5 = vrot.slane %v6808_v4, %v9543_v40  ;;  %v6891_v4 = vld [vmem:[%s9363_s24 + $0x120] sm:$0xff] }
 0x513   : > { %v2216_v11 = vmul.f32 %v6789_v6, %v2206_v8  ;;  %v6811_v6 = vld [vmem:[%s9313_s9 + $0x4] sm:$0x3] }
 0x514   : > { %v2227_v18 = vadd.f32 %v6791_v9, %v2217_v10  ;;  %v2357_v14 = vrot.slane %v6811_v6, %v9525_v22 }
 0x515   : > { %v2226_v16 = vadd.f32 %v6791_v9, %v2216_v11  ;;  %v6812_v9 = vld [vmem:[%s9318_s13 + $0x4] sm:$0x3]  ;;  %v2353_v11 = vrot.slane %v6811_v6, %v9543_v40 }
 0x516   : > { %v2229_v25 = vmax.f32 %v2227_v18, 0.0 }
 0x517   : > { %v2228_v19 = vmax.f32 %v2226_v16, 0.0  ;;  %v2370_v16 = vrot.slane %v6812_v9, %v9543_v40 }
 0x519   : > { %6809 = vmatmul.mubr.msk.f32.vlgmr.msra.gmra.mrb[8].mxu0 %vm1336_vm2, %v2228_v19  ;;  %v2374_v19 = vrot.slane %v6812_v9, %v9525_v22 }
 0x51a   : > { %2336 = vmatprep.mubr.f32.mxu0 %v9297_v47  ;;  %8531 = vmatpush3.bf16.msra.mxu0 %v8530_v17 }
 0x51b   : > { %8533 = vmatprep.subr.bf16.mxu0 %v8532_v62 }
 0x51d   : > { %6810 = vmatmul.mubr.msk.f32.gmra.mrb[10].mxu0 %vm1336_vm2, %v2229_v25 }
 0x51e   : > { %8535 = vmatpush3.bf16.msra.mxu0 %v8534_v24 }
 0x51f   : > { %8537 = vmatprep.subr.bf16.mxu0 %v8536_v26 }
 0x522   : > { %8539 = vmatpush3.bf16.msra.mxu0 %v8538_v32 }
 0x523   : > { %8541 = vmatprep.subr.bf16.mxu0 %v8540_v33 }
 0x526   : > { %8543 = vmatpush3.bf16.msra.mxu0 %v8542_v38  ;;  %v6860_v38 = vld [vmem:[%s9343_s3 + $0x1c8] sm:$0xff] }
 0x527   : > { %8545 = vmatprep.subr.bf16.mxu0 %v8544_v39  ;;  %v8560_v39 = vpack.c.bf16 %v6860_v38, %v6859_v36 }
 0x529   : > { %8561 = vmatprep.subr.bf16.mxu1 %v8560_v39 }
 0x52a   : > { %8547 = vmatpush3.bf16.msra.mxu0 %v8546_v43  ;;  %8563 = vmatpush3.bf16.msra.mxu1 %v8560_v39  ;;  %v8564_v43 = vpack.c.bf16 %v6862_v42, %v6861_v41 }
 0x52b   : > { %8549 = vmatprep.subr.bf16.mxu0 %v8548_v46  ;;  %v8568_v46 = vpack.c.bf16 %v6864_v45, %v6863_v44 }
 0x52c   : > { %8565 = vmatprep.subr.bf16.mxu1 %v8564_v43 }
 0x52e   : > { %8551 = vmatpush3.bf16.msra.mxu0 %v8550_v50  ;;  %8567 = vmatpush3.bf16.msra.mxu1 %v8564_v43  ;;  %v8572_v50 = vpack.c.bf16 %v6866_v49, %v6865_v48  ;;  %v6855_v48 = vld [vmem:[%s9343_s3 + $0x1a0] sm:$0xff]  ;;  %v6856_v49 = vld [vmem:[%s9343_s3 + $0x1a8] sm:$0xff] }
 0x52f   : > { %8553 = vmatprep.subr.bf16.mxu0 %v8552_v54  ;;  %8569 = vmatprep.subr.bf16.mxu1 %v8568_v46  ;;  %v8576_v54 = vpack.c.bf16 %v6852_v53, %v6851_v52  ;;  %v6857_v52 = vld [vmem:[%s9343_s3 + $0x1b0] sm:$0xff]  ;;  %v6858_v53 = vld [vmem:[%s9343_s3 + $0x1b8] sm:$0xff] }
 0x530   : > { %v8588_v57 = vpack.c.bf16 %v6858_v53, %v6857_v52  ;;  %v6896_v52 = vld [vmem:[%s9363_s24 + $0x148] sm:$0xff]  ;;  %v6898_v53 = vld [vmem:[%s9363_s24 + $0x158] sm:$0xff] }
 0x532   : > { %8555 = vmatpush3.bf16.msra.mxu0 %v8554_v58  ;;  %8571 = vmatpush3.bf16.msra.mxu1 %v8568_v46  ;;  %v6887_v58 = vld [vmem:[%s9363_s24 + $0x100] sm:$0xff] }
 0x533   : > { %8557 = vmatprep.subr.bf16.mxu0 %v8556_v61  ;;  %8573 = vmatprep.subr.bf16.mxu1 %v8572_v50  ;;  %v6892_v61 = vld [vmem:[%s9363_s24 + $0x128] sm:$0xff]  ;;  %v8610_v0 = vpack.c.bf16 %v6889_v60, %v6887_v58  ;;  %v6871_v58 = vld [vmem:[%s9343_s3 + $0x200] sm:$0xff]  ;;  %v2964_v60 = vrot.slane %v9675_v3, 7 }
 0x536   : > { %8559 = vmatpush3.bf16.msra.mxu0 %v8558_v1  ;;  %8575 = vmatpush3.bf16.msra.mxu1 %v8572_v50  ;;  %v8612_v1 = vpack.c.bf16 %v6894_v63, %v6892_v61  ;;  %v8584_v50 = vpack.c.bf16 %v6856_v49, %v6855_v48  ;;  %v2965_v61 = vrot.slane %v9682_v12, 7 }
 0x537   : > { %8577 = vmatprep.subr.bf16.mxu1 %v8576_v54  ;;  %8609 = vmatprep.subr.bf16.mxu0 %v8608_v59  ;;  %v6872_v59 = vld [vmem:[%s9343_s3 + $0x208] sm:$0xff] }
 0x538   : > { %v8592_v63 = vpack.c.bf16 %v6872_v59, %v6871_v58  ;;  %v6897_v58 = vld [vmem:[%s9363_s24 + $0x150] sm:$0xff] }
 0x5ec   : > { %v2332_v8 = vpop.f32.mrb[8].mxu0 }
 0x5ed   : > { %v2333_v10 = vadd.f32 %v2332_v8, %v2253_v5  ;;  %v2334_v28 = vpop.f32.mrb[9].mxu0  ;;  %v6846_v8 = vld [vmem:[%s9328_s21 + $0x2] ss:$0 sm:$0xff] }
 0x5ee   : > { %v2335_v13 = vadd.f32 %v2334_v28, %v2257_v7 }
 0x5ef   : > { %v9792_v15 = vadd.f32 %v2333_v10, %v9672_v2 }
 0x5f0   : > { %v9796_v17 = vadd.f32 %v2335_v13, %v9675_v3  ;;  %v2338_v18 = vpop.f32.mrb[10].mxu0  ;;  %v2977_v3 = vsel %vm1303_vm0, %v2965_v61, -inf }
 0x5f1   : > { %v2360_v62 = vmul.f32 %v2353_v11, %v9792_v15  ;;  %v2339_v55 = vadd.f32 %v2338_v18, %v2253_v5  ;;  %v2340_v20 = vpop.f32.mrb[11].mxu0  ;;  %v6893_v5 = vld [vmem:[%s9363_s24 + $0x130] sm:$0xff] }
 0x5f2   : > { %v2361_v21 = vmul.f32 %v2357_v14, %v9796_v17  ;;  %v2341_v23 = vadd.f32 %v2340_v20, %v2257_v7  ;;  %v8614_v6 = vpack.c.bf16 %v6893_v5, %v6891_v4  ;;  %v6874_v4 = vld [vmem:[%s9343_s3 + $0x218] sm:$0xff]  ;;  %v2976_v5 = vsel %vm1303_vm0, -inf, %v2964_v60 }
 0x5f3   : > { %v2377_v24 = vadd.f32 %v2370_v16, %v2360_v62  ;;  %v9802_v25 = vadd.f32 %v2339_v55, %v9682_v12 }
 0x5f4   : > { %v9805_v26 = vadd.f32 %v2341_v23, %v9685_v51  ;;  %v2378_v27 = vadd.f32 %v2374_v19, %v2361_v21  ;;  %v6873_v51 = vld [vmem:[%s9343_s3 + $0x210] sm:$0xff] }
 0x5f5   : > { %v2362_v29 = vmul.f32 %v2353_v11, %v9802_v25  ;;  %v2381_v32 = vmax.f32 %v2377_v24, 0.0  ;;  %v6848_v11 = vld [vmem:[%s9333_s25 + $0x2] ss:$0 sm:$0xff] }
 0x5f6   : > { %v2363_v30 = vmul.f32 %v2357_v14, %v9805_v26  ;;  %v2382_v31 = vmax.f32 %v2378_v27, 0.0  ;;  %v6850_v14 = vld [vmem:[%s9338_s29 + $0x2] ss:$0 sm:$0xff] }
 0x5f7   : > { %v2379_v33 = vadd.f32 %v2370_v16, %v2362_v29 }
 0x5f8   : > { %2490 = vmatprep.mubr.f32.mxu0 %v2382_v31  ;;  %v2380_v34 = vadd.f32 %v2374_v19, %v2363_v30  ;;  %v6853_v31 = vld [vmem:[%s9343_s3 + $0x190] sm:$0xff] }
 0x5f9   : > { %2491 = vmatmul.mubr.f32.vlgmr.msra.gmra.mrb[12].mxu0 %v2381_v32  ;;  %v2383_v37 = vmax.f32 %v2379_v33, 0.0  ;;  %v6854_v32 = vld [vmem:[%s9343_s3 + $0x198] sm:$0xff] }
 0x5fa   : > { %v2384_v35 = vmax.f32 %v2380_v34, 0.0  ;;  %8611 = vmatpush1.bf16.msra.mxu0 %v8610_v0  ;;  %v8580_v42 = vpack.c.bf16 %v6854_v32, %v6853_v31  ;;  %v2968_v0 = vsel %vm1303_vm0, %v2964_v60, %v2967_v56  ;;  %v3007_v32 = vrot.slane %v2977_v3, 2  ;;  %v6902_v60 = vld [vmem:[%s9363_s24 + $0x178] sm:$0xff] }
 0x5fb   : > { %8613 = vmatprep.subr.bf16.mxu0 %v8612_v1  ;;  %v2963_v1 = vrot.slane %v9672_v2, 7  ;;  %v6876_v2 = vld [vmem:[%s9343_s3 + $0x228] sm:$0xff] }
 0x5fc   : > { %2495 = vmatprep.mubr.f32.mxu0 %v2384_v35 }
 0x5fd   : > { %2496 = vmatmul.mubr.f32.gmra.mrb[14].mxu0 %v2383_v37 }
 0x5fe   : > { %2942 = vmatprep.mubr.f32.mxu0 %v9297_v47  ;;  %8615 = vmatpush1.bf16.msra.mxu0 %v8614_v6  ;;  %v2966_v6 = vsel %vm1303_vm0, %v2963_v1, %v2965_v61 }
 0x5ff   : > { %v3002_v31 = vrot.slane %v2966_v6, 2 }
 0x6cc   : > { %v7427_v7 = vpop.f32.mrb[12].mxu0 }
 0x6cd   : > { %v7428_v9 = vpop.f32.mrb[13].mxu0 }
 0x6ce   : > { %v7429_v10 = vadd.f32 %v7428_v9, %v7427_v7  ;;  %v2987_v7 = vrot.slane %v2968_v0, 1  ;;  %v2975_v9 = vsel %vm1303_vm0, -inf, %v2963_v1  ;;  %v6923_v1 = vld [vmem:[%s9478_s12 + $0x180] sm:$0xff] }
 0x6d0   : > { %v2493_v28 = vadd.f32 %v7429_v10, %v6846_v8  ;;  %v7430_v13 = vpop.f32.mrb[14].mxu0  ;;  %v2986_v10 = vrot.slane %v2976_v5, 1 }
 0x6d1   : > { %v7431_v16 = vpop.f32.mrb[15].mxu0 }
 0x6d2   : > { %v2509_v18 = vmul.f32 %v6848_v11, %v2493_v28  ;;  %v7432_v19 = vadd.f32 %v7431_v16, %v7430_v13  ;;  %v2984_v28 = vrot.slane %v2966_v6, 1  ;;  %v2989_v13 = vrot.slane %v2977_v3, 1 }
 0x6d4   : > { %v2519_v62 = vadd.f32 %v6850_v14, %v2509_v18  ;;  %v2498_v55 = vadd.f32 %v7432_v19, %v6846_v8  ;;  %v8596_v8 = vpack.c.bf16 %v6874_v4, %v6873_v51  ;;  %v2983_v18 = vrot.slane %v2975_v9, 1  ;;  %v6924_v51 = vld [vmem:[%s9478_s12 + $0x188] sm:$0xff] }
 0x6d5   : > { %v8660_v4 = vpack.c.bf16 %v6924_v51, %v6923_v1  ;;  %v6886_v1 = vld [vmem:[%s9358_s19 + $0x2] ss:$0 sm:$0xff] }
 0x6d6   : > { %v2521_v20 = vmax.f32 %v2519_v62, 0.0  ;;  %v2510_v21 = vmul.f32 %v6848_v11, %v2498_v55  ;;  %v6875_v11 = vld [vmem:[%s9343_s3 + $0x220] sm:$0xff]  ;;  %v6877_v55 = vld [vmem:[%s9343_s3 + $0x230] sm:$0xff] }
 0x6d7   : > { %v8600_v19 = vpack.c.bf16 %v6876_v2, %v6875_v11  ;;  %v6909_v2 = vld [vmem:[%s9478_s12 + $0x110] sm:$0xff] }
 0x6d8   : > { %v2525_v23 = vrot.slane %v2521_v20, 7  ;;  %v2520_v24 = vadd.f32 %v6850_v14, %v2510_v21  ;;  %v2988_v14 = vsel %vm1330_vm1, %v2986_v10, %v2987_v7  ;;  %v6878_v20 = vld [vmem:[%s9343_s3 + $0x238] sm:$0xff]  ;;  %v3005_v21 = vrot.slane %v2968_v0, 2 }
 0x6d9   : > { %v6926_v10 = vld [vmem:[%s9478_s12 + $0x198] sm:$0xff] }
 0x6da   : > { %v2522_v27 = vmax.f32 %v2520_v24, 0.0  ;;  %v2530_v29 = vsel %vm1303_vm0, 0.0, %v2525_v23 }
 0x6db   : > { %v2552_v35 = vrot.slane %v2530_v29, 1  ;;  %v2724_v37 = vrot.slane %v2530_v29, 2 }
 0x6dc   : > { %v2526_v30 = vrot.slane %v2522_v27, 7  ;;  %v2985_v27 = vsel %vm1330_vm1, %v2983_v18, %v2984_v28 }
 0x6de   : > { %v2531_v33 = vsel %vm1303_vm0, %v2526_v30, 0.0  ;;  %v2527_v34 = vsel %vm1303_vm0, %v2525_v23, %v2526_v30  ;;  %v2998_v23 = vmax.f32 %v2976_v5, %v2988_v14  ;;  %v3004_v30 = vrot.slane %v2976_v5, 2  ;;  %v6907_v5 = vld [vmem:[%s9478_s12 + $0x100] sm:$0xff] }
 0x6df   : > { %v2553_v36 = vrot.slane %v2527_v34, 1  ;;  %v2555_v38 = vrot.slane %v2531_v33, 1  ;;  %v2725_v39 = vrot.slane %v2527_v34, 2  ;;  %v2727_v41 = vrot.slane %v2531_v33, 2  ;;  %v6927_v14 = vld [vmem:[%s9478_s12 + $0x1a0] sm:$0xff] }
 0x6e0   : > { %v8604_v33 = vpack.c.bf16 %v6878_v20, %v6877_v55  ;;  %v6929_v20 = vld [vmem:[%s9478_s12 + $0x1b0] sm:$0xff] }
 0x6e1   : > { %v2554_v43 = vsel %vm1330_vm1, %v2552_v35, %v2553_v36  ;;  %v2556_v44 = vsel %vm1330_vm1, %v2553_v36, %v2555_v38  ;;  %v2726_v45 = vsel %vm1504_vm3, %v2724_v37, %v2725_v39  ;;  %v9840_v46 = vsel %vm1504_vm3, %v2725_v39, %v2727_v41 }
 0x6e2   : > { %7917 = vmatprep.mubr.msk.f32.mxu1 %vm1336_vm2, %v2554_v43  ;;  %v2997_v37 = vmax.f32 %v2975_v9, %v2985_v27  ;;  %v3001_v38 = vrot.slane %v2975_v9, 2  ;;  %v3008_v43 = vsel %vm1504_vm3, %v3002_v31, %v3007_v32  ;;  %v6925_v9 = vld [vmem:[%s9478_s12 + $0x190] sm:$0xff]  ;;  %v6914_v27 = vld [vmem:[%s9478_s12 + $0x138] sm:$0xff] }
 0x6e3   : > { %7918 = vmatmul.mubr.msk.f32.vlgmr.msra.gmra.mrb[8].mxu1 %vm1336_vm2, %v2556_v44  ;;  %v8664_v11 = vpack.c.bf16 %v6926_v10, %v6925_v9 }
 0x6e4   : > { %8579 = vmatpush3.bf16.msra.mxu1 %v8576_v54  ;;  %7936 = vmatprep.mubr.msk.f32.mxu1 %vm1336_vm2, %v2530_v29  ;;  %v2978_v54 = vsel %vm1303_vm0, %v2967_v56, -inf  ;;  %v2990_v29 = vsel %vm1330_vm1, %v2984_v28, %v2989_v13  ;;  %v8616_v56 = vpack.c.bf16 %v6898_v53, %v6896_v52  ;;  %v6910_v28 = vld [vmem:[%s9478_s12 + $0x118] sm:$0xff]  ;;  %v6937_v52 = vld [vmem:[%s9478_s12 + $0x1f0] sm:$0xff] }
 0x6e5   : > { %8581 = vmatprep.subr.bf16.mxu1 %v8580_v42  ;;  %v2991_v12 = vrot.slane %v2978_v54, 1  ;;  %v3009_v62 = vrot.slane %v2978_v54, 2  ;;  %v2999_v36 = vmax.f32 %v2966_v6, %v2990_v29  ;;  %v6899_v54 = vld [vmem:[%s9363_s24 + $0x160] sm:$0xff]  ;;  %v6908_v6 = vld [vmem:[%s9478_s12 + $0x108] sm:$0xff]  ;;  %v8666_v13 = vpack.c.bf16 %v6910_v28, %v6909_v2  ;;  %v6938_v53 = vld [vmem:[%s9478_s12 + $0x1f8] sm:$0xff] }
 0x6e6   : > { %8617 = vmatprep.subr.bf16.mxu0 %v8616_v56  ;;  %v8662_v3 = vpack.c.bf16 %v6908_v6, %v6907_v5  ;;  %v8688_v56 = vpack.c.bf16 %v6938_v53, %v6937_v52  ;;  %v3095_v5 = vld [vmem:[%s9478_s12] sm:$0xff]  ;;  %v3096_v6 = vld [vmem:[%s9478_s12 + $0x8] sm:$0xff] }
 0x6e7   : > { %v2992_v16 = vsel %vm1330_vm1, %v2987_v7, %v2991_v12  ;;  %v3010_v35 = vsel %vm1504_vm3, %v3005_v21, %v3009_v62  ;;  %v3111_v12 = vld [vmem:[%s9478_s12 + $0x80] sm:$0xff]  ;;  %v3112_v7 = vld [vmem:[%s9478_s12 + $0x88] sm:$0xff]  ;;  %v8630_v10 = vpack.c.bf16 %v3096_v6, %v3095_v5  ;;  %v6958_v5 = vld [vmem:[%s9478_s12 + $0x298] sm:$0xff] }
 0x6e8   : > { %8583 = vmatpush3.bf16.msra.mxu1 %v8580_v42  ;;  %v3000_v24 = vmax.f32 %v2968_v0, %v2992_v16  ;;  %v3003_v42 = vsel %vm1504_vm3, %v3001_v38, %v3002_v31  ;;  %v6928_v16 = vld [vmem:[%s9478_s12 + $0x1a8] sm:$0xff]  ;;  %v3107_v52 = vld [vmem:[%s9478_s12 + $0x60] sm:$0xff] }
 0x6e9   : > { %8585 = vmatprep.subr.bf16.mxu1 %v8584_v50  ;;  %v3015_v44 = vmax.f32 %v2997_v37, %v3003_v42  ;;  %v8668_v18 = vpack.c.bf16 %v6928_v16, %v6927_v14  ;;  %v6912_v62 = vld [vmem:[%s9478_s12 + $0x128] sm:$0xff]  ;;  %v6933_v37 = vld [vmem:[%s9478_s12 + $0x1d0] sm:$0xff]  ;;  %v3098_v14 = vld [vmem:[%s9478_s12 + $0x18] sm:$0xff] }
 0x6ea   : > { %v3018_v41 = vmax.f32 %v3000_v24, %v3010_v35  ;;  %v6913_v24 = vld [vmem:[%s9478_s12 + $0x130] sm:$0xff]  ;;  %v6932_v31 = vld [vmem:[%s9478_s12 + $0x1c8] sm:$0xff]  ;;  %v3115_v16 = vld [vmem:[%s9478_s12 + $0xa0] sm:$0xff] }
 0x6eb   : > { %v8674_v29 = vpack.c.bf16 %v6914_v27, %v6913_v24  ;;  %v3118_v24 = vld [vmem:[%s9478_s12 + $0xb8] sm:$0xff]  ;;  %v3108_v53 = vld [vmem:[%s9478_s12 + $0x68] sm:$0xff] }
 0x6ec   : > { %8587 = vmatpush3.bf16.msra.mxu1 %v8584_v50  ;;  %v3019_v50 = vld [vmem:[%s10688_s4] sm:$0xff]  ;;  %s10700_s4 = sld [smem:[#allocation13_spill]] }
 0x6ed   : > { %8589 = vmatprep.subr.bf16.mxu1 %v8588_v57 }
 0x6f0   : > { %8591 = vmatpush3.bf16.msra.mxu1 %v8588_v57  ;;  %v6895_v57 = vld [vmem:[%s9363_s24 + $0x140] sm:$0xff] }
 0x6f1   : > { %8593 = vmatprep.subr.bf16.mxu1 %v8592_v63  ;;  %v8618_v59 = vpack.c.bf16 %v6897_v58, %v6895_v57  ;;  %v6921_v57 = vld [vmem:[%s9478_s12 + $0x170] sm:$0xff]  ;;  %v6922_v58 = vld [vmem:[%s9478_s12 + $0x178] sm:$0xff] }
 0x6f3   : > { %7937 = vmatmul.mubr.msk.f32.vlgmr.msra.gmra.mrb[8].mxu1 %vm1336_vm2, %v2527_v34  ;;  %v3006_v34 = vsel %vm1504_vm3, %v3004_v30, %v3005_v21  ;;  %8619 = vmatpush1.bf16.msra.mxu0 %v8618_v59  ;;  %v6930_v21 = vld [vmem:[%s9478_s12 + $0x1b8] sm:$0xff]  ;;  %v6931_v30 = vld [vmem:[%s9478_s12 + $0x1c0] sm:$0xff]  ;;  %v8690_v59 = vpack.c.bf16 %v6922_v58, %v6921_v57  ;;  %v8654_v58 = vpack.c.bf16 %v3108_v53, %v3107_v52 }
 0x6f4   : > { %8595 = vmatpush3.bf16.msra.mxu1 %v8592_v63  ;;  %7955 = vmatprep.mubr.msk.f32.mxu1 %vm1336_vm2, %v2726_v45  ;;  %v3016_v39 = vmax.f32 %v2998_v23, %v3006_v34  ;;  %v3017_v45 = vmax.f32 %v2999_v36, %v3008_v43  ;;  %v6901_v63 = vld [vmem:[%s9363_s24 + $0x170] sm:$0xff]  ;;  %v8672_v23 = vpack.c.bf16 %v6930_v21, %v6929_v20  ;;  %v6916_v34 = vld [vmem:[%s9478_s12 + $0x148] sm:$0xff]  ;;  %v6934_v36 = vld [vmem:[%s9478_s12 + $0x1d8] sm:$0xff] }
 0x6f5   : > { %8597 = vmatprep.subr.bf16.mxu1 %v8596_v8  ;;  %v8622_v0 = vpack.c.bf16 %v6901_v63, %v6899_v54  ;;  %v8676_v32 = vpack.c.bf16 %v6932_v31, %v6931_v30  ;;  %v8680_v38 = vpack.c.bf16 %v6934_v36, %v6933_v37  ;;  %v6935_v43 = vld [vmem:[%s9478_s12 + $0x1e0] sm:$0xff]  ;;  %v3100_v21 = vld [vmem:[%s9478_s12 + $0x28] sm:$0xff]  ;;  %v3101_v30 = vld [vmem:[%s9478_s12 + $0x30] sm:$0xff] }
 0x6f6   : > { %v8624_v48 = vpack.c.bf16 %v3018_v41, %v3016_v39  ;;  %v8626_v49 = vpack.c.bf16 %v3017_v45, %v3015_v44  ;;  %v6917_v39 = vld [vmem:[%s9478_s12 + $0x150] sm:$0xff]  ;;  %v6918_v41 = vld [vmem:[%s9478_s12 + $0x158] sm:$0xff]  ;;  %v6936_v44 = vld [vmem:[%s9478_s12 + $0x1e8] sm:$0xff] }
 0x6f7   : > { %v8682_v42 = vpack.c.bf16 %v6918_v41, %v6917_v39  ;;  %v8684_v45 = vpack.c.bf16 %v6936_v44, %v6935_v43  ;;  %v6884_v54 = vld [vmem:[%s9353_s14 + $0x2] ss:$0 sm:$0xff]  ;;  %v3102_v31 = vld [vmem:[%s9478_s12 + $0x38] sm:$0xff]  ;;  %v3104_v36 = vld [vmem:[%s9478_s12 + $0x48] sm:$0xff] }
 0x6f8   : > { %8599 = vmatpush3.bf16.msra.mxu1 %v8596_v8  ;;  %v8628_v8 = vpack.c.bf16 %v3112_v7, %v3111_v12  ;;  %v3113_v12 = vld [vmem:[%s9478_s12 + $0x90] sm:$0xff]  ;;  %v3114_v7 = vld [vmem:[%s9478_s12 + $0x98] sm:$0xff]  ;;  %v3099_v20 = vld [vmem:[%s9478_s12 + $0x20] sm:$0xff] }
 0x6f9   : > { %8601 = vmatprep.subr.bf16.mxu1 %v8600_v19  ;;  %v8632_v28 = vpack.c.bf16 %v3114_v7, %v3113_v12  ;;  %v8638_v27 = vpack.c.bf16 %v3100_v21, %v3099_v20  ;;  %v3103_v37 = vld [vmem:[%s9478_s12 + $0x40] sm:$0xff]  ;;  %v3122_v39 = vld [vmem:[%s9478_s12 + $0xd8] sm:$0xff]  ;;  %v3105_v43 = vld [vmem:[%s9478_s12 + $0x50] sm:$0xff] }
 0x6fa   : > { %v8646_v41 = vpack.c.bf16 %v3104_v36, %v3103_v37  ;;  %v3106_v44 = vld [vmem:[%s9478_s12 + $0x58] sm:$0xff]  ;;  %v6941_v7 = vld [vmem:[%s9478_s12 + $0x210] sm:$0xff]  ;;  %v6964_v21 = vld [vmem:[%s9478_s12 + $0x2c8] sm:$0xff] }
 0x6fb   : > { %v3126_v57 = vld [vmem:[%s9478_s12 + $0xf8] sm:$0xff]  ;;  %v6967_v37 = vld [vmem:[%s9478_s12 + $0x2e0] sm:$0xff]  ;;  %v6968_v36 = vld [vmem:[%s9478_s12 + $0x2e8] sm:$0xff] }
 0x6fc   : > { %8603 = vmatpush3.bf16.msra.mxu1 %v8600_v19  ;;  %v6911_v19 = vld [vmem:[%s9478_s12 + $0x120] sm:$0xff]  ;;  %v6946_v20 = vld [vmem:[%s9478_s12 + $0x238] sm:$0xff] }
 0x6fd   : > { %8605 = vmatprep.subr.bf16.mxu1 %v8604_v33  ;;  %v8670_v55 = vpack.c.bf16 %v6912_v62, %v6911_v19  ;;  %v3422_v53 = vld [vmem:[%s10689_s15] sm:$0xff] }
 0x700   : > { %8607 = vmatpush3.bf16.msra.mxu1 %v8604_v33  ;;  %v6915_v33 = vld [vmem:[%s9478_s12 + $0x140] sm:$0xff] }
 0x701   : > { %8625 = vmatprep.subr.bf16.mxu1 %v8624_v48  ;;  %v8678_v35 = vpack.c.bf16 %v6916_v34, %v6915_v33  ;;  %v6919_v48 = vld [vmem:[%s9478_s12 + $0x160] sm:$0xff]  ;;  %v3120_v33 = vld [vmem:[%s9478_s12 + $0xc8] sm:$0xff]  ;;  %v8642_v34 = vpack.c.bf16 %v3102_v31, %v3101_v30  ;;  %v6965_v30 = vld [vmem:[%s9478_s12 + $0x2d0] sm:$0xff] }
 0x702   : > { %v6966_v31 = vld [vmem:[%s9478_s12 + $0x2d8] sm:$0xff] }
 0x703   : > { %7956 = vmatmul.mubr.msk.f32.vlgmr.msra.gmra.mrb[8].mxu1 %vm1336_vm2, %v9840_v46  ;;  %v6900_v46 = vld [vmem:[%s9363_s24 + $0x168] sm:$0xff] }
 0x704   : > { %8627 = vmatpush1.bf16.msra.mxu1 %v8626_v49  ;;  %3088 = vmatprep.mubr.f32.mxu1 %v9297_v47  ;;  %v8620_v61 = vpack.c.bf16 %v6902_v60, %v6900_v46  ;;  %v6920_v49 = vld [vmem:[%s9478_s12 + $0x168] sm:$0xff]  ;;  %v6882_v46 = vld [vmem:[%s9348_s8 + $0x2] ss:$0 sm:$0xff] }
 0x705   : > { %8661 = vmatprep.subr.bf16.mxu1 %v8660_v4 }
 0x706   : > { %8621 = vmatprep.subr.bf16.mxu0 %v8620_v61 }
 0x707   : > { %6906 = vmatmul.mubr.msk.f32.vlgmr.msra.gmra.mrb[10].mxu1 %vm3020_vm4, %v3019_v50  ;;  %8623 = vmatpush1.bf16.msra.mxu0 %v8622_v0  ;;  %v8686_v50 = vpack.c.bf16 %v6920_v49, %v6919_v48  ;;  %v3124_v48 = vld [vmem:[%s9478_s12 + $0xe8] sm:$0xff]  ;;  %v8650_v49 = vpack.c.bf16 %v3106_v44, %v3105_v43  ;;  %v6969_v43 = vld [vmem:[%s9478_s12 + $0x2f0] sm:$0xff]  ;;  %v6970_v44 = vld [vmem:[%s9478_s12 + $0x2f8] sm:$0xff] }
 0x708   : > { %8663 = vmatpush3.bf16.msra.mxu1 %v8662_v3  ;;  %8629 = vmatprep.subr.bf16.mxu0 %v8628_v8 }
 0x709   : > { %8665 = vmatprep.subr.bf16.mxu1 %v8664_v11 }
 0x70c   : > { %8667 = vmatpush3.bf16.msra.mxu1 %v8666_v13  ;;  %v3097_v13 = vld [vmem:[%s9478_s12 + $0x10] sm:$0xff] }
 0x70d   : > { %8669 = vmatprep.subr.bf16.mxu1 %v8668_v18  ;;  %v3116_v18 = vld [vmem:[%s9478_s12 + $0xa8] sm:$0xff]  ;;  %v8634_v19 = vpack.c.bf16 %v3098_v14, %v3097_v13  ;;  %v6943_v13 = vld [vmem:[%s9478_s12 + $0x220] sm:$0xff] }
 0x70e   : > { %v6944_v14 = vld [vmem:[%s9478_s12 + $0x228] sm:$0xff] }
 0x710   : > { %8671 = vmatpush3.bf16.msra.mxu1 %v8670_v55  ;;  %v8636_v55 = vpack.c.bf16 %v3116_v18, %v3115_v16  ;;  %v6961_v16 = vld [vmem:[%s9478_s12 + $0x2b0] sm:$0xff]  ;;  %v6962_v18 = vld [vmem:[%s9478_s12 + $0x2b8] sm:$0xff] }
 0x711   : > { %8673 = vmatprep.subr.bf16.mxu1 %v8672_v23  ;;  %v3117_v23 = vld [vmem:[%s9478_s12 + $0xb0] sm:$0xff] }
 0x714   : > { %8675 = vmatpush3.bf16.msra.mxu1 %v8674_v29  ;;  %v8640_v29 = vpack.c.bf16 %v3118_v24, %v3117_v23 }
 0x715   : > { %8677 = vmatprep.subr.bf16.mxu1 %v8676_v32  ;;  %v3119_v32 = vld [vmem:[%s9478_s12 + $0xc0] sm:$0xff] }
 0x718   : > { %8679 = vmatpush3.bf16.msra.mxu1 %v8678_v35  ;;  %v8644_v35 = vpack.c.bf16 %v3120_v33, %v3119_v32  ;;  %v8712_v33 = vpack.c.bf16 %v6966_v31, %v6965_v30  ;;  %v6971_v31 = vld [vmem:[%s10690_s16] ss:$0 sm:$0xff] }
 0x719   : > { %8681 = vmatprep.subr.bf16.mxu1 %v8680_v38  ;;  %v3121_v38 = vld [vmem:[%s9478_s12 + $0xd0] sm:$0xff] }
 0x71c   : > { %8683 = vmatpush3.bf16.msra.mxu1 %v8682_v42  ;;  %v8648_v42 = vpack.c.bf16 %v3122_v39, %v3121_v38  ;;  %v8716_v39 = vpack.c.bf16 %v6968_v36, %v6967_v37  ;;  %v3537_v36 = vld [vmem:[%s10692_s22] sm:$0xff] }
 0x71d   : > { %8685 = vmatprep.subr.bf16.mxu1 %v8684_v45  ;;  %v3123_v45 = vld [vmem:[%s9478_s12 + $0xe0] sm:$0xff] }
 0x720   : > { %8687 = vmatpush3.bf16.msra.mxu1 %v8686_v50  ;;  %v8652_v50 = vpack.c.bf16 %v3124_v48, %v3123_v45  ;;  %v8720_v48 = vpack.c.bf16 %v6970_v44, %v6969_v43  ;;  %v3539_v44 = vld [vmem:[%s10692_s22 + $0x10] sm:$0xff] }
 0x721   : > { %8689 = vmatprep.subr.bf16.mxu1 %v8688_v56  ;;  %v3125_v56 = vld [vmem:[%s9478_s12 + $0xf0] sm:$0xff] }
 0x724   : > { %8691 = vmatpush3.bf16.msra.mxu1 %v8690_v59  ;;  %v8656_v59 = vpack.c.bf16 %v3126_v57, %v3125_v56  ;;  %v3423_v56 = vld [vmem:[%s10689_s15 + $0x8] sm:$0xff]  ;;  %v3424_v57 = vld [vmem:[%s10689_s15 + $0x10] sm:$0xff] }
 0x7d6   : > { %v7957_v60 = vpop.f32.mrb[8].mxu1 }
 0x7d7   : > { %v2819_v61 = vadd.f32 %v7957_v60, %v6882_v46  ;;  %v2799_v63 = vpop.f32.mrb[9].mxu1  ;;  %v3110_v60 = vld [vmem:[%s9478_s12 + $0x78] sm:$0xff] }
 0x7d8   : > { %v2818_v0 = vadd.f32 %v6882_v46, %v2799_v63  ;;  %v3109_v46 = vld [vmem:[%s9478_s12 + $0x70] sm:$0xff] }
 0x7d9   : > { %v2829_v51 = vmul.f32 %v6884_v54, %v2819_v61  ;;  %v6955_v61 = vld [vmem:[%s9478_s12 + $0x280] sm:$0xff]  ;;  %v8658_v63 = vpack.c.bf16 %v3110_v60, %v3109_v46  ;;  %v3425_v46 = vld [vmem:[%s10689_s15 + $0x18] sm:$0xff] }
 0x7da   : > { %v2828_v4 = vmul.f32 %v6884_v54, %v2818_v0  ;;  %v9928_v3 = vpop.f32.mrb[10].mxu1  ;;  %v6956_v54 = vld [vmem:[%s9478_s12 + $0x288] sm:$0xff]  ;;  %v8728_v60 = vpack.c.bf16 %v3425_v46, %v3424_v57  ;;  %v6974_v57 = vld [vmem:[%s10694_s26] ss:$0 sm:$0xff] }
 0x7db   : > { %v9932_v8 = vpop.f32.mrb[11].mxu1  ;;  %v2839_v11 = vadd.f32 %v6886_v1, %v2829_v51  ;;  %v8692_v0 = vpack.c.bf16 %v6956_v54, %v6955_v61  ;;  %v6940_v51 = vld [vmem:[%s9478_s12 + $0x208] sm:$0xff]  ;;  %v3426_v61 = vld [vmem:[%s10689_s15 + $0x20] sm:$0xff] }
 0x7dc   : > { %v2838_v9 = vadd.f32 %v6886_v1, %v2828_v4  ;;  %3294 = vmatprep.mubr.f32.mxu1 %v9932_v8  ;;  %v6939_v1 = vld [vmem:[%s9478_s12 + $0x200] sm:$0xff]  ;;  %v6957_v4 = vld [vmem:[%s9478_s12 + $0x290] sm:$0xff] }
 0x7dd   : > { %3295 = vmatmul.mubr.f32.vlgmr.msra.gmra.mrb[12].mxu1 %v9928_v3  ;;  %v2841_v62 = vmax.f32 %v2839_v11, 0.0  ;;  %v8694_v6 = vpack.c.bf16 %v6940_v51, %v6939_v1  ;;  %v8696_v12 = vpack.c.bf16 %v6958_v5, %v6957_v4  ;;  %v6960_v11 = vld [vmem:[%s9478_s12 + $0x2a8] sm:$0xff]  ;;  %v3430_v51 = vld [vmem:[%s10689_s15 + $0x40] sm:$0xff] }
 0x7de   : > { %v2840_v2 = vmax.f32 %v2838_v9, 0.0  ;;  %v6942_v9 = vld [vmem:[%s9478_s12 + $0x218] sm:$0xff]  ;;  %v3431_v4 = vld [vmem:[%s10689_s15 + $0x48] sm:$0xff]  ;;  %7990 = vmatprep.mubr.msk.f32.mxu1 %vm9299_vm5, %v9297_v47 }
 0x7df   : > { %v8737_v5 = vpack.c.bf16 %v3431_v4, %v3430_v51 }
 0x7e0   : > { %6904 = vmatmul.mubr.msk.f32.vlgmr.msra.gmra.mrb[16].mxu0 %vm1336_vm2, %v2840_v2  ;;  %v8698_v2 = vpack.c.bf16 %v6942_v9, %v6941_v7  ;;  %v3434_v9 = vld [vmem:[%s10689_s15 + $0x60] sm:$0xff] }
 0x7e1   : > { %8631 = vmatpush3.bf16.msra.mxu0 %v8630_v10  ;;  %2948 = vmatprep.mubr.f32.mxu0 %v9297_v47  ;;  %v6959_v10 = vld [vmem:[%s9478_s12 + $0x2a0] sm:$0xff] }
 0x7e2   : > { %8633 = vmatprep.subr.bf16.mxu0 %v8632_v28  ;;  %v8700_v28 = vpack.c.bf16 %v6960_v11, %v6959_v10  ;;  %v3435_v10 = vld [vmem:[%s10689_s15 + $0x68] sm:$0xff] }
 0x7e3   : > { %v8743_v11 = vpack.c.bf16 %v3435_v10, %v3434_v9  ;;  %v6985_v9 = vld [vmem:[%s10692_s22 + $0x58] sm:$0xff] }
 0x7e4   : > { %6905 = vmatmul.mubr.msk.f32.gmra.mrb[18].mxu0 %vm1336_vm2, %v2841_v62  ;;  %v8704_v62 = vpack.c.bf16 %v6962_v18, %v6961_v16 }
 0x7e5   : > { %8635 = vmatpush3.bf16.msra.mxu0 %v8634_v19  ;;  %3191 = vmatprep.mubr.f32.mxu0 %v9932_v8  ;;  %v8702_v19 = vpack.c.bf16 %v6944_v14, %v6943_v13 }
 0x7e6   : > { %8637 = vmatprep.subr.bf16.mxu0 %v8636_v55  ;;  %v6945_v55 = vld [vmem:[%s9478_s12 + $0x230] sm:$0xff] }
 0x7e7   : > { %v8706_v23 = vpack.c.bf16 %v6946_v20, %v6945_v55 }
 0x7e9   : > { %8639 = vmatpush3.bf16.msra.mxu0 %v8638_v27  ;;  %v6947_v27 = vld [vmem:[%s9478_s12 + $0x240] sm:$0xff] }
 0x7ea   : > { %8641 = vmatprep.subr.bf16.mxu0 %v8640_v29  ;;  %v6948_v29 = vld [vmem:[%s9478_s12 + $0x248] sm:$0xff] }
 0x7eb   : > { %v8710_v32 = vpack.c.bf16 %v6948_v29, %v6947_v27 }
 0x7ed   : > { %8643 = vmatpush3.bf16.msra.mxu0 %v8642_v34  ;;  %v6949_v34 = vld [vmem:[%s9478_s12 + $0x250] sm:$0xff] }
 0x7ee   : > { %8645 = vmatprep.subr.bf16.mxu0 %v8644_v35  ;;  %v6950_v35 = vld [vmem:[%s9478_s12 + $0x258] sm:$0xff] }
 0x7ef   : > { %v8714_v38 = vpack.c.bf16 %v6950_v35, %v6949_v34 }
 0x7f1   : > { %8647 = vmatpush3.bf16.msra.mxu0 %v8646_v41  ;;  %v6951_v41 = vld [vmem:[%s9478_s12 + $0x260] sm:$0xff] }
 0x7f2   : > { %8649 = vmatprep.subr.bf16.mxu0 %v8648_v42  ;;  %v6952_v42 = vld [vmem:[%s9478_s12 + $0x268] sm:$0xff] }
 0x7f3   : > { %v8718_v45 = vpack.c.bf16 %v6952_v42, %v6951_v41  ;;  %v6976_v41 = vld [vmem:[%s10692_s22 + $0x20] sm:$0xff]  ;;  %v6977_v42 = vld [vmem:[%s10692_s22 + $0x28] sm:$0xff] }
 0x7f4   : > { %v8749_v43 = vpack.c.bf16 %v6977_v42, %v6976_v41  ;;  %v7004_v41 = vld [vmem:[%s10689_s15 + $0xc0] sm:$0xff]  ;;  %v7005_v42 = vld [vmem:[%s10689_s15 + $0xc8] sm:$0xff] }
 0x7f5   : > { %8651 = vmatpush3.bf16.msra.mxu0 %v8650_v49  ;;  %v6953_v49 = vld [vmem:[%s9478_s12 + $0x270] sm:$0xff] }
 0x7f6   : > { %8653 = vmatprep.subr.bf16.mxu0 %v8652_v50  ;;  %v6954_v50 = vld [vmem:[%s9478_s12 + $0x278] sm:$0xff] }
 0x7f7   : > { %v8722_v52 = vpack.c.bf16 %v6954_v50, %v6953_v49  ;;  %v6978_v49 = vld [vmem:[%s10692_s22 + $0x30] sm:$0xff]  ;;  %v6979_v50 = vld [vmem:[%s10692_s22 + $0x38] sm:$0xff] }
 0x7f9   : > { %8655 = vmatpush3.bf16.msra.mxu0 %v8654_v58  ;;  %v9298_v58 = vmov 0.0|0.0  }
 0x7fa   : > { %8657 = vmatprep.subr.bf16.mxu0 %v8656_v59  ;;  %8724 = vmatprep.subr.bf16.mxu1 %v9298_v58  ;;  %v8725_v59 = vpack.c.bf16 %v3423_v56, %v3422_v53  ;;  %v6973_v53 = vld [vmem:[%s10693_s23] ss:$0 sm:$0xff] }
 0x7fc   : > { %8726 = vmatpush3.bf16.msra.mxu1 %v8725_v59 }
 0x7fd   : > { %8659 = vmatpush3.bf16.msra.mxu0 %v8658_v63  ;;  %8727 = vmatprep.subr.bf16.mxu1 %v9298_v58  ;;  %v3428_v63 = vld [vmem:[%s10689_s15 + $0x30] sm:$0xff] }
 0x7fe   : > { %8693 = vmatprep.subr.bf16.mxu0 %v8692_v0  ;;  %v3429_v0 = vld [vmem:[%s10689_s15 + $0x38] sm:$0xff] }
 0x7ff   : > { %v8734_v1 = vpack.c.bf16 %v3429_v0, %v3428_v63  ;;  %v6982_v0 = vld [vmem:[%s10692_s22 + $0x40] sm:$0xff] }
 0x800   : > { %3192 = vmatmul.mubr.f32.vlgmr.msra.gmra.mrb[20].mxu0 %v9928_v3  ;;  %8729 = vmatpush3.bf16.msra.mxu1 %v8728_v60  ;;  %v6975_v60 = vld [vmem:[%s10695_s28] ss:$0 sm:$0xff] }
 0x801   : > { %8695 = vmatpush3.bf16.msra.mxu0 %v8694_v6  ;;  %3397 = vmatprep.mubr.f32.mxu0 %v9932_v8  ;;  %v6963_v8 = vld [vmem:[%s9478_s12 + $0x2c0] sm:$0xff]  ;;  %v3432_v6 = vld [vmem:[%s10689_s15 + $0x50] sm:$0xff] }
 0x802   : > { %8697 = vmatprep.subr.bf16.mxu0 %v8696_v12  ;;  %v8708_v24 = vpack.c.bf16 %v6964_v21, %v6963_v8  ;;  %8730 = vmatprep.subr.bf16.mxu1 %v9298_v58  ;;  %v3433_v12 = vld [vmem:[%s10689_s15 + $0x58] sm:$0xff] }
 0x803   : > { %v8740_v7 = vpack.c.bf16 %v3433_v12, %v3432_v6 }
 0x805   : > { %8699 = vmatpush3.bf16.msra.mxu0 %v8698_v2  ;;  %v3436_v2 = vld [vmem:[%s10689_s15 + $0x70] sm:$0xff] }
 0x806   : > { %8701 = vmatprep.subr.bf16.mxu0 %v8700_v28  ;;  %v3437_v28 = vld [vmem:[%s10689_s15 + $0x78] sm:$0xff] }
 0x807   : > { %v8746_v13 = vpack.c.bf16 %v3437_v28, %v3436_v2 }
 0x809   : > { %8703 = vmatpush3.bf16.msra.mxu0 %v8702_v19 }
 0x80a   : > { %8705 = vmatprep.subr.bf16.mxu0 %v8704_v62 }
 0x80d   : > { %8707 = vmatpush3.bf16.msra.mxu0 %v8706_v23 }
 0x80e   : > { %8709 = vmatprep.subr.bf16.mxu0 %v8708_v24 }
 0x811   : > { %8711 = vmatpush3.bf16.msra.mxu0 %v8710_v32 }
 0x812   : > { %8713 = vmatprep.subr.bf16.mxu0 %v8712_v33  ;;  %v6972_v33 = vld [vmem:[%s10691_s18] ss:$0 sm:$0xff] }
 0x815   : > { %8715 = vmatpush3.bf16.msra.mxu0 %v8714_v38  ;;  %v3538_v38 = vld [vmem:[%s10692_s22 + $0x8] sm:$0xff] }
 0x816   : > { %8717 = vmatprep.subr.bf16.mxu0 %v8716_v39  ;;  %v8755_v39 = vpack.c.bf16 %v3538_v38, %v3537_v36  ;;  %v7002_v36 = vld [vmem:[%s10689_s15 + $0xb0] sm:$0xff]  ;;  %v7003_v38 = vld [vmem:[%s10689_s15 + $0xb8] sm:$0xff] }
 0x819   : > { %8719 = vmatpush3.bf16.msra.mxu0 %v8718_v45  ;;  %v3540_v45 = vld [vmem:[%s10692_s22 + $0x18] sm:$0xff] }
 0x81a   : > { %8721 = vmatprep.subr.bf16.mxu0 %v8720_v48  ;;  %v8758_v48 = vpack.c.bf16 %v3540_v45, %v3539_v44 }
 0x81d   : > { %8723 = vmatpush3.bf16.msra.mxu0 %v8722_v52  ;;  %v8752_v52 = vpack.c.bf16 %v6979_v50, %v6978_v49 }
 0x81e   : > { %8748 = vmatprep.subr.bf16.mxu0 %v9298_v58 }
 0x820   : > { %3398 = vmatmul.mubr.f32.vlgmr.msra.gmra.mrb[22].mxu0 %v9928_v3  ;;  %v3427_v3 = vld [vmem:[%s10689_s15 + $0x28] sm:$0xff] }
 0x821   : > { %v8731_v54 = vpack.c.bf16 %v3427_v3, %v3426_v61  ;;  %8001 = vmatprep.mubr.msk.f32.mxu0 %vm9299_vm5, %v9297_v47  ;;  %8750 = vmatpush3.bf16.msra.mxu0 %v8749_v43  ;;  %v8785_v43 = vpack.c.bf16 %v7005_v42, %v7004_v41  ;;  %v7018_v42 = vld [vmem:[%s10692_s22 + $0x60] sm:$0xff] }
 0x822   : > { %8751 = vmatprep.subr.bf16.mxu0 %v9298_v58 }
 0x823   : > { %8732 = vmatpush3.bf16.msra.mxu1 %v8731_v54 }
 0x824   : > { %8733 = vmatprep.subr.bf16.mxu1 %v9298_v58 }
 0x825   : > { %8753 = vmatpush3.bf16.msra.mxu0 %v8752_v52 }
 0x826   : > { %8760 = vmatprep.subr.bf16.mxu0 %v9298_v58 }
 0x827   : > { %8735 = vmatpush3.bf16.msra.mxu1 %v8734_v1  ;;  %v6983_v1 = vld [vmem:[%s10692_s22 + $0x48] sm:$0xff] }
 0x828   : > { %8736 = vmatprep.subr.bf16.mxu1 %v9298_v58  ;;  %v8761_v12 = vpack.c.bf16 %v6983_v1, %v6982_v0  ;;  %v7007_v0 = vld [vmem:[%s10689_s15 + $0xd8] sm:$0xff] }
 0x82b   : > { %8738 = vmatpush3.bf16.msra.mxu1 %v8737_v5 }
 0x82c   : > { %8739 = vmatprep.subr.bf16.mxu1 %v9298_v58 }
 0x82f   : > { %8741 = vmatpush3.bf16.msra.mxu1 %v8740_v7  ;;  %v6984_v7 = vld [vmem:[%s10692_s22 + $0x50] sm:$0xff] }
 0x830   : > { %8742 = vmatprep.subr.bf16.mxu1 %v9298_v58 }
 0x833   : > { %8744 = vmatpush3.bf16.msra.mxu1 %v8743_v11  ;;  %v8764_v11 = vpack.c.bf16 %v6985_v9, %v6984_v7  ;;  %v6990_v9 = vld [vmem:[%s10700_s4] ss:$0 sm:$0xff] }
 0x834   : > { %8745 = vmatprep.subr.bf16.mxu1 %v9298_v58 }
 0x837   : > { %8747 = vmatpush3.bf16.msra.mxu1 %v8746_v13 }
 0x838   : > { %8754 = vmatprep.subr.bf16.mxu1 %v9298_v58 }
 0x8b0   : > { %v7530_v14 = vpop.f32.mrb[12].mxu1 }
 0x8b1   : > { %v7531_v16 = vpop.f32.mrb[13].mxu1 }
 0x8b2   : > { %v7532_v18 = vadd.f32 %v7531_v16, %v7530_v14  ;;  %v3802_v14 = vld [vmem:[%s10696_s1] sm:$0xff]  ;;  %v3803_v16 = vld [vmem:[%s10696_s1 + $0x8] sm:$0xff] }
 0x8b3   : > { %v10031_v19 = vpop.f32.mrb[16].mxu0 }
 0x8b4   : > { %v10033_v62 = vpop.f32.mrb[17].mxu0 }
 0x8b7   : > { %v10035_v55 = vpop.f32.mrb[18].mxu0 }
 0x8b8   : > { %v10037_v20 = vpop.f32.mrb[19].mxu0 }
 0x8d3   : > { %v7495_v8 = vpop.f32.mrb[20].mxu0 }
 0x8d4   : > { %v7496_v21 = vpop.f32.mrb[21].mxu0 }
 0x8d5   : > { %v7497_v23 = vadd.f32 %v7496_v21, %v7495_v8  ;;  %v3804_v8 = vld [vmem:[%s10696_s1 + $0x10] sm:$0xff]  ;;  %v3805_v21 = vld [vmem:[%s10696_s1 + $0x18] sm:$0xff] }
 0x8d7   : > { %v3403_v24 = vmax.f32 %v7497_v23, %v7532_v18  ;;  %v8767_v18 = vpack.c.bf16 %v3803_v16, %v3802_v14  ;;  %v8770_v23 = vpack.c.bf16 %v3805_v21, %v3804_v8  ;;  %v6995_v14 = vld [vmem:[%s10691_s18 + $0x1] ss:$0 sm:$0xff] }
 0x8d8   : > { %v7022_v21 = vld [vmem:[%s10692_s22 + $0x80] sm:$0xff] }
 0x8f3   : > { %v7565_v27 = vpop.f32.mrb[22].mxu0 }
 0x8f4   : > { %v7566_v29 = vpop.f32.mrb[23].mxu0 }
 0x8f5   : > { %v7567_v30 = vadd.f32 %v7566_v29, %v7565_v27  ;;  %v6997_v27 = vld [vmem:[%s10689_s15 + $0x88] sm:$0xff]  ;;  %v6998_v29 = vld [vmem:[%s10689_s15 + $0x90] sm:$0xff] }
 0x8f7   : > { %v10040_v32 = vmax.f32 %v3403_v24, %v7567_v30  ;;  %v6996_v24 = vld [vmem:[%s10689_s15 + $0x80] sm:$0xff] }
 0x8f8   : > { %v8773_v30 = vpack.c.bf16 %v6997_v27, %v6996_v24  ;;  %v7025_v27 = vld [vmem:[%s10692_s22 + $0x98] sm:$0xff] }
 0x8f9   : > { %v3412_v34 = vmul.f32 %v6971_v31, %v10040_v32  ;;  %v6999_v31 = vld [vmem:[%s10689_s15 + $0x98] sm:$0xff] }
 0x8fb   : > { %v3420_v35 = vadd.f32 %v6972_v33, %v3412_v34  ;;  %v8776_v33 = vpack.c.bf16 %v6999_v31, %v6998_v29  ;;  %v7000_v34 = vld [vmem:[%s10689_s15 + $0xa0] sm:$0xff] }
 0x8fd   : > { %v3421_v37 = vmax.f32 %v3420_v35, 0.0  ;;  %v7001_v35 = vld [vmem:[%s10689_s15 + $0xa8] sm:$0xff] }
 0x8ff   : > { %7991 = vmatmul.mubr.f32.vlgmr.msra.gmra.mrb[14].mxu1 %v3421_v37  ;;  %v8779_v37 = vpack.c.bf16 %v7001_v35, %v7000_v34 }
 0x900   : > { %8012 = vmatprep.mubr.msk.f32.mxu1 %vm9299_vm5, %v9297_v47  ;;  %8756 = vmatpush3.bf16.msra.mxu1 %v8755_v39  ;;  %v8782_v39 = vpack.c.bf16 %v7003_v38, %v7002_v36 }
 0x901   : > { %8757 = vmatprep.subr.bf16.mxu1 %v9298_v58 }
 0x904   : > { %8759 = vmatpush3.bf16.msra.mxu1 %v8758_v48 }
 0x905   : > { %8766 = vmatprep.subr.bf16.mxu1 %v9298_v58 }
 0x9d2   : > { %v3511_v56 = vpop.f32.mrb[14].mxu1 }
 0x9d3   : > { %v3512_v59 = vadd.f32 %v6973_v53, %v3511_v56  ;;  %v7992_v46 = vpop.f32.mrb[15].mxu1  ;;  %v6987_v53 = vld [vmem:[%s10697_s2] ss:$0 sm:$0xff] }
 0x9d5   : > { %v3522_v61 = vmul.f32 %v6974_v57, %v3512_v59  ;;  %v6988_v59 = vld [vmem:[%s10698_s11] ss:$0 sm:$0xff] }
 0x9d7   : > { %v3530_v3 = vadd.f32 %v6975_v60, %v3522_v61  ;;  %v6989_v60 = vld [vmem:[%s10699_s0] ss:$0 sm:$0xff] }
 0x9d9   : > { %v3531_v54 = vmax.f32 %v3530_v3, 0.0 }
 0x9db   : > { %v3533_v63 = vrot.slane %v3531_v54, 7 }
 0x9dd   : > { %v3536_v51 = vsel %vm1303_vm0, %v3533_v63, 0.0  ;;  %v3535_v4 = vsel %vm1303_vm0, 0.0, %v3533_v63  ;;  %v7006_v63 = vld [vmem:[%s10689_s15 + $0xd0] sm:$0xff] }
 0x9de   : > { %v3549_v5 = vrot.slane %v3536_v51, 1  ;;  %v3548_v6 = vrot.slane %v3535_v4, 1  ;;  %8013 = vmatmul.mubr.msk.f32.vlgmr.msra.gmra.mrb[16].mxu1 %vm3551_vm6, %v3535_v4  ;;  %v3702_v2 = vrot.slane %v3536_v51, 2  ;;  %v3701_v28 = vrot.slane %v3535_v4, 2  ;;  %v7008_v51 = vld [vmem:[%s10689_s15 + $0xe0] sm:$0xff]  ;;  %v7009_v4 = vld [vmem:[%s10689_s15 + $0xe8] sm:$0xff] }
 0x9df   : > { %8034 = vmatprep.mubr.msk.f32.mxu1 %vm9299_vm5, %v9297_v47  ;;  %8768 = vmatpush3.bf16.msra.mxu1 %v8767_v18  ;;  %v8788_v1 = vpack.c.bf16 %v7007_v0, %v7006_v63 }
 0x9e0   : > { %v3550_v10 = vsel %vm1330_vm1, %v3548_v6, %v3549_v5  ;;  %v3703_v13 = vsel %vm1504_vm3, %v3701_v28, %v3702_v2  ;;  %8769 = vmatprep.subr.bf16.mxu1 %v9298_v58  ;;  %v8791_v5 = vpack.c.bf16 %v7009_v4, %v7008_v51  ;;  %v7010_v6 = vld [vmem:[%s10689_s15 + $0xf0] sm:$0xff]  ;;  %v6993_v28 = vld [vmem:[%s10690_s16 + $0x1] ss:$0 sm:$0xff]  ;;  %v7040_v4 = vld [vmem:[%s10696_s1 + $0x28] sm:$0xff] }
 0x9e1   : > { %8002 = vmatmul.mubr.msk.f32.vlgmr.msra.gmra.mrb[24].mxu0 %vm3551_vm6, %v3550_v10  ;;  %v7039_v51 = vld [vmem:[%s10696_s1 + $0x20] sm:$0xff] }
 0x9e2   : > { %8762 = vmatpush3.bf16.msra.mxu0 %v8761_v12  ;;  %8023 = vmatprep.mubr.msk.f32.mxu0 %vm9299_vm5, %v9297_v47  ;;  %v7011_v12 = vld [vmem:[%s10689_s15 + $0xf8] sm:$0xff] }
 0x9e3   : > { %8763 = vmatprep.subr.bf16.mxu0 %v9298_v58  ;;  %8771 = vmatpush3.bf16.msra.mxu1 %v8770_v23  ;;  %v8794_v7 = vpack.c.bf16 %v7011_v12, %v7010_v6  ;;  %v7023_v23 = vld [vmem:[%s10692_s22 + $0x88] sm:$0xff]  ;;  %v7041_v6 = vld [vmem:[%s10696_s1 + $0x30] sm:$0xff]  ;;  %v7042_v12 = vld [vmem:[%s10696_s1 + $0x38] sm:$0xff] }
 0x9e4   : > { %8796 = vmatprep.subr.bf16.mxu1 %v9298_v58  ;;  %v8797_v24 = vpack.c.bf16 %v7023_v23, %v7022_v21  ;;  %v7056_v21 = vld [vmem:[%s10689_s15 + $0x130] sm:$0xff]  ;;  %v7057_v23 = vld [vmem:[%s10689_s15 + $0x138] sm:$0xff] }
 0x9e6   : > { %8765 = vmatpush3.bf16.msra.mxu0 %v8764_v11 }
 0x9e7   : > { %8772 = vmatprep.subr.bf16.mxu0 %v9298_v58 }
 0x9e9   : > { %8024 = vmatmul.mubr.msk.f32.vlgmr.msra.gmra.mrb[26].mxu0 %vm3551_vm6, %v3703_v13 }
 0x9ea   : > { %8069 = vmatprep.mubr.msk.f32.mxu0 %vm9299_vm5, %v9297_v47  ;;  %8774 = vmatpush3.bf16.msra.mxu0 %v8773_v30  ;;  %v7013_v30 = vld [vmem:[%s10693_s23 + $0x1] ss:$0 sm:$0xff] }
 0x9eb   : > { %8775 = vmatprep.subr.bf16.mxu0 %v9298_v58 }
 0x9ee   : > { %8777 = vmatpush3.bf16.msra.mxu0 %v8776_v33  ;;  %v7015_v33 = vld [vmem:[%s10694_s26 + $0x1] ss:$0 sm:$0xff] }
 0x9ef   : > { %8778 = vmatprep.subr.bf16.mxu0 %v9298_v58 }
 0x9f2   : > { %8780 = vmatpush3.bf16.msra.mxu0 %v8779_v37  ;;  %v7017_v37 = vld [vmem:[%s10695_s28 + $0x1] ss:$0 sm:$0xff] }
 0x9f3   : > { %8781 = vmatprep.subr.bf16.mxu0 %v9298_v58 }
 0x9f6   : > { %8783 = vmatpush3.bf16.msra.mxu0 %v8782_v39 }
 0x9f7   : > { %8784 = vmatprep.subr.bf16.mxu0 %v9298_v58 }
 0x9fa   : > { %8786 = vmatpush3.bf16.msra.mxu0 %v8785_v43  ;;  %v7019_v43 = vld [vmem:[%s10692_s22 + $0x68] sm:$0xff] }
 0x9fb   : > { %8787 = vmatprep.subr.bf16.mxu0 %v9298_v58 }
 0x9fe   : > { %8789 = vmatpush3.bf16.msra.mxu0 %v8788_v1 }
 0x9ff   : > { %8790 = vmatprep.subr.bf16.mxu0 %v9298_v58 }
 0xa02   : > { %8792 = vmatpush3.bf16.msra.mxu0 %v8791_v5  ;;  %v8815_v5 = vpack.c.bf16 %v7040_v4, %v7039_v51  ;;  %v7049_v51 = vld [vmem:[%s10691_s18 + $0x2] ss:$0 sm:$0xff] }
 0xa03   : > { %8793 = vmatprep.subr.bf16.mxu0 %v9298_v58 }
 0xa06   : > { %8795 = vmatpush3.bf16.msra.mxu0 %v8794_v7  ;;  %v8818_v7 = vpack.c.bf16 %v7042_v12, %v7041_v6  ;;  %v7076_v12 = vld [vmem:[%s10692_s22 + $0xe0] sm:$0xff] }
 0xa07   : > { %8820 = vmatprep.subr.bf16.mxu0 %v9298_v58 }
 0xab1   : > { %v3692_v44 = vpop.f32.mrb[16].mxu1 }
 0xab2   : > { %v8014_v45 = vpop.f32.mrb[17].mxu1 }
 0xab4   : > { %v3620_v48 = vpop.f32.mrb[24].mxu0 }
 0xab5   : > { %v3693_v49 = vadd.f32 %v3692_v44, %v3620_v48  ;;  %v8003_v50 = vpop.f32.mrb[25].mxu0 }
 0xab6   : > { %v8803_v50 = vpack.c.bf16 %v7019_v43, %v7018_v42  ;;  %v7038_v43 = vld [vmem:[%s10699_s0 + $0x1] ss:$0 sm:$0xff] }
 0xabc   : > { %v3772_v52 = vpop.f32.mrb[26].mxu0 }
 0xabd   : > { %v3776_v56 = vadd.f32 %v3772_v52, %v3693_v49  ;;  %v8025_v57 = vpop.f32.mrb[27].mxu0  ;;  %v7020_v52 = vld [vmem:[%s10692_s22 + $0x70] sm:$0xff] }
 0xabf   : > { %v3784_v46 = vadd.f32 %v6987_v53, %v3776_v56  ;;  %v7021_v53 = vld [vmem:[%s10692_s22 + $0x78] sm:$0xff] }
 0xac0   : > { %v8806_v57 = vpack.c.bf16 %v7021_v53, %v7020_v52  ;;  %v7062_v53 = vld [vmem:[%s10689_s15 + $0x160] sm:$0xff] }
 0xac1   : > { %v3792_v61 = vmul.f32 %v6988_v59, %v3784_v46  ;;  %v7028_v59 = vld [vmem:[%s10692_s22 + $0xa0] sm:$0xff]  ;;  %v7029_v46 = vld [vmem:[%s10692_s22 + $0xa8] sm:$0xff] }
 0xac3   : > { %v3800_v3 = vadd.f32 %v6989_v60, %v3792_v61  ;;  %v8809_v60 = vpack.c.bf16 %v7029_v46, %v7028_v59  ;;  %v7030_v61 = vld [vmem:[%s10692_s22 + $0xb0] sm:$0xff]  ;;  %v7065_v46 = vld [vmem:[%s10689_s15 + $0x178] sm:$0xff] }
 0xac4   : > { %v7064_v59 = vld [vmem:[%s10689_s15 + $0x170] sm:$0xff] }
 0xac5   : > { %v3801_v54 = vmax.f32 %v3800_v3, 0.0  ;;  %v7031_v3 = vld [vmem:[%s10692_s22 + $0xb8] sm:$0xff] }
 0xac7   : > { %8035 = vmatmul.mubr.msk.f32.vlgmr.msra.gmra.mrb[18].mxu1 %vm3551_vm6, %v3801_v54  ;;  %v8812_v54 = vpack.c.bf16 %v7031_v3, %v7030_v61  ;;  %v7044_v61 = vld [vmem:[%s10700_s4 + $0x1] ss:$0 sm:$0xff] }
 0xac8   : > { %8080 = vmatprep.mubr.msk.f32.mxu1 %vm9299_vm5, %v9297_v47  ;;  %8798 = vmatpush3.bf16.msra.mxu1 %v8797_v24  ;;  %v8830_v24 = vpack.c.bf16 %v7057_v23, %v7056_v21 }
 0xac9   : > { %8799 = vmatprep.subr.bf16.mxu1 %v9298_v58 }
 0xb9a   : > { %v3882_v10 = vpop.f32.mrb[18].mxu1 }
 0xb9b   : > { %v3883_v11 = vadd.f32 %v6990_v9, %v3882_v10  ;;  %v8036_v2 = vpop.f32.mrb[19].mxu1  ;;  %v7050_v9 = vld [vmem:[%s10689_s15 + $0x100] sm:$0xff]  ;;  %v7051_v10 = vld [vmem:[%s10689_s15 + $0x108] sm:$0xff] }
 0xb9c   : > { %v8821_v2 = vpack.c.bf16 %v7051_v10, %v7050_v9  ;;  %v7079_v10 = vld [vmem:[%s10692_s22 + $0xf8] sm:$0xff] }
 0xb9d   : > { %v10119_v13 = vadd.f32 %v3883_v11, %v10040_v32  ;;  %v7024_v32 = vld [vmem:[%s10692_s22 + $0x90] sm:$0xff] }
 0xb9e   : > { %v8800_v29 = vpack.c.bf16 %v7025_v27, %v7024_v32  ;;  %v7052_v11 = vld [vmem:[%s10689_s15 + $0x110] sm:$0xff]  ;;  %v7058_v32 = vld [vmem:[%s10689_s15 + $0x140] sm:$0xff]  ;;  %v7059_v27 = vld [vmem:[%s10689_s15 + $0x148] sm:$0xff] }
 0xb9f   : > { %v3895_v16 = vmul.f32 %v6993_v28, %v10119_v13  ;;  %v7053_v28 = vld [vmem:[%s10689_s15 + $0x118] sm:$0xff] }
 0xba0   : > { %8801 = vmatpush3.bf16.msra.mxu1 %v8800_v29  ;;  %v8833_v29 = vpack.c.bf16 %v7059_v27, %v7058_v32  ;;  %v7072_v27 = vld [vmem:[%s10692_s22 + $0xc0] sm:$0xff] }
 0xba1   : > { %v3904_v18 = vadd.f32 %v6995_v14, %v3895_v16  ;;  %8802 = vmatprep.subr.bf16.mxu1 %v9298_v58  ;;  %v8824_v14 = vpack.c.bf16 %v7053_v28, %v7052_v11  ;;  %v7054_v16 = vld [vmem:[%s10689_s15 + $0x120] sm:$0xff] }
 0xba3   : > { %v3905_v8 = vmax.f32 %v3904_v18, 0.0  ;;  %v7055_v18 = vld [vmem:[%s10689_s15 + $0x128] sm:$0xff] }
 0xba5   : > { %8070 = vmatmul.mubr.f32.vlgmr.msra.gmra.mrb[28].mxu0 %v3905_v8  ;;  %v8827_v8 = vpack.c.bf16 %v7055_v18, %v7054_v16 }
 0xba6   : > { %8148 = vmatprep.mubr.msk.f32.mxu0 %vm9299_vm5, %v9297_v47  ;;  %8822 = vmatpush3.bf16.msra.mxu0 %v8821_v2  ;;  %v7067_v2 = vld [vmem:[%s10693_s23 + $0x2] ss:$0 sm:$0xff] }
 0xba7   : > { %8823 = vmatprep.subr.bf16.mxu0 %v9298_v58 }
 0xbaa   : > { %8825 = vmatpush3.bf16.msra.mxu0 %v8824_v14  ;;  %v7069_v14 = vld [vmem:[%s10694_s26 + $0x2] ss:$0 sm:$0xff] }
 0xbab   : > { %8826 = vmatprep.subr.bf16.mxu0 %v9298_v58 }
 0xbae   : > { %8828 = vmatpush3.bf16.msra.mxu0 %v8827_v8  ;;  %v7071_v8 = vld [vmem:[%s10695_s28 + $0x2] ss:$0 sm:$0xff] }
 0xbaf   : > { %8829 = vmatprep.subr.bf16.mxu0 %v9298_v58 }
 0xbb2   : > { %8831 = vmatpush3.bf16.msra.mxu0 %v8830_v24 }
 0xbb3   : > { %8832 = vmatprep.subr.bf16.mxu0 %v9298_v58 }
 0xbb6   : > { %8834 = vmatpush3.bf16.msra.mxu0 %v8833_v29  ;;  %v7073_v29 = vld [vmem:[%s10692_s22 + $0xc8] sm:$0xff] }
 0xbb7   : > { %8835 = vmatprep.subr.bf16.mxu0 %v9298_v58 }
 0xc78   : > { %v3997_v31 = vpop.f32.mrb[28].mxu0 }
 0xc79   : > { %v3998_v34 = vadd.f32 %v7013_v30, %v3997_v31  ;;  %v8071_v35 = vpop.f32.mrb[29].mxu0 }
 0xc7b   : > { %v4009_v36 = vmul.f32 %v7015_v33, %v3998_v34 }
 0xc7d   : > { %v4018_v38 = vadd.f32 %v7017_v37, %v4009_v36  ;;  %v7034_v36 = vld [vmem:[%s10697_s2 + $0x1] ss:$0 sm:$0xff] }
 0xc7f   : > { %v4019_v39 = vmax.f32 %v4018_v38, 0.0 }
 0xc81   : > { %v4021_v41 = vrot.slane %v4019_v39, 7 }
 0xc83   : > { %v4023_v44 = vsel %vm1303_vm0, 0.0, %v4021_v41  ;;  %v4024_v45 = vsel %vm1303_vm0, %v4021_v41, 0.0  ;;  %v7036_v41 = vld [vmem:[%s10698_s11 + $0x1] ss:$0 sm:$0xff] }
 0xc84   : > { %v4037_v48 = vrot.slane %v4023_v44, 1  ;;  %v4038_v49 = vrot.slane %v4024_v45, 1  ;;  %v4189_v63 = vrot.slane %v4023_v44, 2  ;;  %v4190_v0 = vrot.slane %v4024_v45, 2 }
 0xc86   : > { %v4039_v56 = vsel %vm1330_vm1, %v4037_v48, %v4038_v49  ;;  %v4191_v1 = vsel %vm1504_vm3, %v4189_v63, %v4190_v0  ;;  %v7060_v49 = vld [vmem:[%s10689_s15 + $0x150] sm:$0xff]  ;;  %v7047_v0 = vld [vmem:[%s10690_s16 + $0x2] ss:$0 sm:$0xff] }
 0xc87   : > { %8081 = vmatmul.mubr.msk.f32.vlgmr.msra.gmra.mrb[20].mxu1 %vm3551_vm6, %v4039_v56  ;;  %v7063_v56 = vld [vmem:[%s10689_s15 + $0x168] sm:$0xff] }
 0xc88   : > { %8804 = vmatpush3.bf16.msra.mxu1 %v8803_v50  ;;  %8091 = vmatprep.mubr.msk.f32.mxu1 %vm9299_vm5, %v9297_v47  ;;  %v7061_v50 = vld [vmem:[%s10689_s15 + $0x158] sm:$0xff] }
 0xc89   : > { %8805 = vmatprep.subr.bf16.mxu1 %v9298_v58  ;;  %v8836_v52 = vpack.c.bf16 %v7061_v50, %v7060_v49 }
 0xc8b   : > { %8837 = vmatpush3.bf16.msra.mxu0 %v8836_v52 }
 0xc8c   : > { %8807 = vmatpush3.bf16.msra.mxu1 %v8806_v57  ;;  %8838 = vmatprep.subr.bf16.mxu0 %v9298_v58  ;;  %v8839_v57 = vpack.c.bf16 %v7063_v56, %v7062_v53  ;;  %v7093_v53 = vld [vmem:[%s10696_s1 + $0x40] sm:$0xff]  ;;  %v7094_v56 = vld [vmem:[%s10696_s1 + $0x48] sm:$0xff] }
 0xc8d   : > { %8808 = vmatprep.subr.bf16.mxu1 %v9298_v58 }
 0xc8f   : > { %8092 = vmatmul.mubr.msk.f32.vlgmr.msra.gmra.mrb[22].mxu1 %vm3551_vm6, %v4023_v44  ;;  %8840 = vmatpush3.bf16.msra.mxu0 %v8839_v57  ;;  %v8863_v57 = vpack.c.bf16 %v7094_v56, %v7093_v53  ;;  %v7103_v53 = vld [vmem:[%s10691_s18 + $0x3] ss:$0 sm:$0xff] }
 0xc90   : > { %8810 = vmatpush3.bf16.msra.mxu1 %v8809_v60  ;;  %8102 = vmatprep.mubr.msk.f32.mxu1 %vm9299_vm5, %v9297_v47  ;;  %v8842_v60 = vpack.c.bf16 %v7065_v46, %v7064_v59  ;;  %v7095_v59 = vld [vmem:[%s10696_s1 + $0x50] sm:$0xff]  ;;  %v7096_v46 = vld [vmem:[%s10696_s1 + $0x58] sm:$0xff] }
 0xc91   : > { %8811 = vmatprep.subr.bf16.mxu1 %v9298_v58  ;;  %8841 = vmatprep.subr.bf16.mxu0 %v9298_v58 }
 0xc93   : > { %8843 = vmatpush3.bf16.msra.mxu0 %v8842_v60  ;;  %v8866_v60 = vpack.c.bf16 %v7096_v46, %v7095_v59  ;;  %v7130_v46 = vld [vmem:[%s10692_s22 + $0x140] sm:$0xff] }
 0xc94   : > { %8813 = vmatpush3.bf16.msra.mxu1 %v8812_v54  ;;  %8868 = vmatprep.subr.bf16.mxu0 %v9298_v58 }
 0xc95   : > { %8814 = vmatprep.subr.bf16.mxu1 %v9298_v58 }
 0xc97   : > { %8103 = vmatmul.mubr.msk.f32.vlgmr.msra.gmra.mrb[24].mxu1 %vm3551_vm6, %v4191_v1 }
 0xc98   : > { %8113 = vmatprep.mubr.msk.f32.mxu1 %vm9299_vm5, %v9297_v47  ;;  %8816 = vmatpush3.bf16.msra.mxu1 %v8815_v5 }
 0xc99   : > { %8817 = vmatprep.subr.bf16.mxu1 %v9298_v58 }
 0xc9c   : > { %8819 = vmatpush3.bf16.msra.mxu1 %v8818_v7  ;;  %v7077_v7 = vld [vmem:[%s10692_s22 + $0xe8] sm:$0xff] }
 0xc9d   : > { %8844 = vmatprep.subr.bf16.mxu1 %v9298_v58  ;;  %v8845_v9 = vpack.c.bf16 %v7077_v7, %v7076_v12  ;;  %v7110_v12 = vld [vmem:[%s10689_s15 + $0x1b0] sm:$0xff]  ;;  %v7111_v7 = vld [vmem:[%s10689_s15 + $0x1b8] sm:$0xff] }
 0xd5a   : > { %v4108_v30 = vpop.f32.mrb[20].mxu1 }
 0xd5b   : > { %v8082_v31 = vpop.f32.mrb[21].mxu1 }
 0xd62   : > { %v4180_v33 = vpop.f32.mrb[22].mxu1 }
 0xd63   : > { %v4181_v34 = vadd.f32 %v4180_v33, %v4108_v30  ;;  %v8093_v35 = vpop.f32.mrb[23].mxu1 }
 0xd64   : > { %v8851_v35 = vpack.c.bf16 %v7073_v29, %v7072_v27  ;;  %v7092_v29 = vld [vmem:[%s10699_s0 + $0x2] ss:$0 sm:$0xff] }
 0xd6a   : > { %v4260_v37 = vpop.f32.mrb[24].mxu1 }
 0xd6b   : > { %v4264_v38 = vadd.f32 %v4260_v37, %v4181_v34  ;;  %v8104_v39 = vpop.f32.mrb[25].mxu1  ;;  %v7074_v37 = vld [vmem:[%s10692_s22 + $0xd0] sm:$0xff] }
 0xd6d   : > { %v4273_v42 = vadd.f32 %v7034_v36, %v4264_v38  ;;  %v7075_v36 = vld [vmem:[%s10692_s22 + $0xd8] sm:$0xff] }
 0xd6e   : > { %v8854_v39 = vpack.c.bf16 %v7075_v36, %v7074_v37  ;;  %v7116_v36 = vld [vmem:[%s10689_s15 + $0x1e0] sm:$0xff] }
 0xd6f   : > { %v4282_v44 = vmul.f32 %v7036_v41, %v4273_v42  ;;  %v7082_v41 = vld [vmem:[%s10692_s22 + $0x100] sm:$0xff]  ;;  %v7083_v42 = vld [vmem:[%s10692_s22 + $0x108] sm:$0xff] }
 0xd71   : > { %v4291_v45 = vadd.f32 %v7038_v43, %v4282_v44  ;;  %v8857_v43 = vpack.c.bf16 %v7083_v42, %v7082_v41  ;;  %v7084_v44 = vld [vmem:[%s10692_s22 + $0x110] sm:$0xff]  ;;  %v7119_v42 = vld [vmem:[%s10689_s15 + $0x1f8] sm:$0xff] }
 0xd72   : > { %v7118_v41 = vld [vmem:[%s10689_s15 + $0x1f0] sm:$0xff] }
 0xd73   : > { %v4292_v48 = vmax.f32 %v4291_v45, 0.0  ;;  %v7085_v45 = vld [vmem:[%s10692_s22 + $0x118] sm:$0xff] }
 0xd75   : > { %8114 = vmatmul.mubr.msk.f32.vlgmr.msra.gmra.mrb[26].mxu1 %vm3551_vm6, %v4292_v48  ;;  %v8860_v48 = vpack.c.bf16 %v7085_v45, %v7084_v44  ;;  %v7098_v44 = vld [vmem:[%s10700_s4 + $0x2] ss:$0 sm:$0xff] }
 0xd76   : > { %8159 = vmatprep.mubr.msk.f32.mxu1 %vm9299_vm5, %v9297_v47  ;;  %8846 = vmatpush3.bf16.msra.mxu1 %v8845_v9  ;;  %v8878_v9 = vpack.c.bf16 %v7111_v7, %v7110_v12 }
 0xd77   : > { %8847 = vmatprep.subr.bf16.mxu1 %v9298_v58 }
 0xe48   : > { %v4375_v3 = vpop.f32.mrb[26].mxu1 }
 0xe49   : > { %v4376_v54 = vadd.f32 %v7044_v61, %v4375_v3  ;;  %v8115_v63 = vpop.f32.mrb[27].mxu1  ;;  %v7104_v61 = vld [vmem:[%s10689_s15 + $0x180] sm:$0xff]  ;;  %v7105_v3 = vld [vmem:[%s10689_s15 + $0x188] sm:$0xff] }
 0xe4a   : > { %v8869_v63 = vpack.c.bf16 %v7105_v3, %v7104_v61  ;;  %v7132_v3 = vld [vmem:[%s10692_s22 + $0x150] sm:$0xff] }
 0xe4b   : > { %v10198_v1 = vadd.f32 %v4376_v54, %v10119_v13  ;;  %v7078_v13 = vld [vmem:[%s10692_s22 + $0xf0] sm:$0xff] }
 0xe4c   : > { %v8848_v11 = vpack.c.bf16 %v7079_v10, %v7078_v13  ;;  %v7106_v54 = vld [vmem:[%s10689_s15 + $0x190] sm:$0xff]  ;;  %v7112_v13 = vld [vmem:[%s10689_s15 + $0x1c0] sm:$0xff]  ;;  %v7113_v10 = vld [vmem:[%s10689_s15 + $0x1c8] sm:$0xff] }
 0xe4d   : > { %v4388_v4 = vmul.f32 %v7047_v0, %v10198_v1  ;;  %v7107_v0 = vld [vmem:[%s10689_s15 + $0x198] sm:$0xff] }
 0xe4e   : > { %8849 = vmatpush3.bf16.msra.mxu1 %v8848_v11  ;;  %v8881_v11 = vpack.c.bf16 %v7113_v10, %v7112_v13  ;;  %v7126_v10 = vld [vmem:[%s10692_s22 + $0x120] sm:$0xff] }
 0xe4f   : > { %v4397_v5 = vadd.f32 %v7049_v51, %v4388_v4  ;;  %8850 = vmatprep.subr.bf16.mxu1 %v9298_v58  ;;  %v8872_v51 = vpack.c.bf16 %v7107_v0, %v7106_v54  ;;  %v7108_v4 = vld [vmem:[%s10689_s15 + $0x1a0] sm:$0xff] }
 0xe51   : > { %v4398_v6 = vmax.f32 %v4397_v5, 0.0  ;;  %v7109_v5 = vld [vmem:[%s10689_s15 + $0x1a8] sm:$0xff] }
 0xe53   : > { %8149 = vmatmul.mubr.f32.vlgmr.msra.gmra.mrb[30].mxu0 %v4398_v6  ;;  %v8875_v6 = vpack.c.bf16 %v7109_v5, %v7108_v4 }
 0xe54   : > { %8227 = vmatprep.mubr.msk.f32.mxu0 %vm9299_vm5, %v9297_v47  ;;  %8870 = vmatpush3.bf16.msra.mxu0 %v8869_v63  ;;  %v7121_v63 = vld [vmem:[%s10693_s23 + $0x3] ss:$0 sm:$0xff] }
 0xe55   : > { %8871 = vmatprep.subr.bf16.mxu0 %v9298_v58 }
 0xe58   : > { %8873 = vmatpush3.bf16.msra.mxu0 %v8872_v51  ;;  %v7123_v51 = vld [vmem:[%s10694_s26 + $0x3] ss:$0 sm:$0xff] }
 0xe59   : > { %8874 = vmatprep.subr.bf16.mxu0 %v9298_v58 }
 0xe5c   : > { %8876 = vmatpush3.bf16.msra.mxu0 %v8875_v6  ;;  %v7125_v6 = vld [vmem:[%s10695_s28 + $0x3] ss:$0 sm:$0xff] }
 0xe5d   : > { %8877 = vmatprep.subr.bf16.mxu0 %v9298_v58 }
 0xe60   : > { %8879 = vmatpush3.bf16.msra.mxu0 %v8878_v9 }
 0xe61   : > { %8880 = vmatprep.subr.bf16.mxu0 %v9298_v58 }
 0xe64   : > { %8882 = vmatpush3.bf16.msra.mxu0 %v8881_v11  ;;  %v7127_v11 = vld [vmem:[%s10692_s22 + $0x128] sm:$0xff] }
 0xe65   : > { %8883 = vmatprep.subr.bf16.mxu0 %v9298_v58 }
 0xf26   : > { %v4490_v28 = vpop.f32.mrb[30].mxu0 }
 0xf27   : > { %v4491_v16 = vadd.f32 %v7067_v2, %v4490_v28  ;;  %v8150_v18 = vpop.f32.mrb[31].mxu0 }
 0xf29   : > { %v4502_v21 = vmul.f32 %v7069_v14, %v4491_v16 }
 0xf2b   : > { %v4511_v23 = vadd.f32 %v7071_v8, %v4502_v21  ;;  %v7088_v21 = vld [vmem:[%s10697_s2 + $0x2] ss:$0 sm:$0xff] }
 0xf2d   : > { %v4512_v24 = vmax.f32 %v4511_v23, 0.0 }
 0xf2f   : > { %v4514_v32 = vrot.slane %v4512_v24, 7 }
 0xf31   : > { %v4516_v30 = vsel %vm1303_vm0, 0.0, %v4514_v32  ;;  %v4517_v31 = vsel %vm1303_vm0, %v4514_v32, 0.0  ;;  %v7090_v32 = vld [vmem:[%s10698_s11 + $0x2] ss:$0 sm:$0xff] }
 0xf32   : > { %v4530_v33 = vrot.slane %v4516_v30, 1  ;;  %v4531_v34 = vrot.slane %v4517_v31, 1  ;;  %v4682_v49 = vrot.slane %v4516_v30, 2  ;;  %v4683_v50 = vrot.slane %v4517_v31, 2 }
 0xf34   : > { %v4532_v38 = vsel %vm1330_vm1, %v4530_v33, %v4531_v34  ;;  %v4684_v52 = vsel %vm1504_vm3, %v4682_v49, %v4683_v50  ;;  %v7114_v34 = vld [vmem:[%s10689_s15 + $0x1d0] sm:$0xff]  ;;  %v7101_v50 = vld [vmem:[%s10690_s16 + $0x3] ss:$0 sm:$0xff] }
 0xf35   : > { %8160 = vmatmul.mubr.msk.f32.vlgmr.msra.gmra.mrb[28].mxu1 %vm3551_vm6, %v4532_v38  ;;  %v7117_v38 = vld [vmem:[%s10689_s15 + $0x1e8] sm:$0xff] }
 0xf36   : > { %8852 = vmatpush3.bf16.msra.mxu1 %v8851_v35  ;;  %8170 = vmatprep.mubr.msk.f32.mxu1 %vm9299_vm5, %v9297_v47  ;;  %v7115_v35 = vld [vmem:[%s10689_s15 + $0x1d8] sm:$0xff] }
 0xf37   : > { %8853 = vmatprep.subr.bf16.mxu1 %v9298_v58  ;;  %v8884_v37 = vpack.c.bf16 %v7115_v35, %v7114_v34 }
 0xf39   : > { %8885 = vmatpush3.bf16.msra.mxu0 %v8884_v37 }
 0xf3a   : > { %8855 = vmatpush3.bf16.msra.mxu1 %v8854_v39  ;;  %8886 = vmatprep.subr.bf16.mxu0 %v9298_v58  ;;  %v8887_v39 = vpack.c.bf16 %v7117_v38, %v7116_v36  ;;  %v7147_v36 = vld [vmem:[%s10696_s1 + $0x60] sm:$0xff]  ;;  %v7148_v38 = vld [vmem:[%s10696_s1 + $0x68] sm:$0xff] }
 0xf3b   : > { %8856 = vmatprep.subr.bf16.mxu1 %v9298_v58 }
 0xf3d   : > { %8171 = vmatmul.mubr.msk.f32.vlgmr.msra.gmra.mrb[30].mxu1 %vm3551_vm6, %v4516_v30  ;;  %8888 = vmatpush3.bf16.msra.mxu0 %v8887_v39  ;;  %v8911_v39 = vpack.c.bf16 %v7148_v38, %v7147_v36 }
 0xf3e   : > { %8858 = vmatpush3.bf16.msra.mxu1 %v8857_v43  ;;  %8181 = vmatprep.mubr.msk.f32.mxu1 %vm9299_vm5, %v9297_v47  ;;  %v8890_v43 = vpack.c.bf16 %v7119_v42, %v7118_v41  ;;  %v7149_v41 = vld [vmem:[%s10696_s1 + $0x70] sm:$0xff]  ;;  %v7150_v42 = vld [vmem:[%s10696_s1 + $0x78] sm:$0xff]  ;;  %s10702_s1 = sld [smem:[#allocation20_spill]] }
 0xf3f   : > { %8859 = vmatprep.subr.bf16.mxu1 %v9298_v58  ;;  %8889 = vmatprep.subr.bf16.mxu0 %v9298_v58 }
 0xf41   : > { %8891 = vmatpush3.bf16.msra.mxu0 %v8890_v43  ;;  %v8914_v43 = vpack.c.bf16 %v7150_v42, %v7149_v41  ;;  %v5468_v41 = vld [vmem:[%s9488_s27 + $0x90] sm:$0xff]  ;;  %v5471_v42 = vld [vmem:[%s9488_s27 + $0xa8] sm:$0xff] }
 0xf42   : > { %8861 = vmatpush3.bf16.msra.mxu1 %v8860_v48 }
 0xf43   : > { %8862 = vmatprep.subr.bf16.mxu1 %v9298_v58 }
 0xf45   : > { %8182 = vmatmul.mubr.msk.f32.vlgmr.msra.gmra.mrb[32].mxu1 %vm3551_vm6, %v4684_v52 }
 0xf46   : > { %8192 = vmatprep.mubr.msk.f32.mxu1 %vm9299_vm5, %v9297_v47  ;;  %8864 = vmatpush3.bf16.msra.mxu1 %v8863_v57 }
 0xf47   : > { %8865 = vmatprep.subr.bf16.mxu1 %v9298_v58 }
 0xf4a   : > { %8867 = vmatpush3.bf16.msra.mxu1 %v8866_v60  ;;  %v7131_v60 = vld [vmem:[%s10692_s22 + $0x148] sm:$0xff] }
 0xf4b   : > { %8892 = vmatprep.subr.bf16.mxu1 %v9298_v58  ;;  %v8893_v61 = vpack.c.bf16 %v7131_v60, %v7130_v46  ;;  %v7144_v46 = vld [vmem:[%s10698_s11 + $0x3] ss:$0 sm:$0xff] }
 0xf4c   : > { %v7146_v60 = vld [vmem:[%s10699_s0 + $0x3] ss:$0 sm:$0xff]  ;;  %s10701_s0 = sld [smem:[#allocation16_spill]] }
0x1008   : > { %v4601_v2 = vpop.f32.mrb[28].mxu1 }
0x1009   : > { %v8161_v28 = vpop.f32.mrb[29].mxu1 }
0x1010   : > { %v4673_v14 = vpop.f32.mrb[30].mxu1 }
0x1011   : > { %v4674_v16 = vadd.f32 %v4673_v14, %v4601_v2  ;;  %v8172_v18 = vpop.f32.mrb[31].mxu1 }
0x1012   : > { %v8899_v18 = vpack.c.bf16 %v7127_v11, %v7126_v10 }
0x1018   : > { %v4753_v8 = vpop.f32.mrb[32].mxu1 }
0x1019   : > { %v4757_v23 = vadd.f32 %v4753_v8, %v4674_v16  ;;  %v8183_v24 = vpop.f32.mrb[33].mxu1  ;;  %v7128_v8 = vld [vmem:[%s10692_s22 + $0x130] sm:$0xff] }
0x101b   : > { %v4766_v27 = vadd.f32 %v7088_v21, %v4757_v23  ;;  %v7129_v21 = vld [vmem:[%s10692_s22 + $0x138] sm:$0xff] }
0x101c   : > { %v8902_v24 = vpack.c.bf16 %v7129_v21, %v7128_v8  ;;  %v5459_v8 = vld [vmem:[%s9488_s27 + $0x48] sm:$0xff]  ;;  %v5461_v21 = vld [vmem:[%s9488_s27 + $0x58] sm:$0xff] }
0x101d   : > { %v4775_v30 = vmul.f32 %v7090_v32, %v4766_v27  ;;  %v7136_v32 = vld [vmem:[%s10692_s22 + $0x160] sm:$0xff]  ;;  %v7137_v27 = vld [vmem:[%s10692_s22 + $0x168] sm:$0xff] }
0x101f   : > { %v4784_v31 = vadd.f32 %v7092_v29, %v4775_v30  ;;  %v8905_v29 = vpack.c.bf16 %v7137_v27, %v7136_v32  ;;  %v7138_v30 = vld [vmem:[%s10692_s22 + $0x170] sm:$0xff]  ;;  %v5463_v27 = vld [vmem:[%s9488_s27 + $0x68] sm:$0xff] }
0x1020   : > { %v5460_v32 = vld [vmem:[%s9488_s27 + $0x50] sm:$0xff] }
0x1021   : > { %v4785_v33 = vmax.f32 %v4784_v31, 0.0  ;;  %v7139_v31 = vld [vmem:[%s10692_s22 + $0x178] sm:$0xff] }
0x1023   : > { %8193 = vmatmul.mubr.msk.f32.vlgmr.msra.gmra.mrb[34].mxu1 %vm3551_vm6, %v4785_v33  ;;  %v8908_v33 = vpack.c.bf16 %v7139_v31, %v7138_v30 }
0x1024   : > { %8238 = vmatprep.mubr.msk.f32.mxu1 %vm9299_vm5, %v9297_v47  ;;  %8894 = vmatpush3.bf16.msra.mxu1 %v8893_v61 }
0x1025   : > { %8895 = vmatprep.subr.bf16.mxu1 %v9298_v58 }
0x10f6   : > { %v4868_v45 = vpop.f32.mrb[34].mxu1 }
0x10f7   : > { %v4869_v48 = vadd.f32 %v7098_v44, %v4868_v45  ;;  %v8194_v49 = vpop.f32.mrb[35].mxu1 }
0x10f9   : > { %v10276_v52 = vadd.f32 %v4869_v48, %v10198_v1  ;;  %v7133_v1 = vld [vmem:[%s10692_s22 + $0x158] sm:$0xff] }
0x10fa   : > { %v8896_v54 = vpack.c.bf16 %v7133_v1, %v7132_v3 }
0x10fb   : > { %v4881_v56 = vmul.f32 %v7101_v50, %v10276_v52 }
0x10fc   : > { %8897 = vmatpush3.bf16.msra.mxu1 %v8896_v54  ;;  %v5366_v54 = vld [vmem:[%s9483_s6] sm:$0xff] }
0x10fd   : > { %v4890_v57 = vadd.f32 %v7103_v53, %v4881_v56  ;;  %8898 = vmatprep.subr.bf16.mxu1 %v9298_v58  ;;  %v7142_v56 = vld [vmem:[%s10697_s2 + $0x3] ss:$0 sm:$0xff]  ;;  %s10704_s2 = sld [smem:[#allocation15_spill]] }
0x10ff   : > { %v4891_v59 = vmax.f32 %v4890_v57, 0.0 }
0x1101   : > { %8228 = vmatmul.mubr.f32.vlgmr.msra.gmra.mrb[32].mxu0 %v4891_v59 }
0x1102   : > { %8276 = vmatprep.mubr.msk.f32.mxu0 %vm5368_vm7, %v5366_v54  ;;  %v5480_v54 = vld [vmem:[%s9488_s27 + $0xf0] sm:$0xff] }
0x11d4   : > { %v4983_v0 = vpop.f32.mrb[32].mxu0 }
0x11d5   : > { %v4984_v4 = vadd.f32 %v7121_v63, %v4983_v0  ;;  %v8229_v5 = vpop.f32.mrb[33].mxu0  ;;  %v7152_v63 = vld [vmem:[%s10700_s4 + $0x3] ss:$0 sm:$0xff]  ;;  %s10707_s4 = sld [smem:[#allocation19_spill]] }
0x11d7   : > { %v4995_v12 = vmul.f32 %v7123_v51, %v4984_v4  ;;  %v5451_v51 = vld [vmem:[%s9488_s27 + $0x8] sm:$0xff]  ;;  %v5453_v4 = vld [vmem:[%s9488_s27 + $0x18] sm:$0xff] }
0x11d8   : > { %v8916_v11 = vpack.c.bf16 %v5453_v4, %v5451_v51  ;;  %v5598_v51 = vld [vmem:[%s10701_s0 + $0x18] sm:$0xff]  ;;  %v5595_v4 = vld [vmem:[%s10701_s0] sm:$0xff] }
0x11d9   : > { %v5004_v7 = vadd.f32 %v7125_v6, %v4995_v12  ;;  %v5450_v12 = vld [vmem:[%s9488_s27] sm:$0xff] }
0x11db   : > { %v5005_v9 = vmax.f32 %v5004_v7, 0.0  ;;  %v5452_v7 = vld [vmem:[%s9488_s27 + $0x10] sm:$0xff] }
0x11dd   : > { %v5007_v13 = vrot.slane %v5005_v9, 7  ;;  %v5455_v9 = vld [vmem:[%s9488_s27 + $0x28] sm:$0xff] }
0x11df   : > { %v5009_v2 = vsel %vm1303_vm0, 0.0, %v5007_v13  ;;  %v5010_v28 = vsel %vm1303_vm0, %v5007_v13, 0.0  ;;  %v5457_v13 = vld [vmem:[%s9488_s27 + $0x38] sm:$0xff] }
0x11e0   : > { %v5023_v14 = vrot.slane %v5009_v2, 1  ;;  %v5024_v16 = vrot.slane %v5010_v28, 1  ;;  %v5175_v34 = vrot.slane %v5009_v2, 2  ;;  %v5176_v35 = vrot.slane %v5010_v28, 2 }
0x11e1   : > { %v8918_v28 = vpack.c.bf16 %v5452_v7, %v5450_v12  ;;  %v5600_v12 = vld [vmem:[%s10701_s0 + $0x28] sm:$0xff]  ;;  %v5602_v7 = vld [vmem:[%s10701_s0 + $0x38] sm:$0xff] }
0x11e2   : > { %v5025_v23 = vsel %vm1330_vm1, %v5023_v14, %v5024_v16  ;;  %v5177_v37 = vsel %vm1504_vm3, %v5175_v34, %v5176_v35  ;;  %v8920_v14 = vpack.c.bf16 %v5457_v13, %v5455_v9  ;;  %v5454_v16 = vld [vmem:[%s9488_s27 + $0x20] sm:$0xff]  ;;  %v5464_v34 = vld [vmem:[%s9488_s27 + $0x70] sm:$0xff]  ;;  %v5467_v35 = vld [vmem:[%s9488_s27 + $0x88] sm:$0xff]  ;;  %v8952_v13 = vpack.c.bf16 %v5602_v7, %v5600_v12 }
0x11e3   : > { %8239 = vmatmul.mubr.msk.f32.vlgmr.msra.gmra.mrb[36].mxu1 %vm3551_vm6, %v5025_v23  ;;  %v8924_v23 = vpack.c.bf16 %v5461_v21, %v5459_v8  ;;  %v5605_v8 = vld [vmem:[%s10701_s0 + $0x50] sm:$0xff]  ;;  %v5608_v21 = vld [vmem:[%s10701_s0 + $0x68] sm:$0xff] }
0x11e4   : > { %8900 = vmatpush3.bf16.msra.mxu1 %v8899_v18  ;;  %8249 = vmatprep.mubr.msk.f32.mxu1 %vm9299_vm5, %v9297_v47  ;;  %v5456_v18 = vld [vmem:[%s9488_s27 + $0x30] sm:$0xff]  ;;  %v5636_v7 = vld [vmem:[%s10701_s0 + $0x148] sm:$0xff] }
0x11e5   : > { %8901 = vmatprep.subr.bf16.mxu1 %v9298_v58  ;;  %v5633_v12 = vld [vmem:[%s10701_s0 + $0x130] sm:$0xff] }
0x11e8   : > { %8903 = vmatpush3.bf16.msra.mxu1 %v8902_v24  ;;  %v5458_v24 = vld [vmem:[%s9488_s27 + $0x40] sm:$0xff] }
0x11e9   : > { %8904 = vmatprep.subr.bf16.mxu1 %v9298_v58  ;;  %v8926_v30 = vpack.c.bf16 %v5460_v32, %v5458_v24  ;;  %v5607_v32 = vld [vmem:[%s10701_s0 + $0x60] sm:$0xff] }
0x11eb   : > { %8250 = vmatmul.mubr.msk.f32.vlgmr.msra.gmra.mrb[38].mxu1 %vm3551_vm6, %v5009_v2  ;;  %v5367_v2 = vld [vmem:[%s9483_s6 + $0x8] sm:$0xff] }
0x11ec   : > { %8906 = vmatpush3.bf16.msra.mxu1 %v8905_v29  ;;  %8260 = vmatprep.mubr.msk.f32.mxu1 %vm9299_vm5, %v9297_v47  ;;  %v5465_v29 = vld [vmem:[%s9488_s27 + $0x78] sm:$0xff] }
0x11ed   : > { %8907 = vmatprep.subr.bf16.mxu1 %v9298_v58  ;;  %v8928_v31 = vpack.c.bf16 %v5465_v29, %v5463_v27  ;;  %v5609_v27 = vld [vmem:[%s10701_s0 + $0x70] sm:$0xff]  ;;  %v5612_v29 = vld [vmem:[%s10701_s0 + $0x88] sm:$0xff] }
0x11f0   : > { %8909 = vmatpush3.bf16.msra.mxu1 %v8908_v33  ;;  %v5462_v33 = vld [vmem:[%s9488_s27 + $0x60] sm:$0xff] }
0x11f1   : > { %8910 = vmatprep.subr.bf16.mxu1 %v9298_v58  ;;  %v8930_v36 = vpack.c.bf16 %v5464_v34, %v5462_v33  ;;  %v5611_v34 = vld [vmem:[%s10701_s0 + $0x80] sm:$0xff] }
0x11f3   : > { %8261 = vmatmul.mubr.msk.f32.vlgmr.msra.gmra.mrb[40].mxu1 %vm3551_vm6, %v5177_v37  ;;  %v5469_v37 = vld [vmem:[%s9488_s27 + $0x98] sm:$0xff] }
0x11f4   : > { %8271 = vmatprep.mubr.msk.f32.mxu1 %vm9299_vm5, %v9297_v47  ;;  %8912 = vmatpush3.bf16.msra.mxu1 %v8911_v39  ;;  %v8932_v38 = vpack.c.bf16 %v5469_v37, %v5467_v35  ;;  %v5466_v39 = vld [vmem:[%s9488_s27 + $0x80] sm:$0xff]  ;;  %v5613_v35 = vld [vmem:[%s10701_s0 + $0x90] sm:$0xff]  ;;  %v5616_v37 = vld [vmem:[%s10701_s0 + $0xa8] sm:$0xff] }
0x11f5   : > { %8913 = vmatprep.subr.bf16.mxu1 %v9298_v58 }
0x11f8   : > { %8915 = vmatpush3.bf16.msra.mxu1 %v8914_v43  ;;  %v5473_v43 = vld [vmem:[%s9488_s27 + $0xb8] sm:$0xff] }
0x12b6   : > { %v5094_v44 = vpop.f32.mrb[36].mxu1 }
0x12b7   : > { %v8240_v45 = vpop.f32.mrb[37].mxu1 }
0x12b8   : > { %v8936_v45 = vpack.c.bf16 %v5473_v43, %v5471_v42  ;;  %v5617_v42 = vld [vmem:[%s10701_s0 + $0xb0] sm:$0xff]  ;;  %v5620_v43 = vld [vmem:[%s10701_s0 + $0xc8] sm:$0xff] }
0x12be   : > { %v5166_v48 = vpop.f32.mrb[38].mxu1 }
0x12bf   : > { %v5167_v49 = vadd.f32 %v5166_v48, %v5094_v44  ;;  %v8251_v50 = vpop.f32.mrb[39].mxu1  ;;  %v8934_v44 = vpack.c.bf16 %v5468_v41, %v5466_v39  ;;  %v5470_v48 = vld [vmem:[%s9488_s27 + $0xa0] sm:$0xff] }
0x12c0   : > { %v5475_v50 = vld [vmem:[%s9488_s27 + $0xc8] sm:$0xff]  ;;  %v5615_v41 = vld [vmem:[%s10701_s0 + $0xa0] sm:$0xff] }
0x12c6   : > { %v5246_v53 = vpop.f32.mrb[40].mxu1 }
0x12c7   : > { %v5250_v57 = vadd.f32 %v5246_v53, %v5167_v49  ;;  %v8262_v59 = vpop.f32.mrb[41].mxu1  ;;  %v5472_v49 = vld [vmem:[%s9488_s27 + $0xb0] sm:$0xff]  ;;  %v5477_v53 = vld [vmem:[%s9488_s27 + $0xd8] sm:$0xff] }
0x12c8   : > { %v5474_v59 = vld [vmem:[%s9488_s27 + $0xc0] sm:$0xff] }
0x12c9   : > { %v5259_v58 = vadd.f32 %v7142_v56, %v5250_v57  ;;  %v8938_v56 = vpack.c.bf16 %v5472_v49, %v5470_v48  ;;  %v8940_v57 = vpack.c.bf16 %v5477_v53, %v5475_v50  ;;  %v5619_v49 = vld [vmem:[%s10701_s0 + $0xc0] sm:$0xff]  ;;  %v5621_v50 = vld [vmem:[%s10701_s0 + $0xd0] sm:$0xff]  ;;  %v5624_v53 = vld [vmem:[%s10701_s0 + $0xe8] sm:$0xff] }
0x12cb   : > { %v5268_v61 = vmul.f32 %v7144_v46, %v5259_v58  ;;  %v5476_v46 = vld [vmem:[%s9488_s27 + $0xd0] sm:$0xff]  ;;  %v5479_v58 = vld [vmem:[%s9488_s27 + $0xe8] sm:$0xff] }
0x12cd   : > { %v5277_v3 = vadd.f32 %v7146_v60, %v5268_v61  ;;  %v5481_v60 = vld [vmem:[%s9488_s27 + $0xf8] sm:$0xff]  ;;  %v8942_v61 = vpack.c.bf16 %v5476_v46, %v5474_v59  ;;  %v5623_v46 = vld [vmem:[%s10701_s0 + $0xe0] sm:$0xff] }
0x12cf   : > { %v5278_v1 = vmax.f32 %v5277_v3, 0.0  ;;  %v8944_v3 = vpack.c.bf16 %v5481_v60, %v5479_v58  ;;  %v5625_v58 = vld [vmem:[%s10701_s0 + $0xf0] sm:$0xff]  ;;  %v5628_v60 = vld [vmem:[%s10701_s0 + $0x108] sm:$0xff] }
0x12d1   : > { %8272 = vmatmul.mubr.msk.f32.vlgmr.msra.gmra.mrb[42].mxu1 %vm3551_vm6, %v5278_v1  ;;  %v5478_v1 = vld [vmem:[%s9488_s27 + $0xe0] sm:$0xff] }
0x13a4   : > { %v5361_v0 = vpop.f32.mrb[42].mxu1 }
0x13a5   : > { %v5362_v5 = vadd.f32 %v7152_v63, %v5361_v0  ;;  %v8273_v6 = vpop.f32.mrb[43].mxu1  ;;  %v8946_v63 = vpack.c.bf16 %v5480_v54, %v5478_v1  ;;  %v5596_v0 = vld [vmem:[%s10701_s0 + $0x8] sm:$0xff]  ;;  %v5627_v54 = vld [vmem:[%s10701_s0 + $0x100] sm:$0xff] }
0x13a6   : > { %v5597_v6 = vld [vmem:[%s10701_s0 + $0x10] sm:$0xff] }
0x13a7   : > { %v5365_v10 = vadd.f32 %v5362_v5, %v10276_v52  ;;  %v8922_v52 = vpack.c.bf16 %v5456_v18, %v5454_v16  ;;  %v8948_v5 = vpack.c.bf16 %v5598_v51, %v5596_v0  ;;  %v8950_v9 = vpack.c.bf16 %v5597_v6, %v5595_v4  ;;  %v5603_v18 = vld [vmem:[%s10701_s0 + $0x40] sm:$0xff]  ;;  %v5632_v0 = vld [vmem:[%s10701_s0 + $0x128] sm:$0xff]  ;;  %v5634_v51 = vld [vmem:[%s10701_s0 + $0x138] sm:$0xff] }
0x13a8   : > { %v5631_v6 = vld [vmem:[%s10701_s0 + $0x120] sm:$0xff] }
0x13a9   : > { %8274 = vmatprep.subr.mxu0 %v5365_v10  ;;  %8949 = vmatprep.subr.bf16.mxu1 %v8948_v5  ;;  %v8984_v5 = vpack.c.bf16 %v5634_v51, %v5632_v0  ;;  %v5788_v51 = vld [vmem:[%s10702_s1 + $0x20] sm:$0xff] }
0x13aa   : > { %8275 = vmatpush3.msra.mxu0 %v5365_v10  ;;  %v5599_v10 = vld [vmem:[%s10701_s0 + $0x20] sm:$0xff]  ;;  %8951 = vmatpush1.bf16.msra.mxu1 %v8950_v9  ;;  %v5638_v9 = vld [vmem:[%s10701_s0 + $0x158] sm:$0xff] }
0x13ab   : > { %8277 = vmatmul.mubr.msk.f32.vlgmr.msra.gmra.mrb[34].mxu0 %vm5368_vm7, %v5367_v2  ;;  %8917 = vmatprep.subr.bf16.mxu0 %v8916_v11  ;;  %v5601_v11 = vld [vmem:[%s10701_s0 + $0x30] sm:$0xff]  ;;  %v5604_v2 = vld [vmem:[%s10701_s0 + $0x48] sm:$0xff] }
0x13ac   : > { %8919 = vmatpush1.bf16.msra.mxu0 %v8918_v28  ;;  %5546 = vmatprep.mubr.f32.mxu0 %v9297_v47  ;;  %v5606_v28 = vld [vmem:[%s10701_s0 + $0x58] sm:$0xff] }
0x13ad   : > { %8921 = vmatprep.subr.bf16.mxu0 %v8920_v14  ;;  %v8954_v14 = vpack.c.bf16 %v5601_v11, %v5599_v10  ;;  %8953 = vmatprep.subr.bf16.mxu1 %v8952_v13  ;;  %v8956_v16 = vpack.c.bf16 %v5606_v28, %v5604_v2  ;;  %v8986_v13 = vpack.c.bf16 %v5633_v12, %v5631_v6  ;;  %v5635_v11 = vld [vmem:[%s10701_s0 + $0x140] sm:$0xff]  ;;  %v5637_v2 = vld [vmem:[%s10701_s0 + $0x150] sm:$0xff]  ;;  %v5640_v28 = vld [vmem:[%s10701_s0 + $0x168] sm:$0xff] }
0x13ae   : > { %v8988_v10 = vpack.c.bf16 %v5638_v9, %v5636_v7  ;;  %v5795_v6 = vld [vmem:[%s10702_s1 + $0x58] sm:$0xff]  ;;  %v5792_v9 = vld [vmem:[%s10702_s1 + $0x40] sm:$0xff] }
0x13af   : > { %8955 = vmatpush1.bf16.msra.mxu1 %v8954_v14  ;;  %v5642_v14 = vld [vmem:[%s10701_s0 + $0x178] sm:$0xff] }
0x13b0   : > { %8923 = vmatpush1.bf16.msra.mxu0 %v8922_v52  ;;  %v5610_v52 = vld [vmem:[%s10701_s0 + $0x78] sm:$0xff]  ;;  %8957 = vmatprep.subr.bf16.mxu1 %v8956_v16  ;;  %v8990_v16 = vpack.c.bf16 %v5637_v2, %v5635_v11 }
0x13b1   : > { %8925 = vmatprep.subr.bf16.mxu0 %v8924_v23  ;;  %v8958_v23 = vpack.c.bf16 %v5605_v8, %v5603_v18  ;;  %v8960_v24 = vpack.c.bf16 %v5610_v52, %v5608_v21  ;;  %v8992_v18 = vpack.c.bf16 %v5642_v14, %v5640_v28  ;;  %v5639_v8 = vld [vmem:[%s10701_s0 + $0x160] sm:$0xff]  ;;  %v5641_v21 = vld [vmem:[%s10701_s0 + $0x170] sm:$0xff]  ;;  %v5644_v52 = vld [vmem:[%s10701_s0 + $0x188] sm:$0xff] }
0x13b2   : > { %v5799_v11 = vld [vmem:[%s10702_s1 + $0x78] sm:$0xff]  ;;  %v5796_v14 = vld [vmem:[%s10702_s1 + $0x60] sm:$0xff] }
0x13b3   : > { %8959 = vmatpush1.bf16.msra.mxu1 %v8958_v23  ;;  %v5646_v23 = vld [vmem:[%s10701_s0 + $0x198] sm:$0xff] }
0x13b4   : > { %8927 = vmatpush1.bf16.msra.mxu0 %v8926_v30  ;;  %v5614_v30 = vld [vmem:[%s10701_s0 + $0x98] sm:$0xff]  ;;  %8961 = vmatprep.subr.bf16.mxu1 %v8960_v24  ;;  %v8994_v24 = vpack.c.bf16 %v5641_v21, %v5639_v8 }
0x13b5   : > { %8929 = vmatprep.subr.bf16.mxu0 %v8928_v31  ;;  %v8962_v31 = vpack.c.bf16 %v5609_v27, %v5607_v32  ;;  %v8964_v33 = vpack.c.bf16 %v5614_v30, %v5612_v29  ;;  %v8996_v32 = vpack.c.bf16 %v5646_v23, %v5644_v52  ;;  %v5643_v27 = vld [vmem:[%s10701_s0 + $0x180] sm:$0xff]  ;;  %v5645_v29 = vld [vmem:[%s10701_s0 + $0x190] sm:$0xff]  ;;  %v5648_v30 = vld [vmem:[%s10701_s0 + $0x1a8] sm:$0xff] }
0x13b6   : > { %v5803_v8 = vld [vmem:[%s10702_s1 + $0x98] sm:$0xff]  ;;  %v5800_v23 = vld [vmem:[%s10702_s1 + $0x80] sm:$0xff] }
0x13b7   : > { %8963 = vmatpush1.bf16.msra.mxu1 %v8962_v31  ;;  %v5650_v31 = vld [vmem:[%s10701_s0 + $0x1b8] sm:$0xff] }
0x13b8   : > { %8931 = vmatpush1.bf16.msra.mxu0 %v8930_v36  ;;  %v5618_v36 = vld [vmem:[%s10701_s0 + $0xb8] sm:$0xff]  ;;  %8965 = vmatprep.subr.bf16.mxu1 %v8964_v33  ;;  %v8998_v33 = vpack.c.bf16 %v5645_v29, %v5643_v27 }
0x13b9   : > { %8933 = vmatprep.subr.bf16.mxu0 %v8932_v38  ;;  %v8966_v38 = vpack.c.bf16 %v5613_v35, %v5611_v34  ;;  %v8968_v39 = vpack.c.bf16 %v5618_v36, %v5616_v37  ;;  %v9000_v34 = vpack.c.bf16 %v5650_v31, %v5648_v30  ;;  %v5647_v35 = vld [vmem:[%s10701_s0 + $0x1a0] sm:$0xff]  ;;  %v5649_v37 = vld [vmem:[%s10701_s0 + $0x1b0] sm:$0xff]  ;;  %v5807_v27 = vld [vmem:[%s10702_s1 + $0xb8] sm:$0xff] }
0x13ba   : > { %v9002_v36 = vpack.c.bf16 %v5649_v37, %v5647_v35  ;;  %v5804_v31 = vld [vmem:[%s10702_s1 + $0xa0] sm:$0xff]  ;;  %v5811_v35 = vld [vmem:[%s10702_s1 + $0xd8] sm:$0xff] }
0x13bb   : > { %8967 = vmatpush1.bf16.msra.mxu1 %v8966_v38 }
0x13bc   : > { %8935 = vmatpush1.bf16.msra.mxu0 %v8934_v44  ;;  %v5622_v44 = vld [vmem:[%s10701_s0 + $0xd8] sm:$0xff]  ;;  %8969 = vmatprep.subr.bf16.mxu1 %v8968_v39 }
0x13bd   : > { %8937 = vmatprep.subr.bf16.mxu0 %v8936_v45  ;;  %v8970_v45 = vpack.c.bf16 %v5617_v42, %v5615_v41  ;;  %v8972_v48 = vpack.c.bf16 %v5622_v44, %v5620_v43  ;;  %v5652_v41 = vld [vmem:[%s10701_s0 + $0x1c8] sm:$0xff]  ;;  %v5654_v42 = vld [vmem:[%s10701_s0 + $0x1d8] sm:$0xff]  ;;  %v5651_v44 = vld [vmem:[%s10701_s0 + $0x1c0] sm:$0xff] }
0x13be   : > { %v9004_v43 = vpack.c.bf16 %v5654_v42, %v5652_v41  ;;  %v5813_v41 = vld [vmem:[%s10702_s1 + $0xe8] sm:$0xff]  ;;  %v5815_v42 = vld [vmem:[%s10702_s1 + $0xf8] sm:$0xff] }
0x13bf   : > { %8971 = vmatpush1.bf16.msra.mxu1 %v8970_v45  ;;  %v5653_v45 = vld [vmem:[%s10701_s0 + $0x1d0] sm:$0xff] }
0x13c0   : > { %8939 = vmatpush1.bf16.msra.mxu0 %v8938_v56  ;;  %v5626_v56 = vld [vmem:[%s10701_s0 + $0xf8] sm:$0xff]  ;;  %8973 = vmatprep.subr.bf16.mxu1 %v8972_v48  ;;  %v9006_v48 = vpack.c.bf16 %v5653_v45, %v5651_v44  ;;  %v9040_v44 = vpack.c.bf16 %v5815_v42, %v5813_v41  ;;  %v5812_v45 = vld [vmem:[%s10702_s1 + $0xe0] sm:$0xff] }
0x13c1   : > { %8941 = vmatprep.subr.bf16.mxu0 %v8940_v57  ;;  %v8974_v57 = vpack.c.bf16 %v5621_v50, %v5619_v49  ;;  %v8976_v59 = vpack.c.bf16 %v5626_v56, %v5624_v53  ;;  %v5656_v49 = vld [vmem:[%s10701_s0 + $0x1e8] sm:$0xff]  ;;  %v5658_v50 = vld [vmem:[%s10701_s0 + $0x1f8] sm:$0xff]  ;;  %v5655_v56 = vld [vmem:[%s10701_s0 + $0x1e0] sm:$0xff] }
0x13c2   : > { %v9008_v53 = vpack.c.bf16 %v5658_v50, %v5656_v49  ;;  %v5817_v49 = vld [vmem:[%s10702_s1 + $0x108] sm:$0xff]  ;;  %v5819_v50 = vld [vmem:[%s10702_s1 + $0x118] sm:$0xff] }
0x13c3   : > { %8975 = vmatpush1.bf16.msra.mxu1 %v8974_v57  ;;  %v5657_v57 = vld [vmem:[%s10701_s0 + $0x1f0] sm:$0xff] }
0x13c4   : > { %8943 = vmatpush1.bf16.msra.mxu0 %v8942_v61  ;;  %v5630_v61 = vld [vmem:[%s10701_s0 + $0x118] sm:$0xff]  ;;  %8977 = vmatprep.subr.bf16.mxu1 %v8976_v59  ;;  %v9010_v59 = vpack.c.bf16 %v5657_v57, %v5655_v56  ;;  %v9044_v56 = vpack.c.bf16 %v5819_v50, %v5817_v49  ;;  %v5816_v57 = vld [vmem:[%s10702_s1 + $0x100] sm:$0xff] }
0x13c5   : > { %8945 = vmatprep.subr.bf16.mxu0 %v8944_v3  ;;  %v8978_v3 = vpack.c.bf16 %v5625_v58, %v5623_v46  ;;  %v8980_v1 = vpack.c.bf16 %v5630_v61, %v5628_v60  ;;  %v5785_v46 = vld [vmem:[%s10702_s1 + $0x8] sm:$0xff]  ;;  %v5787_v58 = vld [vmem:[%s10702_s1 + $0x18] sm:$0xff]  ;;  %v5784_v60 = vld [vmem:[%s10702_s1] sm:$0xff] }
0x13c6   : > { %v9012_v61 = vpack.c.bf16 %v5787_v58, %v5785_v46  ;;  %v5821_v46 = vld [vmem:[%s10702_s1 + $0x128] sm:$0xff]  ;;  %v5823_v58 = vld [vmem:[%s10702_s1 + $0x138] sm:$0xff] }
0x13c7   : > { %8979 = vmatpush1.bf16.msra.mxu1 %v8978_v3  ;;  %v5786_v3 = vld [vmem:[%s10702_s1 + $0x10] sm:$0xff] }
0x13c8   : > { %8947 = vmatpush1.bf16.msra.mxu0 %v8946_v63  ;;  %v5629_v63 = vld [vmem:[%s10701_s0 + $0x110] sm:$0xff]  ;;  %8981 = vmatprep.subr.bf16.mxu1 %v8980_v1  ;;  %v5789_v1 = vld [vmem:[%s10702_s1 + $0x28] sm:$0xff]  ;;  %s10703_s0 = sld [smem:[#allocation14_spill]] }
0x13c9   : > { %v8982_v4 = vpack.c.bf16 %v5629_v63, %v5627_v54  ;;  %v5791_v54 = vld [vmem:[%s10702_s1 + $0x38] sm:$0xff]  ;;  %v9014_v63 = vpack.c.bf16 %v5786_v3, %v5784_v60  ;;  %9013 = vmatprep.subr.bf16.mxu0 %v9012_v61  ;;  %v9048_v61 = vpack.c.bf16 %v5823_v58, %v5821_v46  ;;  %v5820_v3 = vld [vmem:[%s10702_s1 + $0x120] sm:$0xff]  ;;  %v5841_v46 = vld [vmem:[%s10702_s1 + $0x1c8] sm:$0xff] }
0x13ca   : > { %v9016_v0 = vpack.c.bf16 %v5791_v54, %v5789_v1  ;;  %v5822_v1 = vld [vmem:[%s10702_s1 + $0x130] sm:$0xff]  ;;  %v5825_v54 = vld [vmem:[%s10702_s1 + $0x148] sm:$0xff]  ;;  %v5843_v58 = vld [vmem:[%s10702_s1 + $0x1d8] sm:$0xff] }
0x13cb   : > { %8983 = vmatpush1.bf16.msra.mxu1 %v8982_v4  ;;  %v5790_v4 = vld [vmem:[%s10702_s1 + $0x30] sm:$0xff] }
0x13cc   : > { %8985 = vmatprep.subr.bf16.mxu1 %v8984_v5  ;;  %v5793_v5 = vld [vmem:[%s10702_s1 + $0x48] sm:$0xff]  ;;  %v9018_v12 = vpack.c.bf16 %v5790_v4, %v5788_v51  ;;  %v5824_v4 = vld [vmem:[%s10702_s1 + $0x140] sm:$0xff] }
0x13cd   : > { %v9020_v7 = vpack.c.bf16 %v5795_v6, %v5793_v5  ;;  %v5826_v5 = vld [vmem:[%s10702_s1 + $0x150] sm:$0xff]  ;;  %v5829_v6 = vld [vmem:[%s10702_s1 + $0x168] sm:$0xff] }
0x13cf   : > { %8987 = vmatpush1.bf16.msra.mxu1 %v8986_v13  ;;  %v5794_v13 = vld [vmem:[%s10702_s1 + $0x50] sm:$0xff] }
0x13d0   : > { %8989 = vmatprep.subr.bf16.mxu1 %v8988_v10  ;;  %v5797_v10 = vld [vmem:[%s10702_s1 + $0x68] sm:$0xff]  ;;  %v9022_v2 = vpack.c.bf16 %v5794_v13, %v5792_v9  ;;  %v5828_v13 = vld [vmem:[%s10702_s1 + $0x160] sm:$0xff] }
0x13d1   : > { %v9024_v28 = vpack.c.bf16 %v5799_v11, %v5797_v10  ;;  %v5830_v10 = vld [vmem:[%s10702_s1 + $0x170] sm:$0xff]  ;;  %v5833_v11 = vld [vmem:[%s10702_s1 + $0x188] sm:$0xff] }
0x13d3   : > { %8991 = vmatpush1.bf16.msra.mxu1 %v8990_v16  ;;  %v5798_v16 = vld [vmem:[%s10702_s1 + $0x70] sm:$0xff] }
0x13d4   : > { %8993 = vmatprep.subr.bf16.mxu1 %v8992_v18  ;;  %v5801_v18 = vld [vmem:[%s10702_s1 + $0x88] sm:$0xff]  ;;  %v9026_v21 = vpack.c.bf16 %v5798_v16, %v5796_v14  ;;  %v5832_v16 = vld [vmem:[%s10702_s1 + $0x180] sm:$0xff] }
0x13d5   : > { %v9028_v52 = vpack.c.bf16 %v5803_v8, %v5801_v18  ;;  %v5834_v18 = vld [vmem:[%s10702_s1 + $0x190] sm:$0xff]  ;;  %v5837_v8 = vld [vmem:[%s10702_s1 + $0x1a8] sm:$0xff] }
0x13d7   : > { %8995 = vmatpush1.bf16.msra.mxu1 %v8994_v24  ;;  %v5802_v24 = vld [vmem:[%s10702_s1 + $0x90] sm:$0xff] }
0x13d8   : > { %8997 = vmatprep.subr.bf16.mxu1 %v8996_v32  ;;  %v5805_v32 = vld [vmem:[%s10702_s1 + $0xa8] sm:$0xff]  ;;  %v9030_v29 = vpack.c.bf16 %v5802_v24, %v5800_v23  ;;  %v5559_v24 = vld [vmem:[%s10703_s0] sm:$0x3]  ;;  %s10705_s0 = sld [smem:[#allocation17_spill]] }
0x13d9   : > { %v9032_v30 = vpack.c.bf16 %v5807_v27, %v5805_v32  ;;  %v5575_v32 = vld [vmem:[%s10704_s2] sm:$0x3]  ;;  %v5564_v27 = vrot.slane %v5559_v24, %v9543_v40  ;;  %s10706_s2 = sld [smem:[#allocation18_spill]] }
0x13db   : > { %8999 = vmatpush1.bf16.msra.mxu1 %v8998_v33  ;;  %v5806_v33 = vld [vmem:[%s10702_s1 + $0xb0] sm:$0xff] }
0x13dc   : > { %9001 = vmatprep.subr.bf16.mxu1 %v9000_v34  ;;  %v5809_v34 = vld [vmem:[%s10702_s1 + $0xc8] sm:$0xff]  ;;  %v9034_v37 = vpack.c.bf16 %v5806_v33, %v5804_v31  ;;  %v5584_v33 = vrot.slane %v5575_v32, %v9525_v22 }
0x13df   : > { %9003 = vmatpush1.bf16.msra.mxu1 %v9002_v36  ;;  %v9036_v36 = vpack.c.bf16 %v5811_v35, %v5809_v34 }
0x13e0   : > { %9005 = vmatprep.subr.bf16.mxu1 %v9004_v43 }
0x13e3   : > { %9007 = vmatpush1.bf16.msra.mxu1 %v9006_v48  ;;  %v5814_v48 = vld [vmem:[%s10702_s1 + $0xf0] sm:$0xff] }
0x13e4   : > { %9009 = vmatprep.subr.bf16.mxu1 %v9008_v53  ;;  %v9042_v53 = vpack.c.bf16 %v5814_v48, %v5812_v45 }
0x13e7   : > { %9011 = vmatpush1.bf16.msra.mxu1 %v9010_v59  ;;  %v5818_v59 = vld [vmem:[%s10702_s1 + $0x110] sm:$0xff] }
0x13e8   : > { %v9046_v60 = vpack.c.bf16 %v5818_v59, %v5816_v57  ;;  %v5838_v57 = vld [vmem:[%s10702_s1 + $0x1b0] sm:$0xff] }
0x147e   : > { %v8278_v38 = vpop.f32.mrb[34].mxu0 }
0x147f   : > { %v5441_v39 = vpop.f32.mrb[35].mxu0 }
0x1480   : > { %5547 = vmatmul.mubr.f32.vlgmr.msra.gmra.mrb[36].mxu0 %v5441_v39  ;;  %v5810_v39 = vld [vmem:[%s10702_s1 + $0xd0] sm:$0xff] }
0x1481   : > { %5552 = vmatprep.mubr.f32.mxu0 %v9297_v47  ;;  %9015 = vmatpush1.bf16.msra.mxu0 %v9014_v63  ;;  %v5827_v63 = vld [vmem:[%s10702_s1 + $0x158] sm:$0xff] }
0x1482   : > { %9017 = vmatprep.subr.bf16.mxu0 %v9016_v0  ;;  %v9050_v0 = vpack.c.bf16 %v5822_v1, %v5820_v3  ;;  %v9052_v51 = vpack.c.bf16 %v5827_v63, %v5825_v54  ;;  %v5842_v3 = vld [vmem:[%s10702_s1 + $0x1d0] sm:$0xff]  ;;  %v5845_v54 = vld [vmem:[%s10702_s1 + $0x1e8] sm:$0xff]  ;;  %v5847_v63 = vld [vmem:[%s10702_s1 + $0x1f8] sm:$0xff] }
0x1484   : > { %5553 = vmatmul.mubr.f32.gmra.mrb[38].mxu0 %v8278_v38  ;;  %v5808_v38 = vld [vmem:[%s10702_s1 + $0xc0] sm:$0xff] }
0x1485   : > { %9019 = vmatpush1.bf16.msra.mxu0 %v9018_v12  ;;  %v9038_v43 = vpack.c.bf16 %v5810_v39, %v5808_v38  ;;  %v5831_v12 = vld [vmem:[%s10702_s1 + $0x178] sm:$0xff] }
0x1486   : > { %9021 = vmatprep.subr.bf16.mxu0 %v9020_v7  ;;  %v9054_v7 = vpack.c.bf16 %v5826_v5, %v5824_v4  ;;  %v9056_v9 = vpack.c.bf16 %v5831_v12, %v5829_v6  ;;  %v5846_v4 = vld [vmem:[%s10702_s1 + $0x1f0] sm:$0xff]  ;;  %v5659_v6 = vld [vmem:[%s10705_s0] sm:$0x3]  ;;  %s10709_s0 = sshll.u32 %s10711_s10, 5 }
0x1487   : > { %v5748_v12 = vld [vmem:[%s10706_s2] sm:$0x3]  ;;  %s1126_s2 = scalar_lea.vmem %s9493_s20, %s10709_s0 }
0x1489   : > { %9023 = vmatpush1.bf16.msra.mxu0 %v9022_v2  ;;  %v5835_v2 = vld [vmem:[%s10702_s1 + $0x198] sm:$0xff] }
0x148a   : > { %9025 = vmatprep.subr.bf16.mxu0 %v9024_v28  ;;  %v9058_v28 = vpack.c.bf16 %v5830_v10, %v5828_v13  ;;  %v9060_v14 = vpack.c.bf16 %v5835_v2, %v5833_v11  ;;  %v5668_v13 = vrot.slane %v5659_v6, %v9525_v22  ;;  %v5753_v10 = vrot.slane %v5748_v12, %v9543_v40 }
0x148b   : > { %v5757_v2 = vrot.slane %v5748_v12, %v9525_v22  ;;  %v7187_v12 = vld [vmem:[%s9323_s17 + $0x3c8] sm:$0xff] }
0x148d   : > { %9027 = vmatpush1.bf16.msra.mxu0 %v9026_v21  ;;  %v5839_v21 = vld [vmem:[%s10702_s1 + $0x1b8] sm:$0xff] }
0x148e   : > { %9029 = vmatprep.subr.bf16.mxu0 %v9028_v52  ;;  %v9062_v52 = vpack.c.bf16 %v5834_v18, %v5832_v16  ;;  %v9064_v23 = vpack.c.bf16 %v5839_v21, %v5837_v8 }
0x1491   : > { %9031 = vmatpush1.bf16.msra.mxu0 %v9030_v29  ;;  %v5568_v29 = vrot.slane %v5559_v24, %v9525_v22 }
0x1492   : > { %9033 = vmatprep.subr.bf16.mxu0 %v9032_v30  ;;  %v5580_v30 = vrot.slane %v5575_v32, %v9543_v40 }
0x1495   : > { %9035 = vmatpush1.bf16.msra.mxu0 %v9034_v37 }
0x1496   : > { %9037 = vmatprep.subr.bf16.mxu0 %v9036_v36 }
0x1499   : > { %9039 = vmatpush1.bf16.msra.mxu0 %v9038_v43 }
0x149a   : > { %9041 = vmatprep.subr.bf16.mxu0 %v9040_v44 }
0x149d   : > { %9043 = vmatpush1.bf16.msra.mxu0 %v9042_v53 }
0x149e   : > { %9045 = vmatprep.subr.bf16.mxu0 %v9044_v56  ;;  %v5836_v56 = vld [vmem:[%s10702_s1 + $0x1a0] sm:$0xff] }
0x149f   : > { %v9066_v59 = vpack.c.bf16 %v5838_v57, %v5836_v56  ;;  %v7164_v56 = vld [vmem:[%s9323_s17 + $0x310] sm:$0xff]  ;;  %v7165_v57 = vld [vmem:[%s9323_s17 + $0x318] sm:$0xff] }
0x14a1   : > { %9047 = vmatpush1.bf16.msra.mxu0 %v9046_v60  ;;  %v9068_v60 = vpack.c.bf16 %v5843_v58, %v5841_v46  ;;  %v7182_v46 = vld [vmem:[%s9323_s17 + $0x3a0] sm:$0xff]  ;;  %v7183_v58 = vld [vmem:[%s9323_s17 + $0x3a8] sm:$0xff] }
0x14a2   : > { %9049 = vmatprep.subr.bf16.mxu0 %v9048_v61  ;;  %v5840_v61 = vld [vmem:[%s10702_s1 + $0x1c0] sm:$0xff] }
0x14a3   : > { %v9070_v1 = vpack.c.bf16 %v5842_v3, %v5840_v61  ;;  %v7166_v61 = vld [vmem:[%s9323_s17 + $0x320] sm:$0xff]  ;;  %v7167_v3 = vld [vmem:[%s9323_s17 + $0x328] sm:$0xff] }
0x14a5   : > { %9051 = vmatpush1.bf16.msra.mxu0 %v9050_v0  ;;  %v9072_v0 = vpack.c.bf16 %v5847_v63, %v5845_v54  ;;  %v7184_v54 = vld [vmem:[%s9323_s17 + $0x3b0] sm:$0xff]  ;;  %v7185_v63 = vld [vmem:[%s9323_s17 + $0x3b8] sm:$0xff] }
0x14a6   : > { %9053 = vmatprep.subr.bf16.mxu0 %v9052_v51  ;;  %v5844_v51 = vld [vmem:[%s10702_s1 + $0x1e0] sm:$0xff] }
0x14a7   : > { %v9074_v5 = vpack.c.bf16 %v5846_v4, %v5844_v51  ;;  %v7168_v51 = vld [vmem:[%s9323_s17 + $0x330] sm:$0xff]  ;;  %v7169_v4 = vld [vmem:[%s9323_s17 + $0x338] sm:$0xff] }
0x14a9   : > { %9055 = vmatpush1.bf16.msra.mxu0 %v9054_v7  ;;  %v5664_v7 = vrot.slane %v5659_v6, %v9543_v40  ;;  %v7186_v6 = vld [vmem:[%s9323_s17 + $0x3c0] sm:$0xff] }
0x14aa   : > { %9057 = vmatprep.subr.bf16.mxu0 %v9056_v9  ;;  %v5764_v9 = vld [vmem:[%s10707_s4] sm:$0x3]  ;;  %s10708_s4 = sld [smem:[#allocation21_spill]] }
0x14ab   : > { %v5773_v8 = vrot.slane %v5764_v9, %v9525_v22 }
0x14ad   : > { %9059 = vmatpush1.bf16.msra.mxu0 %v9058_v28 }
0x14ae   : > { %9061 = vmatprep.subr.bf16.mxu0 %v9060_v14  ;;  %v5769_v14 = vrot.slane %v5764_v9, %v9543_v40  ;;  %v7170_v9 = vld [vmem:[%s9323_s17 + $0x340] sm:$0xff] }
0x14b1   : > { %9063 = vmatpush1.bf16.msra.mxu0 %v9062_v52 }
0x14b2   : > { %9065 = vmatprep.subr.bf16.mxu0 %v9064_v23 }
0x14b5   : > { %9067 = vmatpush1.bf16.msra.mxu0 %v9066_v59  ;;  %v9082_v59 = vpack.c.bf16 %v7165_v57, %v7164_v56 }
0x14b6   : > { %9069 = vmatprep.subr.bf16.mxu0 %v9068_v60  ;;  %v9084_v60 = vpack.c.bf16 %v7183_v58, %v7182_v46 }
0x14b9   : > { %9071 = vmatpush1.bf16.msra.mxu0 %v9070_v1  ;;  %v9086_v1 = vpack.c.bf16 %v7167_v3, %v7166_v61 }
0x14ba   : > { %9073 = vmatprep.subr.bf16.mxu0 %v9072_v0  ;;  %v9088_v0 = vpack.c.bf16 %v7185_v63, %v7184_v54 }
0x14bd   : > { %9075 = vmatpush1.bf16.msra.mxu0 %v9074_v5  ;;  %v9090_v5 = vpack.c.bf16 %v7169_v4, %v7168_v51 }
0x1553   : > { %v5548_v31 = vpop.f32.mrb[36].mxu0 }
0x1554   : > { %v5571_v34 = vmul.f32 %v5564_v27, %v5548_v31  ;;  %v5550_v35 = vpop.f32.mrb[37].mxu0 }
0x1555   : > { %v5572_v37 = vmul.f32 %v5568_v29, %v5550_v35 }
0x1556   : > { %v5587_v36 = vadd.f32 %v5580_v30, %v5571_v34 }
0x1557   : > { %v5588_v38 = vadd.f32 %v5584_v33, %v5572_v37  ;;  %v5554_v39 = vpop.f32.mrb[38].mxu0 }
0x1558   : > { %v5573_v41 = vmul.f32 %v5564_v27, %v5554_v39  ;;  %v5556_v42 = vpop.f32.mrb[39].mxu0  ;;  %v5591_v45 = vmax.f32 %v5587_v36, 0.0 }
0x1559   : > { %v5592_v43 = vmax.f32 %v5588_v38, 0.0  ;;  %v5574_v44 = vmul.f32 %v5568_v29, %v5556_v42  ;;  %v7179_v42 = vld [vmem:[%s9323_s17 + $0x388] sm:$0xff] }
0x155a   : > { %v5589_v48 = vadd.f32 %v5580_v30, %v5573_v41  ;;  %v7178_v41 = vld [vmem:[%s9323_s17 + $0x380] sm:$0xff] }
0x155b   : > { %v5590_v49 = vadd.f32 %v5584_v33, %v5574_v44  ;;  %5735 = vmatprep.mubr.f32.mxu1 %v5592_v43  ;;  %v9076_v43 = vpack.c.bf16 %v7179_v42, %v7178_v41  ;;  %v7162_v44 = vld [vmem:[%s9323_s17 + $0x300] sm:$0xff] }
0x155c   : > { %5736 = vmatmul.mubr.f32.vlgmr.msra.gmra.mrb[44].mxu1 %v5591_v45  ;;  %v5593_v53 = vmax.f32 %v5589_v48, 0.0  ;;  %v7163_v45 = vld [vmem:[%s9323_s17 + $0x308] sm:$0xff] }
0x155d   : > { %v5594_v50 = vmax.f32 %v5590_v49, 0.0  ;;  %v9078_v48 = vpack.c.bf16 %v7163_v45, %v7162_v44  ;;  %9077 = vmatprep.subr.bf16.mxu1 %v9076_v43  ;;  %v7180_v49 = vld [vmem:[%s9323_s17 + $0x390] sm:$0xff] }
0x155f   : > { %5741 = vmatprep.mubr.f32.mxu1 %v5594_v50  ;;  %9079 = vmatpush3.bf16.msra.mxu1 %v9078_v48  ;;  %v7181_v50 = vld [vmem:[%s9323_s17 + $0x398] sm:$0xff] }
0x1560   : > { %5742 = vmatmul.mubr.f32.gmra.mrb[46].mxu1 %v5593_v53  ;;  %v9080_v53 = vpack.c.bf16 %v7181_v50, %v7180_v49 }
0x1562   : > { %9081 = vmatprep.subr.bf16.mxu1 %v9080_v53 }
0x1563   : > { %9083 = vmatpush3.bf16.msra.mxu1 %v9082_v59 }
0x1564   : > { %9085 = vmatprep.subr.bf16.mxu1 %v9084_v60  ;;  %v6903_v60 = vld [vmem:[%s9368_s30 + $0x4] sm:$0x3] }
0x1565   : > { %v2865_v54 = vrot.slane %v6903_v60, %v9543_v40 }
0x1567   : > { %9087 = vmatpush3.bf16.msra.mxu1 %v9086_v1  ;;  %v2945_v51 = vadd.f32 %v10031_v19, %v2865_v54 }
0x1568   : > { %9089 = vmatprep.subr.bf16.mxu1 %v9088_v0  ;;  %v2869_v0 = vrot.slane %v6903_v60, %v9525_v22  ;;  %v7239_v60 = vld [vmem:[%s9363_s24 + $0x198] sm:$0xff] }
0x156a   : > { %v2947_v4 = vadd.f32 %v10033_v62, %v2869_v0 }
0x156b   : > { %9091 = vmatpush3.bf16.msra.mxu1 %v9090_v5  ;;  %v7160_v5 = vld [vmem:[%s9313_s9 + $0x6] sm:$0x3] }
0x156c   : > { %v5979_v19 = vrot.slane %v7160_v5, %v9525_v22 }
0x162f   : > { %v5737_v11 = vpop.f32.mrb[44].mxu1 }
0x1630   : > { %v5738_v28 = vadd.f32 %v5737_v11, %v5664_v7  ;;  %v5739_v16 = vpop.f32.mrb[45].mxu1  ;;  %v7188_v11 = vld [vmem:[%s9323_s17 + $0x3d0] sm:$0xff] }
0x1631   : > { %v5740_v18 = vadd.f32 %v5739_v16, %v5668_v13  ;;  %v7173_v16 = vld [vmem:[%s9323_s17 + $0x358] sm:$0xff] }
0x1632   : > { %v5760_v21 = vmul.f32 %v5753_v10, %v5738_v28 }
0x1633   : > { %v5761_v52 = vmul.f32 %v5757_v2, %v5740_v18  ;;  %v5743_v23 = vpop.f32.mrb[46].mxu1 }
0x1634   : > { %v5776_v24 = vadd.f32 %v5769_v14, %v5760_v21  ;;  %v5744_v32 = vadd.f32 %v5743_v23, %v5664_v7  ;;  %v5745_v27 = vpop.f32.mrb[47].mxu1  ;;  %v9092_v7 = vpack.c.bf16 %v7187_v12, %v7186_v6  ;;  %v7191_v21 = vld [vmem:[%s9323_s17 + $0x3e8] sm:$0xff]  ;;  %v7174_v23 = vld [vmem:[%s9323_s17 + $0x360] sm:$0xff] }
0x1635   : > { %v5746_v29 = vadd.f32 %v5745_v27, %v5668_v13  ;;  %v5777_v30 = vadd.f32 %v5773_v8, %v5761_v52  ;;  %v7171_v13 = vld [vmem:[%s9323_s17 + $0x348] sm:$0xff]  ;;  %v7192_v27 = vld [vmem:[%s9323_s17 + $0x3f0] sm:$0xff]  ;;  %v7161_v12 = vld [vmem:[%s9318_s13 + $0x6] sm:$0x3] }
0x1636   : > { %v5762_v31 = vmul.f32 %v5753_v10, %v5744_v32  ;;  %v5780_v35 = vmax.f32 %v5776_v24, 0.0  ;;  %v9094_v10 = vpack.c.bf16 %v7171_v13, %v7170_v9  ;;  %9093 = vmatprep.subr.bf16.mxu1 %v9092_v7  ;;  %v7175_v24 = vld [vmem:[%s9323_s17 + $0x368] sm:$0xff]  ;;  %v2955_v9 = vadd.f32 %v2945_v51, %v9792_v15 }
0x1637   : > { %v5763_v33 = vmul.f32 %v5757_v2, %v5746_v29  ;;  %v5781_v34 = vmax.f32 %v5777_v30, 0.0  ;;  %v7189_v2 = vld [vmem:[%s9323_s17 + $0x3d8] sm:$0xff]  ;;  %v9102_v32 = vpack.c.bf16 %v7175_v24, %v7174_v23  ;;  %v7176_v30 = vld [vmem:[%s9323_s17 + $0x370] sm:$0xff]  ;;  %v2951_v13 = vadd.f32 %v10035_v55, %v2865_v54  ;;  %v7241_v54 = vld [vmem:[%s9363_s24 + $0x1a8] sm:$0xff] }
0x1638   : > { %v5778_v37 = vadd.f32 %v5769_v14, %v5762_v31  ;;  %9095 = vmatpush3.bf16.msra.mxu1 %v9094_v10  ;;  %v9096_v28 = vpack.c.bf16 %v7189_v2, %v7188_v11  ;;  %v7172_v14 = vld [vmem:[%s9323_s17 + $0x350] sm:$0xff]  ;;  %v7193_v29 = vld [vmem:[%s9323_s17 + $0x3f8] sm:$0xff]  ;;  %v5975_v11 = vrot.slane %v7160_v5, %v9543_v40  ;;  %v2956_v2 = vadd.f32 %v2947_v4, %v9796_v17  ;;  %v7240_v4 = vld [vmem:[%s9363_s24 + $0x1a0] sm:$0xff] }
0x1639   : > { %5924 = vmatprep.mubr.f32.mxu0 %v5781_v34  ;;  %v5779_v36 = vadd.f32 %v5773_v8, %v5763_v33  ;;  %v9098_v18 = vpack.c.bf16 %v7173_v16, %v7172_v14  ;;  %v7190_v8 = vld [vmem:[%s9323_s17 + $0x3e0] sm:$0xff]  ;;  %v9104_v31 = vpack.c.bf16 %v7193_v29, %v7192_v27  ;;  %v7177_v33 = vld [vmem:[%s9323_s17 + $0x378] sm:$0xff]  ;;  %v5992_v62 = vrot.slane %v7161_v12, %v9543_v40  ;;  %v7242_v5 = vld [vmem:[%s9363_s24 + $0x1b0] sm:$0xff] }
0x163a   : > { %5925 = vmatmul.mubr.f32.vlgmr.msra.gmra.mrb[40].mxu0 %v5780_v35  ;;  %v5782_v39 = vmax.f32 %v5778_v37, 0.0  ;;  %9097 = vmatprep.subr.bf16.mxu1 %v9096_v28  ;;  %v9100_v52 = vpack.c.bf16 %v7191_v21, %v7190_v8  ;;  %v9106_v34 = vpack.c.bf16 %v7177_v33, %v7176_v30  ;;  %v5848_v35 = vld [vmem:[%s10708_s4] sm:$0x3]  ;;  %v2953_v28 = vadd.f32 %v10037_v20, %v2869_v0 }
0x163b   : > { %v5783_v38 = vmax.f32 %v5779_v36, 0.0  ;;  %v5853_v37 = vrot.slane %v5848_v35, %v9543_v40  ;;  %v5857_v36 = vrot.slane %v5848_v35, %v9525_v22  ;;  %v5996_v15 = vrot.slane %v7161_v12, %v9525_v22 }
0x163c   : > { %9099 = vmatpush3.bf16.msra.mxu1 %v9098_v18  ;;  %v2957_v21 = vadd.f32 %v2951_v13, %v9802_v25  ;;  %v2958_v20 = vadd.f32 %v2953_v28, %v9805_v26  ;;  %v7199_v28 = vld [vmem:[%s9338_s29 + $0x3] ss:$0 sm:$0xff] }
0x163d   : > { %5930 = vmatprep.mubr.f32.mxu0 %v5783_v38  ;;  %9101 = vmatprep.subr.bf16.mxu1 %v9100_v52 }
0x163e   : > { %5931 = vmatmul.mubr.f32.gmra.mrb[42].mxu0 %v5782_v39 }
0x1640   : > { %9103 = vmatpush3.bf16.msra.mxu1 %v9102_v32 }
0x1641   : > { %9105 = vmatprep.subr.bf16.mxu1 %v9104_v31 }
0x1644   : > { %9107 = vmatpush3.bf16.msra.mxu1 %v9106_v34 }
0x170d   : > { %v5926_v38 = vpop.f32.mrb[40].mxu0 }
0x170e   : > { %v5927_v39 = vadd.f32 %v5926_v38, %v5853_v37  ;;  %v5928_v41 = vpop.f32.mrb[41].mxu0  ;;  %v7208_v38 = vld [vmem:[%s9343_s3 + $0x280] sm:$0xff] }
0x170f   : > { %v5929_v42 = vadd.f32 %v5928_v41, %v5857_v36 }
0x1710   : > { %v7156_v43 = vmul.f32 -1.442695, %v5927_v39  ;;  %v7209_v39 = vld [vmem:[%s9343_s3 + $0x288] sm:$0xff] }
0x1711   : > { %v7157_v44 = vmul.f32 -1.442695, %v5929_v42  ;;  %v5932_v45 = vpop.f32.mrb[42].mxu0  ;;  %v9108_v41 = vpack.c.bf16 %v7209_v39, %v7208_v38  ;;  %v7210_v42 = vld [vmem:[%s9343_s3 + $0x290] sm:$0xff] }
0x1712   : > { %9236 = vpow2.f32 %v7156_v43  ;;  %v5933_v48 = vadd.f32 %v5932_v45, %v5853_v37  ;;  %v5934_v49 = vpop.f32.mrb[43].mxu0  ;;  %v7211_v43 = vld [vmem:[%s9343_s3 + $0x298] sm:$0xff]  ;;  %v7212_v45 = vld [vmem:[%s9343_s3 + $0x2a0] sm:$0xff] }
0x1713   : > { %9238 = vpow2.f32 %v7157_v44  ;;  %v5935_v50 = vadd.f32 %v5934_v49, %v5857_v36  ;;  %9109 = vmatprep.subr.bf16.mxu0 %v9108_v41  ;;  %v9112_v44 = vpack.c.bf16 %v7211_v43, %v7210_v42 }
0x1714   : > { %v7158_v53 = vmul.f32 -1.442695, %v5933_v48  ;;  %9111 = vmatpush3.bf16.msra.mxu0 %v9108_v41  ;;  %v7213_v48 = vld [vmem:[%s9343_s3 + $0x2a8] sm:$0xff] }
0x1715   : > { %v7159_v56 = vmul.f32 -1.442695, %v5935_v50  ;;  %9113 = vmatprep.subr.bf16.mxu0 %v9112_v44  ;;  %v9116_v49 = vpack.c.bf16 %v7213_v48, %v7212_v45  ;;  %v7214_v50 = vld [vmem:[%s9343_s3 + $0x2b0] sm:$0xff]  ;;  %v7205_v45 = vld [vmem:[%s9343_s3 + $0x268] sm:$0xff] }
0x1716   : > { %9240 = vpow2.f32 %v7158_v53  ;;  %v7215_v53 = vld [vmem:[%s9343_s3 + $0x2b8] sm:$0xff] }
0x1717   : > { %9242 = vpow2.f32 %v7159_v56  ;;  %v9120_v56 = vpack.c.bf16 %v7215_v53, %v7214_v50  ;;  %v7207_v50 = vld [vmem:[%s9343_s3 + $0x278] sm:$0xff] }
0x1718   : > { %9115 = vmatpush3.bf16.msra.mxu0 %v9112_v44  ;;  %v7204_v44 = vld [vmem:[%s9343_s3 + $0x260] sm:$0xff] }
0x1719   : > { %9117 = vmatprep.subr.bf16.mxu0 %v9116_v49  ;;  %v9132_v48 = vpack.c.bf16 %v7205_v45, %v7204_v44 }
0x171c   : > { %v9237_v57 = vpop.eup %9236  ;;  %9119 = vmatpush3.bf16.msra.mxu0 %v9116_v49  ;;  %v7206_v49 = vld [vmem:[%s9343_s3 + $0x270] sm:$0xff] }
0x171d   : > { %v9239_v59 = vpop.eup %9238  ;;  %v5949_v46 = vadd.f32 1.0, %v9237_v57  ;;  %9121 = vmatprep.subr.bf16.mxu0 %v9120_v56  ;;  %v7200_v57 = vld [vmem:[%s9343_s3 + $0x240] sm:$0xff]  ;;  %v9136_v53 = vpack.c.bf16 %v7207_v50, %v7206_v49 }
0x171e   : > { %v5950_v58 = vadd.f32 1.0, %v9239_v59  ;;  %v7201_v59 = vld [vmem:[%s9343_s3 + $0x248] sm:$0xff] }
0x171f   : > { %9244 = vrcp.f32 %v5949_v46  ;;  %v9124_v46 = vpack.c.bf16 %v7201_v59, %v7200_v57  ;;  %v7221_v57 = vld [vmem:[%s9343_s3 + $0x2c8] sm:$0xff] }
0x1720   : > { %v9241_v61 = vpop.eup %9240  ;;  %9246 = vrcp.f32 %v5950_v58  ;;  %9123 = vmatpush3.bf16.msra.mxu0 %v9120_v56  ;;  %v7237_v58 = vld [vmem:[%s9363_s24 + $0x188] sm:$0xff]  ;;  %v7220_v56 = vld [vmem:[%s9343_s3 + $0x2c0] sm:$0xff] }
0x1721   : > { %v9243_v3 = vpop.eup %9242  ;;  %v5951_v1 = vadd.f32 1.0, %v9241_v61  ;;  %9125 = vmatprep.subr.bf16.mxu0 %v9124_v46  ;;  %v7236_v61 = vld [vmem:[%s9363_s24 + $0x180] sm:$0xff]  ;;  %v9140_v59 = vpack.c.bf16 %v7221_v57, %v7220_v56 }
0x1722   : > { %v5952_v63 = vadd.f32 1.0, %v9243_v3  ;;  %v9156_v3 = vpack.c.bf16 %v7239_v60, %v7237_v58  ;;  %v7222_v58 = vld [vmem:[%s9343_s3 + $0x2d0] sm:$0xff] }
0x1723   : > { %9248 = vrcp.f32 %v5951_v1  ;;  %v7238_v1 = vld [vmem:[%s9363_s24 + $0x190] sm:$0xff] }
0x1724   : > { %9250 = vrcp.f32 %v5952_v63  ;;  %v7243_v63 = vld [vmem:[%s9363_s24 + $0x1b8] sm:$0xff]  ;;  %v9158_v0 = vpack.c.bf16 %v7238_v1, %v7236_v61  ;;  %9157 = vmatprep.subr.bf16.mxu1 %v9156_v3  ;;  %v7224_v61 = vld [vmem:[%s9343_s3 + $0x2e0] sm:$0xff]  ;;  %v7225_v3 = vld [vmem:[%s9343_s3 + $0x2e8] sm:$0xff] }
0x1725   : > { %v9160_v51 = vpack.c.bf16 %v7243_v63, %v7241_v54  ;;  %v9148_v1 = vpack.c.bf16 %v7225_v3, %v7224_v61  ;;  %v7226_v54 = vld [vmem:[%s9343_s3 + $0x2f0] sm:$0xff]  ;;  %v7227_v63 = vld [vmem:[%s9343_s3 + $0x2f8] sm:$0xff] }
0x1729   : > { %v9245_v6 = vpop.eup %9244 }
0x172a   : > { %v9247_v7 = vpop.eup %9246  ;;  %v5961_v10 = vadd.f32 1.0, %v9245_v6  ;;  %v9162_v6 = vpack.c.bf16 %v7242_v5, %v7240_v4  ;;  %v7247_v4 = vld [vmem:[%s9363_s24 + $0x1d8] sm:$0xff] }
0x172b   : > { %v5962_v14 = vadd.f32 1.0, %v9247_v7  ;;  %v7195_v7 = vld [vmem:[%s9328_s21 + $0x3] ss:$0 sm:$0xff] }
0x172c   : > { %v10554_v16 = vmul.f32 %v5961_v10, %v2955_v9  ;;  %v7197_v10 = vld [vmem:[%s9333_s25 + $0x3] ss:$0 sm:$0xff] }
0x172d   : > { %v9249_v18 = vpop.eup %9248  ;;  %v10557_v8 = vmul.f32 %v5962_v14, %v2956_v2 }
0x172e   : > { %v9251_v55 = vpop.eup %9250  ;;  %v5963_v52 = vadd.f32 1.0, %v9249_v18  ;;  %v5982_v17 = vmul.f32 %v5975_v11, %v10554_v16 }
0x172f   : > { %v5964_v23 = vadd.f32 1.0, %v9251_v55  ;;  %v5983_v24 = vmul.f32 %v5979_v19, %v10557_v8 }
0x1730   : > { %v5999_v32 = vadd.f32 %v5992_v62, %v5982_v17  ;;  %v10564_v27 = vmul.f32 %v5963_v52, %v2957_v21 }
0x1731   : > { %v6000_v29 = vadd.f32 %v5996_v15, %v5983_v24  ;;  %v10566_v30 = vmul.f32 %v5964_v23, %v2958_v20 }
0x1732   : > { %v5984_v31 = vmul.f32 %v5975_v11, %v10564_v27  ;;  %v6003_v34 = vmax.f32 %v5999_v32, 0.0  ;;  %v7202_v32 = vld [vmem:[%s9343_s3 + $0x250] sm:$0xff] }
0x1733   : > { %v6004_v33 = vmax.f32 %v6000_v29, 0.0  ;;  %v5985_v25 = vmul.f32 %v5979_v19, %v10566_v30  ;;  %v7203_v29 = vld [vmem:[%s9343_s3 + $0x258] sm:$0xff] }
0x1734   : > { %v6001_v26 = vadd.f32 %v5992_v62, %v5984_v31  ;;  %v9128_v38 = vpack.c.bf16 %v7203_v29, %v7202_v32  ;;  %v7252_v29 = vld [vmem:[%s9368_s30 + $0x6] sm:$0x3] }
0x1735   : > { %6112 = vmatprep.mubr.f32.mxu1 %v6004_v33  ;;  %v6002_v35 = vadd.f32 %v5996_v15, %v5985_v25 }
0x1736   : > { %6113 = vmatmul.mubr.f32.vlgmr.msra.gmra.mrb[48].mxu1 %v6003_v34  ;;  %v6005_v36 = vmax.f32 %v6001_v26, 0.0 }
0x1737   : > { %v6006_v37 = vmax.f32 %v6002_v35, 0.0  ;;  %9159 = vmatpush1.bf16.msra.mxu1 %v9158_v0  ;;  %v9152_v0 = vpack.c.bf16 %v7227_v63, %v7226_v54 }
0x1738   : > { %9161 = vmatprep.subr.bf16.mxu1 %v9160_v51  ;;  %v7245_v51 = vld [vmem:[%s9363_s24 + $0x1c8] sm:$0xff] }
0x1739   : > { %6117 = vmatprep.mubr.f32.mxu1 %v6006_v37  ;;  %v9164_v5 = vpack.c.bf16 %v7247_v4, %v7245_v51 }
0x173a   : > { %6118 = vmatmul.mubr.f32.gmra.mrb[50].mxu1 %v6005_v36 }
0x173b   : > { %6564 = vmatprep.mubr.f32.mxu1 %v9297_v47  ;;  %9163 = vmatpush1.bf16.msra.mxu1 %v9162_v6  ;;  %v7244_v6 = vld [vmem:[%s9363_s24 + $0x1c0] sm:$0xff] }
0x173c   : > { %9165 = vmatprep.subr.bf16.mxu1 %v9164_v5 }
0x1809   : > { %v7751_v12 = vpop.f32.mrb[48].mxu1 }
0x180a   : > { %v7752_v9 = vpop.f32.mrb[49].mxu1 }
0x180b   : > { %v7753_v13 = vadd.f32 %v7752_v9, %v7751_v12  ;;  %v7246_v12 = vld [vmem:[%s9363_s24 + $0x1d0] sm:$0xff]  ;;  %v7249_v9 = vld [vmem:[%s9363_s24 + $0x1e8] sm:$0xff] }
0x180d   : > { %v6115_v11 = vadd.f32 %v7753_v13, %v7195_v7  ;;  %v7754_v2 = vpop.f32.mrb[50].mxu1  ;;  %v7251_v13 = vld [vmem:[%s9363_s24 + $0x1f8] sm:$0xff] }
0x180e   : > { %v7755_v14 = vpop.f32.mrb[51].mxu1 }
0x180f   : > { %v6131_v19 = vmul.f32 %v7197_v10, %v6115_v11  ;;  %v7756_v62 = vadd.f32 %v7755_v14, %v7754_v2  ;;  %v7248_v11 = vld [vmem:[%s9363_s24 + $0x1e0] sm:$0xff]  ;;  %v7250_v2 = vld [vmem:[%s9363_s24 + $0x1f0] sm:$0xff] }
0x1810   : > { %v7231_v14 = vld [vmem:[%s9348_s8 + $0x3] ss:$0 sm:$0xff] }
0x1811   : > { %v6141_v18 = vadd.f32 %v7199_v28, %v6131_v19  ;;  %v6120_v15 = vadd.f32 %v7756_v62, %v7195_v7  ;;  %v9166_v7 = vpack.c.bf16 %v7246_v12, %v7244_v6 }
0x1813   : > { %v6143_v55 = vmax.f32 %v6141_v18, 0.0  ;;  %v6132_v21 = vmul.f32 %v7197_v10, %v6120_v15  ;;  %9167 = vmatpush1.bf16.msra.mxu1 %v9166_v7  ;;  %v9168_v10 = vpack.c.bf16 %v7251_v13, %v7249_v9  ;;  %v7233_v18 = vld [vmem:[%s9353_s14 + $0x3] ss:$0 sm:$0xff] }
0x1815   : > { %v6147_v52 = vrot.slane %v6143_v55, 7  ;;  %v6142_v17 = vadd.f32 %v7199_v28, %v6132_v21  ;;  %v9170_v28 = vpack.c.bf16 %v7250_v2, %v7248_v11  ;;  %9169 = vmatprep.subr.bf16.mxu1 %v9168_v10  ;;  %v7235_v21 = vld [vmem:[%s9358_s19 + $0x3] ss:$0 sm:$0xff] }
0x1817   : > { %v6144_v20 = vmax.f32 %v6142_v17, 0.0  ;;  %v6152_v23 = vsel %vm1303_vm0, 0.0, %v6147_v52  ;;  %9171 = vmatpush1.bf16.msra.mxu1 %v9170_v28 }
0x1818   : > { %v6174_v25 = vrot.slane %v6152_v23, 1  ;;  %v6346_v34 = vrot.slane %v6152_v23, 2 }
0x1819   : > { %v6148_v24 = vrot.slane %v6144_v20, 7 }
0x181b   : > { %v6153_v31 = vsel %vm1303_vm0, %v6148_v24, 0.0  ;;  %v6149_v33 = vsel %vm1303_vm0, %v6147_v52, %v6148_v24 }
0x181c   : > { %v6177_v26 = vrot.slane %v6153_v31, 1  ;;  %v6175_v35 = vrot.slane %v6149_v33, 1  ;;  %v6347_v37 = vrot.slane %v6149_v33, 2  ;;  %v6349_v36 = vrot.slane %v6153_v31, 2 }
0x181d   : > { %v6487_v31 = vrot.slane %v7252_v29, %v9543_v40 }
0x181e   : > { %v6176_v39 = vsel %vm1330_vm1, %v6174_v25, %v6175_v35  ;;  %v6178_v41 = vsel %vm1330_vm1, %v6175_v35, %v6177_v26  ;;  %v6348_v42 = vsel %vm1504_vm3, %v6346_v34, %v6347_v37  ;;  %v6350_v43 = vsel %vm1504_vm3, %v6347_v37, %v6349_v36 }
0x181f   : > { %8295 = vmatprep.mubr.msk.f32.mxu0 %vm1336_vm2, %v6176_v39 }
0x1820   : > { %8296 = vmatmul.mubr.msk.f32.vlgmr.msra.gmra.mrb[44].mxu0 %vm1336_vm2, %v6178_v41 }
0x1821   : > { %9127 = vmatpush3.bf16.msra.mxu0 %v9124_v46  ;;  %8314 = vmatprep.mubr.msk.f32.mxu0 %vm1336_vm2, %v6152_v23  ;;  %v7223_v46 = vld [vmem:[%s9343_s3 + $0x2d8] sm:$0xff] }
0x1822   : > { %9129 = vmatprep.subr.bf16.mxu0 %v9128_v38  ;;  %v9144_v60 = vpack.c.bf16 %v7223_v46, %v7222_v58 }
0x1825   : > { %9131 = vmatpush3.bf16.msra.mxu0 %v9128_v38 }
0x1826   : > { %9133 = vmatprep.subr.bf16.mxu0 %v9132_v48 }
0x1829   : > { %9135 = vmatpush3.bf16.msra.mxu0 %v9132_v48 }
0x182a   : > { %9137 = vmatprep.subr.bf16.mxu0 %v9136_v53 }
0x182d   : > { %9139 = vmatpush3.bf16.msra.mxu0 %v9136_v53 }
0x182e   : > { %9141 = vmatprep.subr.bf16.mxu0 %v9140_v59 }
0x1830   : > { %8315 = vmatmul.mubr.msk.f32.vlgmr.msra.gmra.mrb[44].mxu0 %vm1336_vm2, %v6149_v33  ;;  %v6491_v33 = vrot.slane %v7252_v29, %v9525_v22 }
0x1831   : > { %9143 = vmatpush3.bf16.msra.mxu0 %v9140_v59  ;;  %8333 = vmatprep.mubr.msk.f32.mxu0 %vm1336_vm2, %v6348_v42 }
0x1832   : > { %9145 = vmatprep.subr.bf16.mxu0 %v9144_v60 }
0x1835   : > { %9147 = vmatpush3.bf16.msra.mxu0 %v9144_v60 }
0x1836   : > { %9149 = vmatprep.subr.bf16.mxu0 %v9148_v1 }
0x1839   : > { %9151 = vmatpush3.bf16.msra.mxu0 %v9148_v1 }
0x183a   : > { %9153 = vmatprep.subr.bf16.mxu0 %v9152_v0 }
0x183d   : > { %9155 = vmatpush3.bf16.msra.mxu0 %v9152_v0 }
0x1840   : > { %8334 = vmatmul.mubr.msk.f32.vlgmr.msra.gmra.mrb[44].mxu0 %vm1336_vm2, %v6350_v43 }
0x1913   : > { %v8335_v19 = vpop.f32.mrb[44].mxu0 }
0x1914   : > { %v6441_v62 = vadd.f32 %v8335_v19, %v7231_v14  ;;  %v6421_v15 = vpop.f32.mrb[45].mxu0 }
0x1915   : > { %v6440_v55 = vadd.f32 %v7231_v14, %v6421_v15 }
0x1916   : > { %v6451_v52 = vmul.f32 %v7233_v18, %v6441_v62 }
0x1917   : > { %v6450_v17 = vmul.f32 %v7233_v18, %v6440_v55 }
0x1918   : > { %v6461_v23 = vadd.f32 %v7235_v21, %v6451_v52 }
0x1919   : > { %v6460_v20 = vadd.f32 %v7235_v21, %v6450_v17 }
0x191a   : > { %v6463_v32 = vmax.f32 %v6461_v23, 0.0 }
0x191b   : > { %v6462_v24 = vmax.f32 %v6460_v20, 0.0 }
0x191d   : > { %7253 = vmatmul.mubr.msk.f32.vlgmr.msra.gmra.mrb[52].mxu1 %vm1336_vm2, %v6462_v24 }
0x191e   : > { %6570 = vmatprep.mubr.f32.mxu1 %v9297_v47 }
0x1921   : > { %7254 = vmatmul.mubr.msk.f32.gmra.mrb[54].mxu1 %vm1336_vm2, %v6463_v32 }
0x19f0   : > { %v6566_v25 = vpop.f32.mrb[52].mxu1 }
0x19f1   : > { %v6567_v34 = vadd.f32 %v6566_v25, %v6487_v31  ;;  %v6568_v26 = vpop.f32.mrb[53].mxu1 }
0x19f2   : > { %v6569_v35 = vadd.f32 %v6568_v26, %v6491_v33 }
0x19f3   : > { %v6577_v37 = vadd.f32 %v6567_v34, %v10554_v16 }
0x19f4   : > { %v6578_v36 = vadd.f32 %v6569_v35, %v10557_v8  ;;  %v6572_v38 = vpop.f32.mrb[54].mxu1 }
0x19f5   : > { %6581 = vst [vmem:[%s1126_s2] sm:$0xff] %v6577_v37  ;;  %v6573_v47 = vadd.f32 %v6572_v38, %v6487_v31  ;;  %v6574_v39 = vpop.f32.mrb[55].mxu1 }
0x19f6   : > { %6582 = vst [vmem:[%s1126_s2 + $0x8] sm:$0xff] %v6578_v36  ;;  %v6575_v41 = vadd.f32 %v6574_v39, %v6491_v33 }
0x19f7   : > { %v6579_v40 = vadd.f32 %v6573_v47, %v10564_v27 }
0x19f8   : > { %v6580_v22 = vadd.f32 %v6575_v41, %v10566_v30 }
0x19f9   : > { %6583 = vst [vmem:[%s1126_s2 + $0x10] sm:$0xff] %v6579_v40 }
0x19fa   : > { %6584 = vst [vmem:[%s1126_s2 + $0x18] sm:$0xff] %v6580_v22 }
0x19fb PF: > { %s85_s7 = sadd.s32 1, %s9258_s7  }
0x19fc   : > { %p82_p4 = scmp.ge.s32.totalorder %s85_s7, 4  }
0x19fe   :  { %84 = sbr.rel (!%p82_p4) target bundleno = 68 (0x44), region = 325 }

</bundles_post_ra>
